<compile_context>
chip_gen: v6e
topology: v6e:2x2x1
jax: 0.10.0
libtpu: 0.0.40
codegen_flags: <defaults>
</compile_context>

<pallas_src>
import functools

import jax
import jax.numpy as jnp
from jax import lax
from jax.experimental import pallas as pl
from jax.experimental.pallas import tpu as pltpu


# -----------------------------------------------------------------------------
# Fused kernel: BiLSTM stack + attention_net_with_w + fc_out.
# -----------------------------------------------------------------------------
def _bilstm_attn_kernel(*refs, hidden, num_layers, seq_len, batch_pad, state_width):
    H, T, Bp, L, SW = hidden, seq_len, batch_pad, num_layers, state_width
    GP = SW                                   # lane-aligned per-gate group width (>=128)
    f32, bf16 = jnp.float32, jnp.bfloat16

    x_ref = refs[0]                           # [T*Bp, E] bf16 (row = t*Bp + b, time-major)
    lstm_refs = refs[1:1 + 3 * L]             # per layer: wih [in,4GP], whh [SW,4GP], bias [1,4GP]
    watt_ref, batt_ref, w1_ref, b1_ref, w2_ref, b2_ref = refs[1 + 3 * L:7 + 3 * L]
    out_ref = refs[7 + 3 * L]                 # [Bp, C_pad] f32
    gx_sc = refs[8 + 3 * L]                   # [T*Bp, 4*GP] f32  hoisted gate pre-activations
    hs_sc = refs[9 + 3 * L]                   # [T*Bp, SW]  f32  per-step hidden states

    # Hoisted masks (built once).
    gate_lane = lax.broadcasted_iota(jnp.int32, (Bp, 4 * GP), 1)
    fwd_cols = (gate_lane % GP) < H           # forward-direction columns of each gate group
    state_lane = lax.broadcasted_iota(jnp.int32, (Bp, SW), 1)
    fwd_state = state_lane < H                # forward-hidden lanes of the state layout

    hid_sum = jnp.zeros((Bp, SW), f32)        # sum over layers of final [h_f | h_b | 0]

    for layer in range(L):
        wih = lstm_refs[3 * layer + 0][...]   # bf16
        whh = lstm_refs[3 * layer + 1][...]   # bf16, rows 2H:SW are zero
        bias = lstm_refs[3 * layer + 2][...]  # f32  (= b_ih + b_hh, both dirs, zero pad)

        # --- hoisted input projection: one MXU matmul covering every time step ---
        if layer == 0:
            xin = x_ref[...]
        else:
            xin = hs_sc[...].astype(bf16)     # positional [h_f(p)|h_b(p)|0] of prev layer
        gx_sc[...] = jnp.dot(xin, wih, preferred_element_type=f32) + bias

        # --- pre-merge the fwd/bwd time reversal off the serial path ------------
        # After this pass, row block t holds fwd gates of x[t] and bwd gates of x[T-1-t],
        # so the recurrence step reads a single aligned row block.
        for t in range(T // 2):
            rt = T - 1 - t
            a = gx_sc[pl.ds(t * Bp, Bp), :]
            b = gx_sc[pl.ds(rt * Bp, Bp), :]
            gx_sc[pl.ds(t * Bp, Bp), :] = jnp.where(fwd_cols, a, b)
            gx_sc[pl.ds(rt * Bp, Bp), :] = jnp.where(fwd_cols, b, a)

        # --- fused fwd/bwd recurrence: h/c live in vregs, only h @ W_hh is serial ---
        h_bf = jnp.zeros((Bp, SW), bf16)      # matmul operand (bf16, MXU-native)
        c = jnp.zeros((Bp, SW), f32)
        h = jnp.zeros((Bp, SW), f32)
        for t in range(T):                    # fully unrolled: T is small
            gates = (gx_sc[pl.ds(t * Bp, Bp), :]
                     + jnp.dot(h_bf, whh, preferred_element_type=f32))
            # lane-aligned gate groups: each slice is a whole vreg column group
            i = jax.nn.sigmoid(gates[:, 0 * GP:1 * GP])
            f = jax.nn.sigmoid(gates[:, 1 * GP:2 * GP])
            g = jnp.tanh(gates[:, 2 * GP:3 * GP])
            o = jax.nn.sigmoid(gates[:, 3 * GP:4 * GP])
            c = f * c + i * g                 # [Bp, SW] = [c_f | c_b | 0]
            h = o * jnp.tanh(c)               # [Bp, SW] = [h_f | h_b | 0]
            # Single aligned full-tile f32 store per step (off the dependent chain).
            hs_sc[pl.ds(t * Bp, Bp), :] = h
            h_bf = h.astype(bf16)
        hid_sum = hid_sum + h                 # final hidden states of this layer (both dirs)

        # --- hoisted pair-swap: step-order -> positional [h_f(p) | h_b(p) | 0] -----
        # hs_sc[t] currently holds [h_f(t) | h_b(T-1-t) | 0].
        for t in range(T // 2):
            rt = T - 1 - t
            a = hs_sc[pl.ds(t * Bp, Bp), :]
            b = hs_sc[pl.ds(rt * Bp, Bp), :]
            hs_sc[pl.ds(t * Bp, Bp), :] = jnp.where(fwd_state, a, b)
            hs_sc[pl.ds(rt * Bp, Bp), :] = jnp.where(fwd_state, b, a)

    # ---- attention_net_with_w ----
    comb = hs_sc[...]                         # [T*Bp, SW] positional bidirectional outputs
    h2d = comb[:, :H] + comb[:, H:2 * H]      # torch.chunk(lstm_out, 2, -1)[0] + [1]
    m2d = jnp.tanh(h2d)
    # fwd+bwd hidden-sum add is folded into duplicated rows of the packed W_att.
    attn_w = jnp.maximum(
        jnp.dot(hid_sum.astype(bf16), watt_ref[...], preferred_element_type=f32)
        + batt_ref[...], 0.0)                 # [Bp, H]

    # bmm(attn_w, m^T) as one [Bp,H] x [T*Bp,H]^T matmul; rows of other batch elements
    # are masked out of the softmax (row r of h2d belongs to batch r % Bp).
    scores = lax.dot_general(attn_w.astype(bf16), m2d.astype(bf16),
                             (((1,), (1,)), ((), ())),
                             preferred_element_type=f32)        # [Bp, T*Bp]
    col = lax.broadcasted_iota(jnp.int32, (Bp, T * Bp), 1)
    row = lax.broadcasted_iota(jnp.int32, (Bp, T * Bp), 0)
    own = (col % Bp) == row
    scores = jnp.where(own, scores, -1e30)
    scores = scores - jnp.max(scores, axis=-1, keepdims=True)
    e = jnp.where(own, jnp.exp(scores), 0.0)
    p = e / jnp.sum(e, axis=-1, keepdims=True)                  # exact divide
    context = jnp.dot(p.astype(bf16), h2d.astype(bf16),
                      preferred_element_type=f32)               # [Bp, H]

    # ---- fc_out (dropouts are identity at inference) ----
    z = jnp.maximum(
        jnp.dot(context.astype(bf16), w1_ref[...], preferred_element_type=f32)
        + b1_ref[...], 0.0)
    out_ref[...] = (jnp.dot(z.astype(bf16), w2_ref[...], preferred_element_type=f32)
                    + b2_ref[...])            # [Bp, C_pad] lane-dense store


# -----------------------------------------------------------------------------
# Parameter packing: PyTorch layout -> fused-kernel layout.
#   Gate column layout: 4 groups of GP(=128*) lanes, group k = gate k (i,f,g,o),
#   within a group: [fwd H | bwd H | zero pad]. State layout: [h_f | h_b | zero pad].
# -----------------------------------------------------------------------------
def pack_params(raw, hidden, num_classes):
    H = hidden
    SW = GP = pl.cdiv(2 * H, 128) * 128
    c_pad = pl.cdiv(num_classes, 128) * 128
    bf16 = jnp.bfloat16

    def pack_gate_cols(w_f, w_b):
        # w_f/w_b: [rows, 4H] (gate order i,f,g,o) -> [rows, 4*GP] lane-aligned groups.
        rows = w_f.shape[0]
        out = jnp.zeros((rows, 4 * GP), jnp.float32)
        for k in range(4):
            out = out.at[:, k * GP:k * GP + H].set(w_f[:, k * H:(k + 1) * H])
            out = out.at[:, k * GP + H:k * GP + 2 * H].set(w_b[:, k * H:(k + 1) * H])
        return out

    packed = {"lstm": []}
    for layer, (fwd, bwd) in enumerate(raw["lstm"]):
        w_ih_f, w_hh_f, b_ih_f, b_hh_f = fwd
        w_ih_b, w_hh_b, b_ih_b, b_hh_b = bwd
        wih = pack_gate_cols(w_ih_f.T, w_ih_b.T)                       # [in, 4*GP]
        if layer > 0:                                                  # input = state layout
            wih = jnp.pad(wih, ((0, SW - wih.shape[0]), (0, 0)))
        whh_f = pack_gate_cols(w_hh_f.T, jnp.zeros_like(w_hh_b.T))     # rows for h_f lanes
        whh_b = pack_gate_cols(jnp.zeros_like(w_hh_f.T), w_hh_b.T)     # rows for h_b lanes
        whh = jnp.pad(jnp.concatenate([whh_f, whh_b], axis=0),
                      ((0, SW - 2 * H), (0, 0)))                       # zero rows for pad lanes
        bias = pack_gate_cols((b_ih_f + b_hh_f)[None, :],
                              (b_ih_b + b_hh_b)[None, :])              # [1, 4*GP] f32
        packed["lstm"].append((wih.astype(bf16), whh.astype(bf16), bias))

    # Attention Linear, with the (sum fwd + sum bwd) add folded into duplicated rows.
    watt = jnp.zeros((SW, H), jnp.float32)
    watt = watt.at[:H].set(raw["w_att"].T).at[H:2 * H].set(raw["w_att"].T)
    packed["watt"] = watt.astype(bf16)
    packed["batt"] = raw["b_att"][None, :]
    packed["w1"] = raw["w_fc1"].T.astype(bf16)
    packed["b1"] = raw["b_fc1"][None, :]
    pad = c_pad - num_classes
    packed["w2"] = jnp.pad(raw["w_fc2"].T, ((0, 0), (0, pad))).astype(bf16)   # [H, c_pad]
    packed["b2"] = jnp.pad(raw["b_fc2"][None, :], ((0, 0), (0, pad)))         # [1, c_pad]
    return packed


def init_params(key, emb_size, hidden, rnn_layers, num_classes):
    """Deterministic synthetic parameters in PyTorch layouts."""
    def nxt():
        nonlocal key
        key, sub = jax.random.split(key)
        return sub

    s = 0.1
    raw = {"lstm": []}
    for layer in range(rnn_layers):
        in_size = emb_size if layer == 0 else 2 * hidden
        dirs = []
        for _ in range(2):  # forward, backward
            dirs.append((
                jax.random.normal(nxt(), (4 * hidden, in_size), jnp.float32) * s,  # weight_ih
                jax.random.normal(nxt(), (4 * hidden, hidden), jnp.float32) * s,   # weight_hh
                jax.random.normal(nxt(), (4 * hidden,), jnp.float32) * s,          # bias_ih
                jax.random.normal(nxt(), (4 * hidden,), jnp.float32) * s,          # bias_hh
            ))
        raw["lstm"].append(tuple(dirs))
    raw["w_att"] = jax.random.normal(nxt(), (hidden, hidden), jnp.float32) * s
    raw["b_att"] = jax.random.normal(nxt(), (hidden,), jnp.float32) * s
    raw["w_fc1"] = jax.random.normal(nxt(), (hidden, hidden), jnp.float32) * s
    raw["b_fc1"] = jax.random.normal(nxt(), (hidden,), jnp.float32) * s
    raw["w_fc2"] = jax.random.normal(nxt(), (num_classes, hidden), jnp.float32) * s
    raw["b_fc2"] = jax.random.normal(nxt(), (num_classes,), jnp.float32) * s
    return raw


# -----------------------------------------------------------------------------
# Forward pass (single fused pallas_call).
# -----------------------------------------------------------------------------
def text_bilstm_forward(batch_embs, packed, *, hidden, rnn_layers, num_classes):
    B, T, E = batch_embs.shape
    H = hidden
    Bp = pl.cdiv(B, 8) * 8                     # pad batch to the f32 sublane tile
    SW = pl.cdiv(2 * H, 128) * 128             # lane-padded state / per-gate group width
    c_pad = packed["w2"].shape[1]

    # Time-major, batch-padded rows (row = t*Bp + b): every per-step access inside the
    # kernel is an aligned (8,128)-tile row block.
    x_t = jnp.transpose(batch_embs, (1, 0, 2))                  # [T, B, E]
    x_t = jnp.pad(x_t, ((0, 0), (0, Bp - B), (0, 0)))
    x2d = x_t.reshape(T * Bp, E).astype(jnp.bfloat16)

    lstm_args = []
    for wih, whh, b in packed["lstm"]:
        lstm_args += [wih, whh, b]

    kernel = functools.partial(_bilstm_attn_kernel, hidden=H, num_layers=rnn_layers,
                               seq_len=T, batch_pad=Bp, state_width=SW)
    logits_pad = pl.pallas_call(
        kernel,
        out_shape=jax.ShapeDtypeStruct((Bp, c_pad), jnp.float32),
        scratch_shapes=[
            pltpu.VMEM((T * Bp, 4 * SW), jnp.float32),   # hoisted, pre-merged gate inputs
            pltpu.VMEM((T * Bp, SW), jnp.float32),       # per-step hidden states
        ],
        compiler_params=pltpu.CompilerParams(vmem_limit_bytes=32 * 1024 * 1024),
    )(x2d, *lstm_args, packed["watt"], packed["batt"],
      packed["w1"], packed["b1"], packed["w2"], packed["b2"])
    return logits_pad[:B, :num_classes]


if __name__ == "__main__":
    # Small config consistent with the module: emb_size=32, hidden_dims=32,
    # rnn_layers=2, num_classes=4; batch=2, seq_len=8.
    B, T, E, H, L, C = 2, 8, 32, 32, 2, 4

    key = jax.random.PRNGKey(0)
    k_x, k_p = jax.random.split(key)
    batch_embs = jax.random.normal(k_x, (B, T, E), jnp.float32)
    raw = init_params(k_p, E, H, L, C)
    packed = pack_params(raw, H, C)

    fwd = jax.jit(functools.partial(text_bilstm_forward, hidden=H,
                                    rnn_layers=L, num_classes=C))
    logits = jax.block_until_ready(fwd(batch_embs, packed))
    assert logits.shape == (B, C) and logits.dtype == jnp.float32
    assert bool(jnp.all(jnp.isfinite(logits)))
    print("KERNEL_OK")
</pallas_src>

<mosaic_0001>
module attributes {stable_mosaic.version = 11 : i64} {
  func.func @_bilstm_attn_kernel(%arg0: memref<64x32xbf16, #tpu.memory_space<vmem>>, %arg1: memref<32x512xbf16, #tpu.memory_space<vmem>>, %arg2: memref<128x512xbf16, #tpu.memory_space<vmem>>, %arg3: memref<1x512xf32, #tpu.memory_space<vmem>>, %arg4: memref<128x512xbf16, #tpu.memory_space<vmem>>, %arg5: memref<128x512xbf16, #tpu.memory_space<vmem>>, %arg6: memref<1x512xf32, #tpu.memory_space<vmem>>, %arg7: memref<128x32xbf16, #tpu.memory_space<vmem>>, %arg8: memref<1x32xf32, #tpu.memory_space<vmem>>, %arg9: memref<32x32xbf16, #tpu.memory_space<vmem>>, %arg10: memref<1x32xf32, #tpu.memory_space<vmem>>, %arg11: memref<32x128xbf16, #tpu.memory_space<vmem>>, %arg12: memref<1x128xf32, #tpu.memory_space<vmem>>, %arg13: memref<8x128xf32, #tpu.memory_space<vmem>>, %arg14: memref<64x512xf32, #tpu.memory_space<vmem>>, %arg15: memref<64x128xf32, #tpu.memory_space<vmem>>) attributes {dimension_semantics = [], scalar_prefetch = 0 : i64, scratch_operands = 2 : i64, tpu.core_type = #tpu.core_type<tc>} {
    %0 = tpu.iota {dimensions = array<i32: 1>} : vector<8x512xi32>
    %c128_i32 = arith.constant 128 : i32
    %c0_i32 = arith.constant 0 : i32
    %1 = arith.cmpi eq, %c128_i32, %c0_i32 : i32
    %c1_i32 = arith.constant 1 : i32
    %2 = arith.select %1, %c1_i32, %c128_i32 : i32
    %3 = vector.broadcast %2 : i32 to vector<8x512xi32>
    %4 = arith.remsi %0, %3 : vector<8x512xi32>
    %c0_i32_0 = arith.constant 0 : i32
    %5 = vector.broadcast %c0_i32_0 : i32 to vector<8x512xi32>
    %6 = arith.cmpi ne, %4, %5 : vector<8x512xi32>
    %c0_i32_1 = arith.constant 0 : i32
    %7 = vector.broadcast %c0_i32_1 : i32 to vector<8x512xi32>
    %8 = arith.cmpi slt, %4, %7 : vector<8x512xi32>
    %c0_i32_2 = arith.constant 0 : i32
    %9 = arith.cmpi slt, %2, %c0_i32_2 : i32
    %10 = vector.broadcast %9 : i1 to vector<8x512xi1>
    %11 = vector.broadcast %10 : vector<8x512xi1> to vector<8x512xi1>
    %12 = arith.xori %8, %11 : vector<8x512xi1>
    %13 = arith.andi %12, %6 : vector<8x512xi1>
    %14 = vector.broadcast %2 : i32 to vector<8x512xi32>
    %15 = arith.addi %4, %14 : vector<8x512xi32>
    %16 = arith.select %13, %15, %4 : vector<8x512xi1>, vector<8x512xi32>
    %c32_i32 = arith.constant 32 : i32
    %17 = vector.broadcast %c32_i32 : i32 to vector<8x512xi32>
    %18 = arith.cmpi slt, %16, %17 : vector<8x512xi32>
    %19 = tpu.iota {dimensions = array<i32: 1>} : vector<8x128xi32>
    %c32_i32_3 = arith.constant 32 : i32
    %20 = vector.broadcast %c32_i32_3 : i32 to vector<8x128xi32>
    %21 = arith.cmpi slt, %19, %20 : vector<8x128xi32>
    %cst = arith.constant 0.000000e+00 : f32
    %22 = vector.broadcast %cst : f32 to vector<8x128xf32>
    %c0 = arith.constant 0 : index
    %c0_4 = arith.constant 0 : index
    %23 = vector.load %arg1[%c0, %c0_4] : memref<32x512xbf16, #tpu.memory_space<vmem>>, vector<32x512xbf16>
    %c0_5 = arith.constant 0 : index
    %c0_6 = arith.constant 0 : index
    %24 = vector.load %arg2[%c0_5, %c0_6] : memref<128x512xbf16, #tpu.memory_space<vmem>>, vector<128x512xbf16>
    %c0_7 = arith.constant 0 : index
    %c0_8 = arith.constant 0 : index
    %25 = vector.load %arg3[%c0_7, %c0_8] : memref<1x512xf32, #tpu.memory_space<vmem>>, vector<1x512xf32>
    %c0_9 = arith.constant 0 : index
    %c0_10 = arith.constant 0 : index
    %26 = vector.load %arg0[%c0_9, %c0_10] : memref<64x32xbf16, #tpu.memory_space<vmem>>, vector<64x32xbf16>
    %cst_11 = arith.constant dense<0.000000e+00> : vector<64x512xf32>
    %27 = tpu.matmul %26, %23, %cst_11 {dimension_numbers = #tpu.dot_dimension_numbers<[1], [0], [0], [1], [0, 0, 1, 1], [], []>} : vector<64x32xbf16>, vector<32x512xbf16>, vector<64x512xf32> -> vector<64x512xf32>
    %28 = vector.broadcast %25 : vector<1x512xf32> to vector<64x512xf32>
    %29 = arith.addf %27, %28 : vector<64x512xf32>
    %c0_12 = arith.constant 0 : index
    %c0_13 = arith.constant 0 : index
    %30 = vector.load %arg14[%c0_12, %c0_13] : memref<64x512xf32, #tpu.memory_space<vmem>>, vector<64x512xf32>
    tpu.vector_store %arg14[%c0_12, %c0_13], %29 {strides = array<i32>} : memref<64x512xf32, #tpu.memory_space<vmem>>, vector<64x512xf32>,
    %c0_14 = arith.constant 0 : index
    %c0_15 = arith.constant 0 : index
    %31 = vector.load %arg14[%c0_14, %c0_15] : memref<64x512xf32, #tpu.memory_space<vmem>>, vector<8x512xf32>
    %c56 = arith.constant 56 : index
    %c0_16 = arith.constant 0 : index
    %32 = vector.load %arg14[%c56, %c0_16] : memref<64x512xf32, #tpu.memory_space<vmem>>, vector<8x512xf32>
    %33 = arith.select %18, %31, %32 : vector<8x512xi1>, vector<8x512xf32>
    %c0_17 = arith.constant 0 : index
    %c0_18 = arith.constant 0 : index
    %34 = vector.load %arg14[%c0_17, %c0_18] : memref<64x512xf32, #tpu.memory_space<vmem>>, vector<8x512xf32>
    tpu.vector_store %arg14[%c0_17, %c0_18], %33 {strides = array<i32>} : memref<64x512xf32, #tpu.memory_space<vmem>>, vector<8x512xf32>,
    %35 = arith.select %18, %32, %31 : vector<8x512xi1>, vector<8x512xf32>
    %c56_19 = arith.constant 56 : index
    %c0_20 = arith.constant 0 : index
    %36 = vector.load %arg14[%c56_19, %c0_20] : memref<64x512xf32, #tpu.memory_space<vmem>>, vector<8x512xf32>
    tpu.vector_store %arg14[%c56_19, %c0_20], %35 {strides = array<i32>} : memref<64x512xf32, #tpu.memory_space<vmem>>, vector<8x512xf32>,
    %c8 = arith.constant 8 : index
    %c0_21 = arith.constant 0 : index
    %37 = vector.load %arg14[%c8, %c0_21] : memref<64x512xf32, #tpu.memory_space<vmem>>, vector<8x512xf32>
    %c48 = arith.constant 48 : index
    %c0_22 = arith.constant 0 : index
    %38 = vector.load %arg14[%c48, %c0_22] : memref<64x512xf32, #tpu.memory_space<vmem>>, vector<8x512xf32>
    %39 = arith.select %18, %37, %38 : vector<8x512xi1>, vector<8x512xf32>
    %c8_23 = arith.constant 8 : index
    %c0_24 = arith.constant 0 : index
    %40 = vector.load %arg14[%c8_23, %c0_24] : memref<64x512xf32, #tpu.memory_space<vmem>>, vector<8x512xf32>
    tpu.vector_store %arg14[%c8_23, %c0_24], %39 {strides = array<i32>} : memref<64x512xf32, #tpu.memory_space<vmem>>, vector<8x512xf32>,
    %41 = arith.select %18, %38, %37 : vector<8x512xi1>, vector<8x512xf32>
    %c48_25 = arith.constant 48 : index
    %c0_26 = arith.constant 0 : index
    %42 = vector.load %arg14[%c48_25, %c0_26] : memref<64x512xf32, #tpu.memory_space<vmem>>, vector<8x512xf32>
    tpu.vector_store %arg14[%c48_25, %c0_26], %41 {strides = array<i32>} : memref<64x512xf32, #tpu.memory_space<vmem>>, vector<8x512xf32>,
    %c16 = arith.constant 16 : index
    %c0_27 = arith.constant 0 : index
    %43 = vector.load %arg14[%c16, %c0_27] : memref<64x512xf32, #tpu.memory_space<vmem>>, vector<8x512xf32>
    %c40 = arith.constant 40 : index
    %c0_28 = arith.constant 0 : index
    %44 = vector.load %arg14[%c40, %c0_28] : memref<64x512xf32, #tpu.memory_space<vmem>>, vector<8x512xf32>
    %45 = arith.select %18, %43, %44 : vector<8x512xi1>, vector<8x512xf32>
    %c16_29 = arith.constant 16 : index
    %c0_30 = arith.constant 0 : index
    %46 = vector.load %arg14[%c16_29, %c0_30] : memref<64x512xf32, #tpu.memory_space<vmem>>, vector<8x512xf32>
    tpu.vector_store %arg14[%c16_29, %c0_30], %45 {strides = array<i32>} : memref<64x512xf32, #tpu.memory_space<vmem>>, vector<8x512xf32>,
    %47 = arith.select %18, %44, %43 : vector<8x512xi1>, vector<8x512xf32>
    %c40_31 = arith.constant 40 : index
    %c0_32 = arith.constant 0 : index
    %48 = vector.load %arg14[%c40_31, %c0_32] : memref<64x512xf32, #tpu.memory_space<vmem>>, vector<8x512xf32>
    tpu.vector_store %arg14[%c40_31, %c0_32], %47 {strides = array<i32>} : memref<64x512xf32, #tpu.memory_space<vmem>>, vector<8x512xf32>,
    %c24 = arith.constant 24 : index
    %c0_33 = arith.constant 0 : index
    %49 = vector.load %arg14[%c24, %c0_33] : memref<64x512xf32, #tpu.memory_space<vmem>>, vector<8x512xf32>
    %c32 = arith.constant 32 : index
    %c0_34 = arith.constant 0 : index
    %50 = vector.load %arg14[%c32, %c0_34] : memref<64x512xf32, #tpu.memory_space<vmem>>, vector<8x512xf32>
    %51 = arith.select %18, %49, %50 : vector<8x512xi1>, vector<8x512xf32>
    %c24_35 = arith.constant 24 : index
    %c0_36 = arith.constant 0 : index
    %52 = vector.load %arg14[%c24_35, %c0_36] : memref<64x512xf32, #tpu.memory_space<vmem>>, vector<8x512xf32>
    tpu.vector_store %arg14[%c24_35, %c0_36], %51 {strides = array<i32>} : memref<64x512xf32, #tpu.memory_space<vmem>>, vector<8x512xf32>,
    %53 = arith.select %18, %50, %49 : vector<8x512xi1>, vector<8x512xf32>
    %c32_37 = arith.constant 32 : index
    %c0_38 = arith.constant 0 : index
    %54 = vector.load %arg14[%c32_37, %c0_38] : memref<64x512xf32, #tpu.memory_space<vmem>>, vector<8x512xf32>
    tpu.vector_store %arg14[%c32_37, %c0_38], %53 {strides = array<i32>} : memref<64x512xf32, #tpu.memory_space<vmem>>, vector<8x512xf32>,
    %cst_39 = arith.constant 0.000000e+00 : bf16
    %55 = vector.broadcast %cst_39 : bf16 to vector<8x128xbf16>
    %cst_40 = arith.constant 0.000000e+00 : f32
    %56 = vector.broadcast %cst_40 : f32 to vector<8x128xf32>
    %c0_41 = arith.constant 0 : index
    %c0_42 = arith.constant 0 : index
    %57 = vector.load %arg14[%c0_41, %c0_42] : memref<64x512xf32, #tpu.memory_space<vmem>>, vector<8x512xf32>
    %cst_43 = arith.constant dense<0.000000e+00> : vector<8x512xf32>
    %58 = tpu.matmul %55, %24, %cst_43 {dimension_numbers = #tpu.dot_dimension_numbers<[1], [0], [0], [1], [0, 0, 1, 1], [], []>} : vector<8x128xbf16>, vector<128x512xbf16>, vector<8x512xf32> -> vector<8x512xf32>
    %59 = arith.addf %57, %58 : vector<8x512xf32>
    %60 = vector.extract_strided_slice %59 {offsets = [0, 0], sizes = [8, 128], strides = [1, 1]} : vector<8x512xf32> to vector<8x128xf32>
    %61 = arith.negf %60 : vector<8x128xf32>
    %62 = math.exp %61 : vector<8x128xf32>
    %cst_44 = arith.constant 1.000000e+00 : f32
    %63 = vector.broadcast %cst_44 : f32 to vector<8x128xf32>
    %64 = arith.addf %63, %62 : vector<8x128xf32>
    %65 = arith.divf %63, %64 : vector<8x128xf32>
    %66 = vector.extract_strided_slice %59 {offsets = [0, 128], sizes = [8, 128], strides = [1, 1]} : vector<8x512xf32> to vector<8x128xf32>
    %67 = arith.negf %66 : vector<8x128xf32>
    %68 = math.exp %67 : vector<8x128xf32>
    %cst_45 = arith.constant 1.000000e+00 : f32
    %69 = vector.broadcast %cst_45 : f32 to vector<8x128xf32>
    %70 = arith.addf %69, %68 : vector<8x128xf32>
    %71 = arith.divf %69, %70 : vector<8x128xf32>
    %72 = vector.extract_strided_slice %59 {offsets = [0, 256], sizes = [8, 128], strides = [1, 1]} : vector<8x512xf32> to vector<8x128xf32>
    %73 = math.tanh %72 : vector<8x128xf32>
    %74 = vector.extract_strided_slice %59 {offsets = [0, 384], sizes = [8, 128], strides = [1, 1]} : vector<8x512xf32> to vector<8x128xf32>
    %75 = arith.negf %74 : vector<8x128xf32>
    %76 = math.exp %75 : vector<8x128xf32>
    %cst_46 = arith.constant 1.000000e+00 : f32
    %77 = vector.broadcast %cst_46 : f32 to vector<8x128xf32>
    %78 = arith.addf %77, %76 : vector<8x128xf32>
    %79 = arith.divf %77, %78 : vector<8x128xf32>
    %80 = arith.mulf %71, %56 : vector<8x128xf32>
    %81 = arith.mulf %65, %73 : vector<8x128xf32>
    %82 = arith.addf %80, %81 : vector<8x128xf32>
    %83 = math.tanh %82 : vector<8x128xf32>
    %84 = arith.mulf %79, %83 : vector<8x128xf32>
    %c0_47 = arith.constant 0 : index
    %c0_48 = arith.constant 0 : index
    %85 = vector.load %arg15[%c0_47, %c0_48] : memref<64x128xf32, #tpu.memory_space<vmem>>, vector<8x128xf32>
    tpu.vector_store %arg15[%c0_47, %c0_48], %84 {strides = array<i32>} : memref<64x128xf32, #tpu.memory_space<vmem>>, vector<8x128xf32>,
    %86 = arith.truncf %84 : vector<8x128xf32> to vector<8x128xbf16>
    %c8_49 = arith.constant 8 : index
    %c0_50 = arith.constant 0 : index
    %87 = vector.load %arg14[%c8_49, %c0_50] : memref<64x512xf32, #tpu.memory_space<vmem>>, vector<8x512xf32>
    %cst_51 = arith.constant dense<0.000000e+00> : vector<8x512xf32>
    %88 = tpu.matmul %86, %24, %cst_51 {dimension_numbers = #tpu.dot_dimension_numbers<[1], [0], [0], [1], [0, 0, 1, 1], [], []>} : vector<8x128xbf16>, vector<128x512xbf16>, vector<8x512xf32> -> vector<8x512xf32>
    %89 = arith.addf %87, %88 : vector<8x512xf32>
    %90 = vector.extract_strided_slice %89 {offsets = [0, 0], sizes = [8, 128], strides = [1, 1]} : vector<8x512xf32> to vector<8x128xf32>
    %91 = arith.negf %90 : vector<8x128xf32>
    %92 = math.exp %91 : vector<8x128xf32>
    %cst_52 = arith.constant 1.000000e+00 : f32
    %93 = vector.broadcast %cst_52 : f32 to vector<8x128xf32>
    %94 = arith.addf %93, %92 : vector<8x128xf32>
    %95 = arith.divf %93, %94 : vector<8x128xf32>
    %96 = vector.extract_strided_slice %89 {offsets = [0, 128], sizes = [8, 128], strides = [1, 1]} : vector<8x512xf32> to vector<8x128xf32>
    %97 = arith.negf %96 : vector<8x128xf32>
    %98 = math.exp %97 : vector<8x128xf32>
    %cst_53 = arith.constant 1.000000e+00 : f32
    %99 = vector.broadcast %cst_53 : f32 to vector<8x128xf32>
    %100 = arith.addf %99, %98 : vector<8x128xf32>
    %101 = arith.divf %99, %100 : vector<8x128xf32>
    %102 = vector.extract_strided_slice %89 {offsets = [0, 256], sizes = [8, 128], strides = [1, 1]} : vector<8x512xf32> to vector<8x128xf32>
    %103 = math.tanh %102 : vector<8x128xf32>
    %104 = vector.extract_strided_slice %89 {offsets = [0, 384], sizes = [8, 128], strides = [1, 1]} : vector<8x512xf32> to vector<8x128xf32>
    %105 = arith.negf %104 : vector<8x128xf32>
    %106 = math.exp %105 : vector<8x128xf32>
    %cst_54 = arith.constant 1.000000e+00 : f32
    %107 = vector.broadcast %cst_54 : f32 to vector<8x128xf32>
    %108 = arith.addf %107, %106 : vector<8x128xf32>
    %109 = arith.divf %107, %108 : vector<8x128xf32>
    %110 = arith.mulf %101, %82 : vector<8x128xf32>
    %111 = arith.mulf %95, %103 : vector<8x128xf32>
    %112 = arith.addf %110, %111 : vector<8x128xf32>
    %113 = math.tanh %112 : vector<8x128xf32>
    %114 = arith.mulf %109, %113 : vector<8x128xf32>
    %c8_55 = arith.constant 8 : index
    %c0_56 = arith.constant 0 : index
    %115 = vector.load %arg15[%c8_55, %c0_56] : memref<64x128xf32, #tpu.memory_space<vmem>>, vector<8x128xf32>
    tpu.vector_store %arg15[%c8_55, %c0_56], %114 {strides = array<i32>} : memref<64x128xf32, #tpu.memory_space<vmem>>, vector<8x128xf32>,
    %116 = arith.truncf %114 : vector<8x128xf32> to vector<8x128xbf16>
    %c16_57 = arith.constant 16 : index
    %c0_58 = arith.constant 0 : index
    %117 = vector.load %arg14[%c16_57, %c0_58] : memref<64x512xf32, #tpu.memory_space<vmem>>, vector<8x512xf32>
    %cst_59 = arith.constant dense<0.000000e+00> : vector<8x512xf32>
    %118 = tpu.matmul %116, %24, %cst_59 {dimension_numbers = #tpu.dot_dimension_numbers<[1], [0], [0], [1], [0, 0, 1, 1], [], []>} : vector<8x128xbf16>, vector<128x512xbf16>, vector<8x512xf32> -> vector<8x512xf32>
    %119 = arith.addf %117, %118 : vector<8x512xf32>
    %120 = vector.extract_strided_slice %119 {offsets = [0, 0], sizes = [8, 128], strides = [1, 1]} : vector<8x512xf32> to vector<8x128xf32>
    %121 = arith.negf %120 : vector<8x128xf32>
    %122 = math.exp %121 : vector<8x128xf32>
    %cst_60 = arith.constant 1.000000e+00 : f32
    %123 = vector.broadcast %cst_60 : f32 to vector<8x128xf32>
    %124 = arith.addf %123, %122 : vector<8x128xf32>
    %125 = arith.divf %123, %124 : vector<8x128xf32>
    %126 = vector.extract_strided_slice %119 {offsets = [0, 128], sizes = [8, 128], strides = [1, 1]} : vector<8x512xf32> to vector<8x128xf32>
    %127 = arith.negf %126 : vector<8x128xf32>
    %128 = math.exp %127 : vector<8x128xf32>
    %cst_61 = arith.constant 1.000000e+00 : f32
    %129 = vector.broadcast %cst_61 : f32 to vector<8x128xf32>
    %130 = arith.addf %129, %128 : vector<8x128xf32>
    %131 = arith.divf %129, %130 : vector<8x128xf32>
    %132 = vector.extract_strided_slice %119 {offsets = [0, 256], sizes = [8, 128], strides = [1, 1]} : vector<8x512xf32> to vector<8x128xf32>
    %133 = math.tanh %132 : vector<8x128xf32>
    %134 = vector.extract_strided_slice %119 {offsets = [0, 384], sizes = [8, 128], strides = [1, 1]} : vector<8x512xf32> to vector<8x128xf32>
    %135 = arith.negf %134 : vector<8x128xf32>
    %136 = math.exp %135 : vector<8x128xf32>
    %cst_62 = arith.constant 1.000000e+00 : f32
    %137 = vector.broadcast %cst_62 : f32 to vector<8x128xf32>
    %138 = arith.addf %137, %136 : vector<8x128xf32>
    %139 = arith.divf %137, %138 : vector<8x128xf32>
    %140 = arith.mulf %131, %112 : vector<8x128xf32>
    %141 = arith.mulf %125, %133 : vector<8x128xf32>
    %142 = arith.addf %140, %141 : vector<8x128xf32>
    %143 = math.tanh %142 : vector<8x128xf32>
    %144 = arith.mulf %139, %143 : vector<8x128xf32>
    %c16_63 = arith.constant 16 : index
    %c0_64 = arith.constant 0 : index
    %145 = vector.load %arg15[%c16_63, %c0_64] : memref<64x128xf32, #tpu.memory_space<vmem>>, vector<8x128xf32>
    tpu.vector_store %arg15[%c16_63, %c0_64], %144 {strides = array<i32>} : memref<64x128xf32, #tpu.memory_space<vmem>>, vector<8x128xf32>,
    %146 = arith.truncf %144 : vector<8x128xf32> to vector<8x128xbf16>
    %c24_65 = arith.constant 24 : index
    %c0_66 = arith.constant 0 : index
    %147 = vector.load %arg14[%c24_65, %c0_66] : memref<64x512xf32, #tpu.memory_space<vmem>>, vector<8x512xf32>
    %cst_67 = arith.constant dense<0.000000e+00> : vector<8x512xf32>
    %148 = tpu.matmul %146, %24, %cst_67 {dimension_numbers = #tpu.dot_dimension_numbers<[1], [0], [0], [1], [0, 0, 1, 1], [], []>} : vector<8x128xbf16>, vector<128x512xbf16>, vector<8x512xf32> -> vector<8x512xf32>
    %149 = arith.addf %147, %148 : vector<8x512xf32>
    %150 = vector.extract_strided_slice %149 {offsets = [0, 0], sizes = [8, 128], strides = [1, 1]} : vector<8x512xf32> to vector<8x128xf32>
    %151 = arith.negf %150 : vector<8x128xf32>
    %152 = math.exp %151 : vector<8x128xf32>
    %cst_68 = arith.constant 1.000000e+00 : f32
    %153 = vector.broadcast %cst_68 : f32 to vector<8x128xf32>
    %154 = arith.addf %153, %152 : vector<8x128xf32>
    %155 = arith.divf %153, %154 : vector<8x128xf32>
    %156 = vector.extract_strided_slice %149 {offsets = [0, 128], sizes = [8, 128], strides = [1, 1]} : vector<8x512xf32> to vector<8x128xf32>
    %157 = arith.negf %156 : vector<8x128xf32>
    %158 = math.exp %157 : vector<8x128xf32>
    %cst_69 = arith.constant 1.000000e+00 : f32
    %159 = vector.broadcast %cst_69 : f32 to vector<8x128xf32>
    %160 = arith.addf %159, %158 : vector<8x128xf32>
    %161 = arith.divf %159, %160 : vector<8x128xf32>
    %162 = vector.extract_strided_slice %149 {offsets = [0, 256], sizes = [8, 128], strides = [1, 1]} : vector<8x512xf32> to vector<8x128xf32>
    %163 = math.tanh %162 : vector<8x128xf32>
    %164 = vector.extract_strided_slice %149 {offsets = [0, 384], sizes = [8, 128], strides = [1, 1]} : vector<8x512xf32> to vector<8x128xf32>
    %165 = arith.negf %164 : vector<8x128xf32>
    %166 = math.exp %165 : vector<8x128xf32>
    %cst_70 = arith.constant 1.000000e+00 : f32
    %167 = vector.broadcast %cst_70 : f32 to vector<8x128xf32>
    %168 = arith.addf %167, %166 : vector<8x128xf32>
    %169 = arith.divf %167, %168 : vector<8x128xf32>
    %170 = arith.mulf %161, %142 : vector<8x128xf32>
    %171 = arith.mulf %155, %163 : vector<8x128xf32>
    %172 = arith.addf %170, %171 : vector<8x128xf32>
    %173 = math.tanh %172 : vector<8x128xf32>
    %174 = arith.mulf %169, %173 : vector<8x128xf32>
    %c24_71 = arith.constant 24 : index
    %c0_72 = arith.constant 0 : index
    %175 = vector.load %arg15[%c24_71, %c0_72] : memref<64x128xf32, #tpu.memory_space<vmem>>, vector<8x128xf32>
    tpu.vector_store %arg15[%c24_71, %c0_72], %174 {strides = array<i32>} : memref<64x128xf32, #tpu.memory_space<vmem>>, vector<8x128xf32>,
    %176 = arith.truncf %174 : vector<8x128xf32> to vector<8x128xbf16>
    %c32_73 = arith.constant 32 : index
    %c0_74 = arith.constant 0 : index
    %177 = vector.load %arg14[%c32_73, %c0_74] : memref<64x512xf32, #tpu.memory_space<vmem>>, vector<8x512xf32>
    %cst_75 = arith.constant dense<0.000000e+00> : vector<8x512xf32>
    %178 = tpu.matmul %176, %24, %cst_75 {dimension_numbers = #tpu.dot_dimension_numbers<[1], [0], [0], [1], [0, 0, 1, 1], [], []>} : vector<8x128xbf16>, vector<128x512xbf16>, vector<8x512xf32> -> vector<8x512xf32>
    %179 = arith.addf %177, %178 : vector<8x512xf32>
    %180 = vector.extract_strided_slice %179 {offsets = [0, 0], sizes = [8, 128], strides = [1, 1]} : vector<8x512xf32> to vector<8x128xf32>
    %181 = arith.negf %180 : vector<8x128xf32>
    %182 = math.exp %181 : vector<8x128xf32>
    %cst_76 = arith.constant 1.000000e+00 : f32
    %183 = vector.broadcast %cst_76 : f32 to vector<8x128xf32>
    %184 = arith.addf %183, %182 : vector<8x128xf32>
    %185 = arith.divf %183, %184 : vector<8x128xf32>
    %186 = vector.extract_strided_slice %179 {offsets = [0, 128], sizes = [8, 128], strides = [1, 1]} : vector<8x512xf32> to vector<8x128xf32>
    %187 = arith.negf %186 : vector<8x128xf32>
    %188 = math.exp %187 : vector<8x128xf32>
    %cst_77 = arith.constant 1.000000e+00 : f32
    %189 = vector.broadcast %cst_77 : f32 to vector<8x128xf32>
    %190 = arith.addf %189, %188 : vector<8x128xf32>
    %191 = arith.divf %189, %190 : vector<8x128xf32>
    %192 = vector.extract_strided_slice %179 {offsets = [0, 256], sizes = [8, 128], strides = [1, 1]} : vector<8x512xf32> to vector<8x128xf32>
    %193 = math.tanh %192 : vector<8x128xf32>
    %194 = vector.extract_strided_slice %179 {offsets = [0, 384], sizes = [8, 128], strides = [1, 1]} : vector<8x512xf32> to vector<8x128xf32>
    %195 = arith.negf %194 : vector<8x128xf32>
    %196 = math.exp %195 : vector<8x128xf32>
    %cst_78 = arith.constant 1.000000e+00 : f32
    %197 = vector.broadcast %cst_78 : f32 to vector<8x128xf32>
    %198 = arith.addf %197, %196 : vector<8x128xf32>
    %199 = arith.divf %197, %198 : vector<8x128xf32>
    %200 = arith.mulf %191, %172 : vector<8x128xf32>
    %201 = arith.mulf %185, %193 : vector<8x128xf32>
    %202 = arith.addf %200, %201 : vector<8x128xf32>
    %203 = math.tanh %202 : vector<8x128xf32>
    %204 = arith.mulf %199, %203 : vector<8x128xf32>
    %c32_79 = arith.constant 32 : index
    %c0_80 = arith.constant 0 : index
    %205 = vector.load %arg15[%c32_79, %c0_80] : memref<64x128xf32, #tpu.memory_space<vmem>>, vector<8x128xf32>
    tpu.vector_store %arg15[%c32_79, %c0_80], %204 {strides = array<i32>} : memref<64x128xf32, #tpu.memory_space<vmem>>, vector<8x128xf32>,
    %206 = arith.truncf %204 : vector<8x128xf32> to vector<8x128xbf16>
    %c40_81 = arith.constant 40 : index
    %c0_82 = arith.constant 0 : index
    %207 = vector.load %arg14[%c40_81, %c0_82] : memref<64x512xf32, #tpu.memory_space<vmem>>, vector<8x512xf32>
    %cst_83 = arith.constant dense<0.000000e+00> : vector<8x512xf32>
    %208 = tpu.matmul %206, %24, %cst_83 {dimension_numbers = #tpu.dot_dimension_numbers<[1], [0], [0], [1], [0, 0, 1, 1], [], []>} : vector<8x128xbf16>, vector<128x512xbf16>, vector<8x512xf32> -> vector<8x512xf32>
    %209 = arith.addf %207, %208 : vector<8x512xf32>
    %210 = vector.extract_strided_slice %209 {offsets = [0, 0], sizes = [8, 128], strides = [1, 1]} : vector<8x512xf32> to vector<8x128xf32>
    %211 = arith.negf %210 : vector<8x128xf32>
    %212 = math.exp %211 : vector<8x128xf32>
    %cst_84 = arith.constant 1.000000e+00 : f32
    %213 = vector.broadcast %cst_84 : f32 to vector<8x128xf32>
    %214 = arith.addf %213, %212 : vector<8x128xf32>
    %215 = arith.divf %213, %214 : vector<8x128xf32>
    %216 = vector.extract_strided_slice %209 {offsets = [0, 128], sizes = [8, 128], strides = [1, 1]} : vector<8x512xf32> to vector<8x128xf32>
    %217 = arith.negf %216 : vector<8x128xf32>
    %218 = math.exp %217 : vector<8x128xf32>
    %cst_85 = arith.constant 1.000000e+00 : f32
    %219 = vector.broadcast %cst_85 : f32 to vector<8x128xf32>
    %220 = arith.addf %219, %218 : vector<8x128xf32>
    %221 = arith.divf %219, %220 : vector<8x128xf32>
    %222 = vector.extract_strided_slice %209 {offsets = [0, 256], sizes = [8, 128], strides = [1, 1]} : vector<8x512xf32> to vector<8x128xf32>
    %223 = math.tanh %222 : vector<8x128xf32>
    %224 = vector.extract_strided_slice %209 {offsets = [0, 384], sizes = [8, 128], strides = [1, 1]} : vector<8x512xf32> to vector<8x128xf32>
    %225 = arith.negf %224 : vector<8x128xf32>
    %226 = math.exp %225 : vector<8x128xf32>
    %cst_86 = arith.constant 1.000000e+00 : f32
    %227 = vector.broadcast %cst_86 : f32 to vector<8x128xf32>
    %228 = arith.addf %227, %226 : vector<8x128xf32>
    %229 = arith.divf %227, %228 : vector<8x128xf32>
    %230 = arith.mulf %221, %202 : vector<8x128xf32>
    %231 = arith.mulf %215, %223 : vector<8x128xf32>
    %232 = arith.addf %230, %231 : vector<8x128xf32>
    %233 = math.tanh %232 : vector<8x128xf32>
    %234 = arith.mulf %229, %233 : vector<8x128xf32>
    %c40_87 = arith.constant 40 : index
    %c0_88 = arith.constant 0 : index
    %235 = vector.load %arg15[%c40_87, %c0_88] : memref<64x128xf32, #tpu.memory_space<vmem>>, vector<8x128xf32>
    tpu.vector_store %arg15[%c40_87, %c0_88], %234 {strides = array<i32>} : memref<64x128xf32, #tpu.memory_space<vmem>>, vector<8x128xf32>,
    %236 = arith.truncf %234 : vector<8x128xf32> to vector<8x128xbf16>
    %c48_89 = arith.constant 48 : index
    %c0_90 = arith.constant 0 : index
    %237 = vector.load %arg14[%c48_89, %c0_90] : memref<64x512xf32, #tpu.memory_space<vmem>>, vector<8x512xf32>
    %cst_91 = arith.constant dense<0.000000e+00> : vector<8x512xf32>
    %238 = tpu.matmul %236, %24, %cst_91 {dimension_numbers = #tpu.dot_dimension_numbers<[1], [0], [0], [1], [0, 0, 1, 1], [], []>} : vector<8x128xbf16>, vector<128x512xbf16>, vector<8x512xf32> -> vector<8x512xf32>
    %239 = arith.addf %237, %238 : vector<8x512xf32>
    %240 = vector.extract_strided_slice %239 {offsets = [0, 0], sizes = [8, 128], strides = [1, 1]} : vector<8x512xf32> to vector<8x128xf32>
    %241 = arith.negf %240 : vector<8x128xf32>
    %242 = math.exp %241 : vector<8x128xf32>
    %cst_92 = arith.constant 1.000000e+00 : f32
    %243 = vector.broadcast %cst_92 : f32 to vector<8x128xf32>
    %244 = arith.addf %243, %242 : vector<8x128xf32>
    %245 = arith.divf %243, %244 : vector<8x128xf32>
    %246 = vector.extract_strided_slice %239 {offsets = [0, 128], sizes = [8, 128], strides = [1, 1]} : vector<8x512xf32> to vector<8x128xf32>
    %247 = arith.negf %246 : vector<8x128xf32>
    %248 = math.exp %247 : vector<8x128xf32>
    %cst_93 = arith.constant 1.000000e+00 : f32
    %249 = vector.broadcast %cst_93 : f32 to vector<8x128xf32>
    %250 = arith.addf %249, %248 : vector<8x128xf32>
    %251 = arith.divf %249, %250 : vector<8x128xf32>
    %252 = vector.extract_strided_slice %239 {offsets = [0, 256], sizes = [8, 128], strides = [1, 1]} : vector<8x512xf32> to vector<8x128xf32>
    %253 = math.tanh %252 : vector<8x128xf32>
    %254 = vector.extract_strided_slice %239 {offsets = [0, 384], sizes = [8, 128], strides = [1, 1]} : vector<8x512xf32> to vector<8x128xf32>
    %255 = arith.negf %254 : vector<8x128xf32>
    %256 = math.exp %255 : vector<8x128xf32>
    %cst_94 = arith.constant 1.000000e+00 : f32
    %257 = vector.broadcast %cst_94 : f32 to vector<8x128xf32>
    %258 = arith.addf %257, %256 : vector<8x128xf32>
    %259 = arith.divf %257, %258 : vector<8x128xf32>
    %260 = arith.mulf %251, %232 : vector<8x128xf32>
    %261 = arith.mulf %245, %253 : vector<8x128xf32>
    %262 = arith.addf %260, %261 : vector<8x128xf32>
    %263 = math.tanh %262 : vector<8x128xf32>
    %264 = arith.mulf %259, %263 : vector<8x128xf32>
    %c48_95 = arith.constant 48 : index
    %c0_96 = arith.constant 0 : index
    %265 = vector.load %arg15[%c48_95, %c0_96] : memref<64x128xf32, #tpu.memory_space<vmem>>, vector<8x128xf32>
    tpu.vector_store %arg15[%c48_95, %c0_96], %264 {strides = array<i32>} : memref<64x128xf32, #tpu.memory_space<vmem>>, vector<8x128xf32>,
    %266 = arith.truncf %264 : vector<8x128xf32> to vector<8x128xbf16>
    %c56_97 = arith.constant 56 : index
    %c0_98 = arith.constant 0 : index
    %267 = vector.load %arg14[%c56_97, %c0_98] : memref<64x512xf32, #tpu.memory_space<vmem>>, vector<8x512xf32>
    %cst_99 = arith.constant dense<0.000000e+00> : vector<8x512xf32>
    %268 = tpu.matmul %266, %24, %cst_99 {dimension_numbers = #tpu.dot_dimension_numbers<[1], [0], [0], [1], [0, 0, 1, 1], [], []>} : vector<8x128xbf16>, vector<128x512xbf16>, vector<8x512xf32> -> vector<8x512xf32>
    %269 = arith.addf %267, %268 : vector<8x512xf32>
    %270 = vector.extract_strided_slice %269 {offsets = [0, 0], sizes = [8, 128], strides = [1, 1]} : vector<8x512xf32> to vector<8x128xf32>
    %271 = arith.negf %270 : vector<8x128xf32>
    %272 = math.exp %271 : vector<8x128xf32>
    %cst_100 = arith.constant 1.000000e+00 : f32
    %273 = vector.broadcast %cst_100 : f32 to vector<8x128xf32>
    %274 = arith.addf %273, %272 : vector<8x128xf32>
    %275 = arith.divf %273, %274 : vector<8x128xf32>
    %276 = vector.extract_strided_slice %269 {offsets = [0, 128], sizes = [8, 128], strides = [1, 1]} : vector<8x512xf32> to vector<8x128xf32>
    %277 = arith.negf %276 : vector<8x128xf32>
    %278 = math.exp %277 : vector<8x128xf32>
    %cst_101 = arith.constant 1.000000e+00 : f32
    %279 = vector.broadcast %cst_101 : f32 to vector<8x128xf32>
    %280 = arith.addf %279, %278 : vector<8x128xf32>
    %281 = arith.divf %279, %280 : vector<8x128xf32>
    %282 = vector.extract_strided_slice %269 {offsets = [0, 256], sizes = [8, 128], strides = [1, 1]} : vector<8x512xf32> to vector<8x128xf32>
    %283 = math.tanh %282 : vector<8x128xf32>
    %284 = vector.extract_strided_slice %269 {offsets = [0, 384], sizes = [8, 128], strides = [1, 1]} : vector<8x512xf32> to vector<8x128xf32>
    %285 = arith.negf %284 : vector<8x128xf32>
    %286 = math.exp %285 : vector<8x128xf32>
    %cst_102 = arith.constant 1.000000e+00 : f32
    %287 = vector.broadcast %cst_102 : f32 to vector<8x128xf32>
    %288 = arith.addf %287, %286 : vector<8x128xf32>
    %289 = arith.divf %287, %288 : vector<8x128xf32>
    %290 = arith.mulf %281, %262 : vector<8x128xf32>
    %291 = arith.mulf %275, %283 : vector<8x128xf32>
    %292 = arith.addf %290, %291 : vector<8x128xf32>
    %293 = math.tanh %292 : vector<8x128xf32>
    %294 = arith.mulf %289, %293 : vector<8x128xf32>
    %c56_103 = arith.constant 56 : index
    %c0_104 = arith.constant 0 : index
    %295 = vector.load %arg15[%c56_103, %c0_104] : memref<64x128xf32, #tpu.memory_space<vmem>>, vector<8x128xf32>
    tpu.vector_store %arg15[%c56_103, %c0_104], %294 {strides = array<i32>} : memref<64x128xf32, #tpu.memory_space<vmem>>, vector<8x128xf32>,
    %296 = arith.addf %22, %294 : vector<8x128xf32>
    %c0_105 = arith.constant 0 : index
    %c0_106 = arith.constant 0 : index
    %297 = vector.load %arg15[%c0_105, %c0_106] : memref<64x128xf32, #tpu.memory_space<vmem>>, vector<8x128xf32>
    %c56_107 = arith.constant 56 : index
    %c0_108 = arith.constant 0 : index
    %298 = vector.load %arg15[%c56_107, %c0_108] : memref<64x128xf32, #tpu.memory_space<vmem>>, vector<8x128xf32>
    %299 = arith.select %21, %297, %298 : vector<8x128xi1>, vector<8x128xf32>
    %c0_109 = arith.constant 0 : index
    %c0_110 = arith.constant 0 : index
    %300 = vector.load %arg15[%c0_109, %c0_110] : memref<64x128xf32, #tpu.memory_space<vmem>>, vector<8x128xf32>
    tpu.vector_store %arg15[%c0_109, %c0_110], %299 {strides = array<i32>} : memref<64x128xf32, #tpu.memory_space<vmem>>, vector<8x128xf32>,
    %301 = arith.select %21, %298, %297 : vector<8x128xi1>, vector<8x128xf32>
    %c56_111 = arith.constant 56 : index
    %c0_112 = arith.constant 0 : index
    %302 = vector.load %arg15[%c56_111, %c0_112] : memref<64x128xf32, #tpu.memory_space<vmem>>, vector<8x128xf32>
    tpu.vector_store %arg15[%c56_111, %c0_112], %301 {strides = array<i32>} : memref<64x128xf32, #tpu.memory_space<vmem>>, vector<8x128xf32>,
    %c8_113 = arith.constant 8 : index
    %c0_114 = arith.constant 0 : index
    %303 = vector.load %arg15[%c8_113, %c0_114] : memref<64x128xf32, #tpu.memory_space<vmem>>, vector<8x128xf32>
    %c48_115 = arith.constant 48 : index
    %c0_116 = arith.constant 0 : index
    %304 = vector.load %arg15[%c48_115, %c0_116] : memref<64x128xf32, #tpu.memory_space<vmem>>, vector<8x128xf32>
    %305 = arith.select %21, %303, %304 : vector<8x128xi1>, vector<8x128xf32>
    %c8_117 = arith.constant 8 : index
    %c0_118 = arith.constant 0 : index
    %306 = vector.load %arg15[%c8_117, %c0_118] : memref<64x128xf32, #tpu.memory_space<vmem>>, vector<8x128xf32>
    tpu.vector_store %arg15[%c8_117, %c0_118], %305 {strides = array<i32>} : memref<64x128xf32, #tpu.memory_space<vmem>>, vector<8x128xf32>,
    %307 = arith.select %21, %304, %303 : vector<8x128xi1>, vector<8x128xf32>
    %c48_119 = arith.constant 48 : index
    %c0_120 = arith.constant 0 : index
    %308 = vector.load %arg15[%c48_119, %c0_120] : memref<64x128xf32, #tpu.memory_space<vmem>>, vector<8x128xf32>
    tpu.vector_store %arg15[%c48_119, %c0_120], %307 {strides = array<i32>} : memref<64x128xf32, #tpu.memory_space<vmem>>, vector<8x128xf32>,
    %c16_121 = arith.constant 16 : index
    %c0_122 = arith.constant 0 : index
    %309 = vector.load %arg15[%c16_121, %c0_122] : memref<64x128xf32, #tpu.memory_space<vmem>>, vector<8x128xf32>
    %c40_123 = arith.constant 40 : index
    %c0_124 = arith.constant 0 : index
    %310 = vector.load %arg15[%c40_123, %c0_124] : memref<64x128xf32, #tpu.memory_space<vmem>>, vector<8x128xf32>
    %311 = arith.select %21, %309, %310 : vector<8x128xi1>, vector<8x128xf32>
    %c16_125 = arith.constant 16 : index
    %c0_126 = arith.constant 0 : index
    %312 = vector.load %arg15[%c16_125, %c0_126] : memref<64x128xf32, #tpu.memory_space<vmem>>, vector<8x128xf32>
    tpu.vector_store %arg15[%c16_125, %c0_126], %311 {strides = array<i32>} : memref<64x128xf32, #tpu.memory_space<vmem>>, vector<8x128xf32>,
    %313 = arith.select %21, %310, %309 : vector<8x128xi1>, vector<8x128xf32>
    %c40_127 = arith.constant 40 : index
    %c0_128 = arith.constant 0 : index
    %314 = vector.load %arg15[%c40_127, %c0_128] : memref<64x128xf32, #tpu.memory_space<vmem>>, vector<8x128xf32>
    tpu.vector_store %arg15[%c40_127, %c0_128], %313 {strides = array<i32>} : memref<64x128xf32, #tpu.memory_space<vmem>>, vector<8x128xf32>,
    %c24_129 = arith.constant 24 : index
    %c0_130 = arith.constant 0 : index
    %315 = vector.load %arg15[%c24_129, %c0_130] : memref<64x128xf32, #tpu.memory_space<vmem>>, vector<8x128xf32>
    %c32_131 = arith.constant 32 : index
    %c0_132 = arith.constant 0 : index
    %316 = vector.load %arg15[%c32_131, %c0_132] : memref<64x128xf32, #tpu.memory_space<vmem>>, vector<8x128xf32>
    %317 = arith.select %21, %315, %316 : vector<8x128xi1>, vector<8x128xf32>
    %c24_133 = arith.constant 24 : index
    %c0_134 = arith.constant 0 : index
    %318 = vector.load %arg15[%c24_133, %c0_134] : memref<64x128xf32, #tpu.memory_space<vmem>>, vector<8x128xf32>
    tpu.vector_store %arg15[%c24_133, %c0_134], %317 {strides = array<i32>} : memref<64x128xf32, #tpu.memory_space<vmem>>, vector<8x128xf32>,
    %319 = arith.select %21, %316, %315 : vector<8x128xi1>, vector<8x128xf32>
    %c32_135 = arith.constant 32 : index
    %c0_136 = arith.constant 0 : index
    %320 = vector.load %arg15[%c32_135, %c0_136] : memref<64x128xf32, #tpu.memory_space<vmem>>, vector<8x128xf32>
    tpu.vector_store %arg15[%c32_135, %c0_136], %319 {strides = array<i32>} : memref<64x128xf32, #tpu.memory_space<vmem>>, vector<8x128xf32>,
    %c0_137 = arith.constant 0 : index
    %c0_138 = arith.constant 0 : index
    %321 = vector.load %arg4[%c0_137, %c0_138] : memref<128x512xbf16, #tpu.memory_space<vmem>>, vector<128x512xbf16>
    %c0_139 = arith.constant 0 : index
    %c0_140 = arith.constant 0 : index
    %322 = vector.load %arg5[%c0_139, %c0_140] : memref<128x512xbf16, #tpu.memory_space<vmem>>, vector<128x512xbf16>
    %c0_141 = arith.constant 0 : index
    %c0_142 = arith.constant 0 : index
    %323 = vector.load %arg6[%c0_141, %c0_142] : memref<1x512xf32, #tpu.memory_space<vmem>>, vector<1x512xf32>
    %c0_143 = arith.constant 0 : index
    %c0_144 = arith.constant 0 : index
    %324 = vector.load %arg15[%c0_143, %c0_144] : memref<64x128xf32, #tpu.memory_space<vmem>>, vector<64x128xf32>
    %325 = arith.truncf %324 : vector<64x128xf32> to vector<64x128xbf16>
    %cst_145 = arith.constant dense<0.000000e+00> : vector<64x512xf32>
    %326 = tpu.matmul %325, %321, %cst_145 {dimension_numbers = #tpu.dot_dimension_numbers<[1], [0], [0], [1], [0, 0, 1, 1], [], []>} : vector<64x128xbf16>, vector<128x512xbf16>, vector<64x512xf32> -> vector<64x512xf32>
    %327 = vector.broadcast %323 : vector<1x512xf32> to vector<64x512xf32>
    %328 = arith.addf %326, %327 : vector<64x512xf32>
    %c0_146 = arith.constant 0 : index
    %c0_147 = arith.constant 0 : index
    %329 = vector.load %arg14[%c0_146, %c0_147] : memref<64x512xf32, #tpu.memory_space<vmem>>, vector<64x512xf32>
    tpu.vector_store %arg14[%c0_146, %c0_147], %328 {strides = array<i32>} : memref<64x512xf32, #tpu.memory_space<vmem>>, vector<64x512xf32>,
    %c0_148 = arith.constant 0 : index
    %c0_149 = arith.constant 0 : index
    %330 = vector.load %arg14[%c0_148, %c0_149] : memref<64x512xf32, #tpu.memory_space<vmem>>, vector<8x512xf32>
    %c56_150 = arith.constant 56 : index
    %c0_151 = arith.constant 0 : index
    %331 = vector.load %arg14[%c56_150, %c0_151] : memref<64x512xf32, #tpu.memory_space<vmem>>, vector<8x512xf32>
    %332 = arith.select %18, %330, %331 : vector<8x512xi1>, vector<8x512xf32>
    %c0_152 = arith.constant 0 : index
    %c0_153 = arith.constant 0 : index
    %333 = vector.load %arg14[%c0_152, %c0_153] : memref<64x512xf32, #tpu.memory_space<vmem>>, vector<8x512xf32>
    tpu.vector_store %arg14[%c0_152, %c0_153], %332 {strides = array<i32>} : memref<64x512xf32, #tpu.memory_space<vmem>>, vector<8x512xf32>,
    %334 = arith.select %18, %331, %330 : vector<8x512xi1>, vector<8x512xf32>
    %c56_154 = arith.constant 56 : index
    %c0_155 = arith.constant 0 : index
    %335 = vector.load %arg14[%c56_154, %c0_155] : memref<64x512xf32, #tpu.memory_space<vmem>>, vector<8x512xf32>
    tpu.vector_store %arg14[%c56_154, %c0_155], %334 {strides = array<i32>} : memref<64x512xf32, #tpu.memory_space<vmem>>, vector<8x512xf32>,
    %c8_156 = arith.constant 8 : index
    %c0_157 = arith.constant 0 : index
    %336 = vector.load %arg14[%c8_156, %c0_157] : memref<64x512xf32, #tpu.memory_space<vmem>>, vector<8x512xf32>
    %c48_158 = arith.constant 48 : index
    %c0_159 = arith.constant 0 : index
    %337 = vector.load %arg14[%c48_158, %c0_159] : memref<64x512xf32, #tpu.memory_space<vmem>>, vector<8x512xf32>
    %338 = arith.select %18, %336, %337 : vector<8x512xi1>, vector<8x512xf32>
    %c8_160 = arith.constant 8 : index
    %c0_161 = arith.constant 0 : index
    %339 = vector.load %arg14[%c8_160, %c0_161] : memref<64x512xf32, #tpu.memory_space<vmem>>, vector<8x512xf32>
    tpu.vector_store %arg14[%c8_160, %c0_161], %338 {strides = array<i32>} : memref<64x512xf32, #tpu.memory_space<vmem>>, vector<8x512xf32>,
    %340 = arith.select %18, %337, %336 : vector<8x512xi1>, vector<8x512xf32>
    %c48_162 = arith.constant 48 : index
    %c0_163 = arith.constant 0 : index
    %341 = vector.load %arg14[%c48_162, %c0_163] : memref<64x512xf32, #tpu.memory_space<vmem>>, vector<8x512xf32>
    tpu.vector_store %arg14[%c48_162, %c0_163], %340 {strides = array<i32>} : memref<64x512xf32, #tpu.memory_space<vmem>>, vector<8x512xf32>,
    %c16_164 = arith.constant 16 : index
    %c0_165 = arith.constant 0 : index
    %342 = vector.load %arg14[%c16_164, %c0_165] : memref<64x512xf32, #tpu.memory_space<vmem>>, vector<8x512xf32>
    %c40_166 = arith.constant 40 : index
    %c0_167 = arith.constant 0 : index
    %343 = vector.load %arg14[%c40_166, %c0_167] : memref<64x512xf32, #tpu.memory_space<vmem>>, vector<8x512xf32>
    %344 = arith.select %18, %342, %343 : vector<8x512xi1>, vector<8x512xf32>
    %c16_168 = arith.constant 16 : index
    %c0_169 = arith.constant 0 : index
    %345 = vector.load %arg14[%c16_168, %c0_169] : memref<64x512xf32, #tpu.memory_space<vmem>>, vector<8x512xf32>
    tpu.vector_store %arg14[%c16_168, %c0_169], %344 {strides = array<i32>} : memref<64x512xf32, #tpu.memory_space<vmem>>, vector<8x512xf32>,
    %346 = arith.select %18, %343, %342 : vector<8x512xi1>, vector<8x512xf32>
    %c40_170 = arith.constant 40 : index
    %c0_171 = arith.constant 0 : index
    %347 = vector.load %arg14[%c40_170, %c0_171] : memref<64x512xf32, #tpu.memory_space<vmem>>, vector<8x512xf32>
    tpu.vector_store %arg14[%c40_170, %c0_171], %346 {strides = array<i32>} : memref<64x512xf32, #tpu.memory_space<vmem>>, vector<8x512xf32>,
    %c24_172 = arith.constant 24 : index
    %c0_173 = arith.constant 0 : index
    %348 = vector.load %arg14[%c24_172, %c0_173] : memref<64x512xf32, #tpu.memory_space<vmem>>, vector<8x512xf32>
    %c32_174 = arith.constant 32 : index
    %c0_175 = arith.constant 0 : index
    %349 = vector.load %arg14[%c32_174, %c0_175] : memref<64x512xf32, #tpu.memory_space<vmem>>, vector<8x512xf32>
    %350 = arith.select %18, %348, %349 : vector<8x512xi1>, vector<8x512xf32>
    %c24_176 = arith.constant 24 : index
    %c0_177 = arith.constant 0 : index
    %351 = vector.load %arg14[%c24_176, %c0_177] : memref<64x512xf32, #tpu.memory_space<vmem>>, vector<8x512xf32>
    tpu.vector_store %arg14[%c24_176, %c0_177], %350 {strides = array<i32>} : memref<64x512xf32, #tpu.memory_space<vmem>>, vector<8x512xf32>,
    %352 = arith.select %18, %349, %348 : vector<8x512xi1>, vector<8x512xf32>
    %c32_178 = arith.constant 32 : index
    %c0_179 = arith.constant 0 : index
    %353 = vector.load %arg14[%c32_178, %c0_179] : memref<64x512xf32, #tpu.memory_space<vmem>>, vector<8x512xf32>
    tpu.vector_store %arg14[%c32_178, %c0_179], %352 {strides = array<i32>} : memref<64x512xf32, #tpu.memory_space<vmem>>, vector<8x512xf32>,
    %cst_180 = arith.constant 0.000000e+00 : bf16
    %354 = vector.broadcast %cst_180 : bf16 to vector<8x128xbf16>
    %cst_181 = arith.constant 0.000000e+00 : f32
    %355 = vector.broadcast %cst_181 : f32 to vector<8x128xf32>
    %c0_182 = arith.constant 0 : index
    %c0_183 = arith.constant 0 : index
    %356 = vector.load %arg14[%c0_182, %c0_183] : memref<64x512xf32, #tpu.memory_space<vmem>>, vector<8x512xf32>
    %cst_184 = arith.constant dense<0.000000e+00> : vector<8x512xf32>
    %357 = tpu.matmul %354, %322, %cst_184 {dimension_numbers = #tpu.dot_dimension_numbers<[1], [0], [0], [1], [0, 0, 1, 1], [], []>} : vector<8x128xbf16>, vector<128x512xbf16>, vector<8x512xf32> -> vector<8x512xf32>
    %358 = arith.addf %356, %357 : vector<8x512xf32>
    %359 = vector.extract_strided_slice %358 {offsets = [0, 0], sizes = [8, 128], strides = [1, 1]} : vector<8x512xf32> to vector<8x128xf32>
    %360 = arith.negf %359 : vector<8x128xf32>
    %361 = math.exp %360 : vector<8x128xf32>
    %cst_185 = arith.constant 1.000000e+00 : f32
    %362 = vector.broadcast %cst_185 : f32 to vector<8x128xf32>
    %363 = arith.addf %362, %361 : vector<8x128xf32>
    %364 = arith.divf %362, %363 : vector<8x128xf32>
    %365 = vector.extract_strided_slice %358 {offsets = [0, 128], sizes = [8, 128], strides = [1, 1]} : vector<8x512xf32> to vector<8x128xf32>
    %366 = arith.negf %365 : vector<8x128xf32>
    %367 = math.exp %366 : vector<8x128xf32>
    %cst_186 = arith.constant 1.000000e+00 : f32
    %368 = vector.broadcast %cst_186 : f32 to vector<8x128xf32>
    %369 = arith.addf %368, %367 : vector<8x128xf32>
    %370 = arith.divf %368, %369 : vector<8x128xf32>
    %371 = vector.extract_strided_slice %358 {offsets = [0, 256], sizes = [8, 128], strides = [1, 1]} : vector<8x512xf32> to vector<8x128xf32>
    %372 = math.tanh %371 : vector<8x128xf32>
    %373 = vector.extract_strided_slice %358 {offsets = [0, 384], sizes = [8, 128], strides = [1, 1]} : vector<8x512xf32> to vector<8x128xf32>
    %374 = arith.negf %373 : vector<8x128xf32>
    %375 = math.exp %374 : vector<8x128xf32>
    %cst_187 = arith.constant 1.000000e+00 : f32
    %376 = vector.broadcast %cst_187 : f32 to vector<8x128xf32>
    %377 = arith.addf %376, %375 : vector<8x128xf32>
    %378 = arith.divf %376, %377 : vector<8x128xf32>
    %379 = arith.mulf %370, %355 : vector<8x128xf32>
    %380 = arith.mulf %364, %372 : vector<8x128xf32>
    %381 = arith.addf %379, %380 : vector<8x128xf32>
    %382 = math.tanh %381 : vector<8x128xf32>
    %383 = arith.mulf %378, %382 : vector<8x128xf32>
    %c0_188 = arith.constant 0 : index
    %c0_189 = arith.constant 0 : index
    %384 = vector.load %arg15[%c0_188, %c0_189] : memref<64x128xf32, #tpu.memory_space<vmem>>, vector<8x128xf32>
    tpu.vector_store %arg15[%c0_188, %c0_189], %383 {strides = array<i32>} : memref<64x128xf32, #tpu.memory_space<vmem>>, vector<8x128xf32>,
    %385 = arith.truncf %383 : vector<8x128xf32> to vector<8x128xbf16>
    %c8_190 = arith.constant 8 : index
    %c0_191 = arith.constant 0 : index
    %386 = vector.load %arg14[%c8_190, %c0_191] : memref<64x512xf32, #tpu.memory_space<vmem>>, vector<8x512xf32>
    %cst_192 = arith.constant dense<0.000000e+00> : vector<8x512xf32>
    %387 = tpu.matmul %385, %322, %cst_192 {dimension_numbers = #tpu.dot_dimension_numbers<[1], [0], [0], [1], [0, 0, 1, 1], [], []>} : vector<8x128xbf16>, vector<128x512xbf16>, vector<8x512xf32> -> vector<8x512xf32>
    %388 = arith.addf %386, %387 : vector<8x512xf32>
    %389 = vector.extract_strided_slice %388 {offsets = [0, 0], sizes = [8, 128], strides = [1, 1]} : vector<8x512xf32> to vector<8x128xf32>
    %390 = arith.negf %389 : vector<8x128xf32>
    %391 = math.exp %390 : vector<8x128xf32>
    %cst_193 = arith.constant 1.000000e+00 : f32
    %392 = vector.broadcast %cst_193 : f32 to vector<8x128xf32>
    %393 = arith.addf %392, %391 : vector<8x128xf32>
    %394 = arith.divf %392, %393 : vector<8x128xf32>
    %395 = vector.extract_strided_slice %388 {offsets = [0, 128], sizes = [8, 128], strides = [1, 1]} : vector<8x512xf32> to vector<8x128xf32>
    %396 = arith.negf %395 : vector<8x128xf32>
    %397 = math.exp %396 : vector<8x128xf32>
    %cst_194 = arith.constant 1.000000e+00 : f32
    %398 = vector.broadcast %cst_194 : f32 to vector<8x128xf32>
    %399 = arith.addf %398, %397 : vector<8x128xf32>
    %400 = arith.divf %398, %399 : vector<8x128xf32>
    %401 = vector.extract_strided_slice %388 {offsets = [0, 256], sizes = [8, 128], strides = [1, 1]} : vector<8x512xf32> to vector<8x128xf32>
    %402 = math.tanh %401 : vector<8x128xf32>
    %403 = vector.extract_strided_slice %388 {offsets = [0, 384], sizes = [8, 128], strides = [1, 1]} : vector<8x512xf32> to vector<8x128xf32>
    %404 = arith.negf %403 : vector<8x128xf32>
    %405 = math.exp %404 : vector<8x128xf32>
    %cst_195 = arith.constant 1.000000e+00 : f32
    %406 = vector.broadcast %cst_195 : f32 to vector<8x128xf32>
    %407 = arith.addf %406, %405 : vector<8x128xf32>
    %408 = arith.divf %406, %407 : vector<8x128xf32>
    %409 = arith.mulf %400, %381 : vector<8x128xf32>
    %410 = arith.mulf %394, %402 : vector<8x128xf32>
    %411 = arith.addf %409, %410 : vector<8x128xf32>
    %412 = math.tanh %411 : vector<8x128xf32>
    %413 = arith.mulf %408, %412 : vector<8x128xf32>
    %c8_196 = arith.constant 8 : index
    %c0_197 = arith.constant 0 : index
    %414 = vector.load %arg15[%c8_196, %c0_197] : memref<64x128xf32, #tpu.memory_space<vmem>>, vector<8x128xf32>
    tpu.vector_store %arg15[%c8_196, %c0_197], %413 {strides = array<i32>} : memref<64x128xf32, #tpu.memory_space<vmem>>, vector<8x128xf32>,
    %415 = arith.truncf %413 : vector<8x128xf32> to vector<8x128xbf16>
    %c16_198 = arith.constant 16 : index
    %c0_199 = arith.constant 0 : index
    %416 = vector.load %arg14[%c16_198, %c0_199] : memref<64x512xf32, #tpu.memory_space<vmem>>, vector<8x512xf32>
    %cst_200 = arith.constant dense<0.000000e+00> : vector<8x512xf32>
    %417 = tpu.matmul %415, %322, %cst_200 {dimension_numbers = #tpu.dot_dimension_numbers<[1], [0], [0], [1], [0, 0, 1, 1], [], []>} : vector<8x128xbf16>, vector<128x512xbf16>, vector<8x512xf32> -> vector<8x512xf32>
    %418 = arith.addf %416, %417 : vector<8x512xf32>
    %419 = vector.extract_strided_slice %418 {offsets = [0, 0], sizes = [8, 128], strides = [1, 1]} : vector<8x512xf32> to vector<8x128xf32>
    %420 = arith.negf %419 : vector<8x128xf32>
    %421 = math.exp %420 : vector<8x128xf32>
    %cst_201 = arith.constant 1.000000e+00 : f32
    %422 = vector.broadcast %cst_201 : f32 to vector<8x128xf32>
    %423 = arith.addf %422, %421 : vector<8x128xf32>
    %424 = arith.divf %422, %423 : vector<8x128xf32>
    %425 = vector.extract_strided_slice %418 {offsets = [0, 128], sizes = [8, 128], strides = [1, 1]} : vector<8x512xf32> to vector<8x128xf32>
    %426 = arith.negf %425 : vector<8x128xf32>
    %427 = math.exp %426 : vector<8x128xf32>
    %cst_202 = arith.constant 1.000000e+00 : f32
    %428 = vector.broadcast %cst_202 : f32 to vector<8x128xf32>
    %429 = arith.addf %428, %427 : vector<8x128xf32>
    %430 = arith.divf %428, %429 : vector<8x128xf32>
    %431 = vector.extract_strided_slice %418 {offsets = [0, 256], sizes = [8, 128], strides = [1, 1]} : vector<8x512xf32> to vector<8x128xf32>
    %432 = math.tanh %431 : vector<8x128xf32>
    %433 = vector.extract_strided_slice %418 {offsets = [0, 384], sizes = [8, 128], strides = [1, 1]} : vector<8x512xf32> to vector<8x128xf32>
    %434 = arith.negf %433 : vector<8x128xf32>
    %435 = math.exp %434 : vector<8x128xf32>
    %cst_203 = arith.constant 1.000000e+00 : f32
    %436 = vector.broadcast %cst_203 : f32 to vector<8x128xf32>
    %437 = arith.addf %436, %435 : vector<8x128xf32>
    %438 = arith.divf %436, %437 : vector<8x128xf32>
    %439 = arith.mulf %430, %411 : vector<8x128xf32>
    %440 = arith.mulf %424, %432 : vector<8x128xf32>
    %441 = arith.addf %439, %440 : vector<8x128xf32>
    %442 = math.tanh %441 : vector<8x128xf32>
    %443 = arith.mulf %438, %442 : vector<8x128xf32>
    %c16_204 = arith.constant 16 : index
    %c0_205 = arith.constant 0 : index
    %444 = vector.load %arg15[%c16_204, %c0_205] : memref<64x128xf32, #tpu.memory_space<vmem>>, vector<8x128xf32>
    tpu.vector_store %arg15[%c16_204, %c0_205], %443 {strides = array<i32>} : memref<64x128xf32, #tpu.memory_space<vmem>>, vector<8x128xf32>,
    %445 = arith.truncf %443 : vector<8x128xf32> to vector<8x128xbf16>
    %c24_206 = arith.constant 24 : index
    %c0_207 = arith.constant 0 : index
    %446 = vector.load %arg14[%c24_206, %c0_207] : memref<64x512xf32, #tpu.memory_space<vmem>>, vector<8x512xf32>
    %cst_208 = arith.constant dense<0.000000e+00> : vector<8x512xf32>
    %447 = tpu.matmul %445, %322, %cst_208 {dimension_numbers = #tpu.dot_dimension_numbers<[1], [0], [0], [1], [0, 0, 1, 1], [], []>} : vector<8x128xbf16>, vector<128x512xbf16>, vector<8x512xf32> -> vector<8x512xf32>
    %448 = arith.addf %446, %447 : vector<8x512xf32>
    %449 = vector.extract_strided_slice %448 {offsets = [0, 0], sizes = [8, 128], strides = [1, 1]} : vector<8x512xf32> to vector<8x128xf32>
    %450 = arith.negf %449 : vector<8x128xf32>
    %451 = math.exp %450 : vector<8x128xf32>
    %cst_209 = arith.constant 1.000000e+00 : f32
    %452 = vector.broadcast %cst_209 : f32 to vector<8x128xf32>
    %453 = arith.addf %452, %451 : vector<8x128xf32>
    %454 = arith.divf %452, %453 : vector<8x128xf32>
    %455 = vector.extract_strided_slice %448 {offsets = [0, 128], sizes = [8, 128], strides = [1, 1]} : vector<8x512xf32> to vector<8x128xf32>
    %456 = arith.negf %455 : vector<8x128xf32>
    %457 = math.exp %456 : vector<8x128xf32>
    %cst_210 = arith.constant 1.000000e+00 : f32
    %458 = vector.broadcast %cst_210 : f32 to vector<8x128xf32>
    %459 = arith.addf %458, %457 : vector<8x128xf32>
    %460 = arith.divf %458, %459 : vector<8x128xf32>
    %461 = vector.extract_strided_slice %448 {offsets = [0, 256], sizes = [8, 128], strides = [1, 1]} : vector<8x512xf32> to vector<8x128xf32>
    %462 = math.tanh %461 : vector<8x128xf32>
    %463 = vector.extract_strided_slice %448 {offsets = [0, 384], sizes = [8, 128], strides = [1, 1]} : vector<8x512xf32> to vector<8x128xf32>
    %464 = arith.negf %463 : vector<8x128xf32>
    %465 = math.exp %464 : vector<8x128xf32>
    %cst_211 = arith.constant 1.000000e+00 : f32
    %466 = vector.broadcast %cst_211 : f32 to vector<8x128xf32>
    %467 = arith.addf %466, %465 : vector<8x128xf32>
    %468 = arith.divf %466, %467 : vector<8x128xf32>
    %469 = arith.mulf %460, %441 : vector<8x128xf32>
    %470 = arith.mulf %454, %462 : vector<8x128xf32>
    %471 = arith.addf %469, %470 : vector<8x128xf32>
    %472 = math.tanh %471 : vector<8x128xf32>
    %473 = arith.mulf %468, %472 : vector<8x128xf32>
    %c24_212 = arith.constant 24 : index
    %c0_213 = arith.constant 0 : index
    %474 = vector.load %arg15[%c24_212, %c0_213] : memref<64x128xf32, #tpu.memory_space<vmem>>, vector<8x128xf32>
    tpu.vector_store %arg15[%c24_212, %c0_213], %473 {strides = array<i32>} : memref<64x128xf32, #tpu.memory_space<vmem>>, vector<8x128xf32>,
    %475 = arith.truncf %473 : vector<8x128xf32> to vector<8x128xbf16>
    %c32_214 = arith.constant 32 : index
    %c0_215 = arith.constant 0 : index
    %476 = vector.load %arg14[%c32_214, %c0_215] : memref<64x512xf32, #tpu.memory_space<vmem>>, vector<8x512xf32>
    %cst_216 = arith.constant dense<0.000000e+00> : vector<8x512xf32>
    %477 = tpu.matmul %475, %322, %cst_216 {dimension_numbers = #tpu.dot_dimension_numbers<[1], [0], [0], [1], [0, 0, 1, 1], [], []>} : vector<8x128xbf16>, vector<128x512xbf16>, vector<8x512xf32> -> vector<8x512xf32>
    %478 = arith.addf %476, %477 : vector<8x512xf32>
    %479 = vector.extract_strided_slice %478 {offsets = [0, 0], sizes = [8, 128], strides = [1, 1]} : vector<8x512xf32> to vector<8x128xf32>
    %480 = arith.negf %479 : vector<8x128xf32>
    %481 = math.exp %480 : vector<8x128xf32>
    %cst_217 = arith.constant 1.000000e+00 : f32
    %482 = vector.broadcast %cst_217 : f32 to vector<8x128xf32>
    %483 = arith.addf %482, %481 : vector<8x128xf32>
    %484 = arith.divf %482, %483 : vector<8x128xf32>
    %485 = vector.extract_strided_slice %478 {offsets = [0, 128], sizes = [8, 128], strides = [1, 1]} : vector<8x512xf32> to vector<8x128xf32>
    %486 = arith.negf %485 : vector<8x128xf32>
    %487 = math.exp %486 : vector<8x128xf32>
    %cst_218 = arith.constant 1.000000e+00 : f32
    %488 = vector.broadcast %cst_218 : f32 to vector<8x128xf32>
    %489 = arith.addf %488, %487 : vector<8x128xf32>
    %490 = arith.divf %488, %489 : vector<8x128xf32>
    %491 = vector.extract_strided_slice %478 {offsets = [0, 256], sizes = [8, 128], strides = [1, 1]} : vector<8x512xf32> to vector<8x128xf32>
    %492 = math.tanh %491 : vector<8x128xf32>
    %493 = vector.extract_strided_slice %478 {offsets = [0, 384], sizes = [8, 128], strides = [1, 1]} : vector<8x512xf32> to vector<8x128xf32>
    %494 = arith.negf %493 : vector<8x128xf32>
    %495 = math.exp %494 : vector<8x128xf32>
    %cst_219 = arith.constant 1.000000e+00 : f32
    %496 = vector.broadcast %cst_219 : f32 to vector<8x128xf32>
    %497 = arith.addf %496, %495 : vector<8x128xf32>
    %498 = arith.divf %496, %497 : vector<8x128xf32>
    %499 = arith.mulf %490, %471 : vector<8x128xf32>
    %500 = arith.mulf %484, %492 : vector<8x128xf32>
    %501 = arith.addf %499, %500 : vector<8x128xf32>
    %502 = math.tanh %501 : vector<8x128xf32>
    %503 = arith.mulf %498, %502 : vector<8x128xf32>
    %c32_220 = arith.constant 32 : index
    %c0_221 = arith.constant 0 : index
    %504 = vector.load %arg15[%c32_220, %c0_221] : memref<64x128xf32, #tpu.memory_space<vmem>>, vector<8x128xf32>
    tpu.vector_store %arg15[%c32_220, %c0_221], %503 {strides = array<i32>} : memref<64x128xf32, #tpu.memory_space<vmem>>, vector<8x128xf32>,
    %505 = arith.truncf %503 : vector<8x128xf32> to vector<8x128xbf16>
    %c40_222 = arith.constant 40 : index
    %c0_223 = arith.constant 0 : index
    %506 = vector.load %arg14[%c40_222, %c0_223] : memref<64x512xf32, #tpu.memory_space<vmem>>, vector<8x512xf32>
    %cst_224 = arith.constant dense<0.000000e+00> : vector<8x512xf32>
    %507 = tpu.matmul %505, %322, %cst_224 {dimension_numbers = #tpu.dot_dimension_numbers<[1], [0], [0], [1], [0, 0, 1, 1], [], []>} : vector<8x128xbf16>, vector<128x512xbf16>, vector<8x512xf32> -> vector<8x512xf32>
    %508 = arith.addf %506, %507 : vector<8x512xf32>
    %509 = vector.extract_strided_slice %508 {offsets = [0, 0], sizes = [8, 128], strides = [1, 1]} : vector<8x512xf32> to vector<8x128xf32>
    %510 = arith.negf %509 : vector<8x128xf32>
    %511 = math.exp %510 : vector<8x128xf32>
    %cst_225 = arith.constant 1.000000e+00 : f32
    %512 = vector.broadcast %cst_225 : f32 to vector<8x128xf32>
    %513 = arith.addf %512, %511 : vector<8x128xf32>
    %514 = arith.divf %512, %513 : vector<8x128xf32>
    %515 = vector.extract_strided_slice %508 {offsets = [0, 128], sizes = [8, 128], strides = [1, 1]} : vector<8x512xf32> to vector<8x128xf32>
    %516 = arith.negf %515 : vector<8x128xf32>
    %517 = math.exp %516 : vector<8x128xf32>
    %cst_226 = arith.constant 1.000000e+00 : f32
    %518 = vector.broadcast %cst_226 : f32 to vector<8x128xf32>
    %519 = arith.addf %518, %517 : vector<8x128xf32>
    %520 = arith.divf %518, %519 : vector<8x128xf32>
    %521 = vector.extract_strided_slice %508 {offsets = [0, 256], sizes = [8, 128], strides = [1, 1]} : vector<8x512xf32> to vector<8x128xf32>
    %522 = math.tanh %521 : vector<8x128xf32>
    %523 = vector.extract_strided_slice %508 {offsets = [0, 384], sizes = [8, 128], strides = [1, 1]} : vector<8x512xf32> to vector<8x128xf32>
    %524 = arith.negf %523 : vector<8x128xf32>
    %525 = math.exp %524 : vector<8x128xf32>
    %cst_227 = arith.constant 1.000000e+00 : f32
    %526 = vector.broadcast %cst_227 : f32 to vector<8x128xf32>
    %527 = arith.addf %526, %525 : vector<8x128xf32>
    %528 = arith.divf %526, %527 : vector<8x128xf32>
    %529 = arith.mulf %520, %501 : vector<8x128xf32>
    %530 = arith.mulf %514, %522 : vector<8x128xf32>
    %531 = arith.addf %529, %530 : vector<8x128xf32>
    %532 = math.tanh %531 : vector<8x128xf32>
    %533 = arith.mulf %528, %532 : vector<8x128xf32>
    %c40_228 = arith.constant 40 : index
    %c0_229 = arith.constant 0 : index
    %534 = vector.load %arg15[%c40_228, %c0_229] : memref<64x128xf32, #tpu.memory_space<vmem>>, vector<8x128xf32>
    tpu.vector_store %arg15[%c40_228, %c0_229], %533 {strides = array<i32>} : memref<64x128xf32, #tpu.memory_space<vmem>>, vector<8x128xf32>,
    %535 = arith.truncf %533 : vector<8x128xf32> to vector<8x128xbf16>
    %c48_230 = arith.constant 48 : index
    %c0_231 = arith.constant 0 : index
    %536 = vector.load %arg14[%c48_230, %c0_231] : memref<64x512xf32, #tpu.memory_space<vmem>>, vector<8x512xf32>
    %cst_232 = arith.constant dense<0.000000e+00> : vector<8x512xf32>
    %537 = tpu.matmul %535, %322, %cst_232 {dimension_numbers = #tpu.dot_dimension_numbers<[1], [0], [0], [1], [0, 0, 1, 1], [], []>} : vector<8x128xbf16>, vector<128x512xbf16>, vector<8x512xf32> -> vector<8x512xf32>
    %538 = arith.addf %536, %537 : vector<8x512xf32>
    %539 = vector.extract_strided_slice %538 {offsets = [0, 0], sizes = [8, 128], strides = [1, 1]} : vector<8x512xf32> to vector<8x128xf32>
    %540 = arith.negf %539 : vector<8x128xf32>
    %541 = math.exp %540 : vector<8x128xf32>
    %cst_233 = arith.constant 1.000000e+00 : f32
    %542 = vector.broadcast %cst_233 : f32 to vector<8x128xf32>
    %543 = arith.addf %542, %541 : vector<8x128xf32>
    %544 = arith.divf %542, %543 : vector<8x128xf32>
    %545 = vector.extract_strided_slice %538 {offsets = [0, 128], sizes = [8, 128], strides = [1, 1]} : vector<8x512xf32> to vector<8x128xf32>
    %546 = arith.negf %545 : vector<8x128xf32>
    %547 = math.exp %546 : vector<8x128xf32>
    %cst_234 = arith.constant 1.000000e+00 : f32
    %548 = vector.broadcast %cst_234 : f32 to vector<8x128xf32>
    %549 = arith.addf %548, %547 : vector<8x128xf32>
    %550 = arith.divf %548, %549 : vector<8x128xf32>
    %551 = vector.extract_strided_slice %538 {offsets = [0, 256], sizes = [8, 128], strides = [1, 1]} : vector<8x512xf32> to vector<8x128xf32>
    %552 = math.tanh %551 : vector<8x128xf32>
    %553 = vector.extract_strided_slice %538 {offsets = [0, 384], sizes = [8, 128], strides = [1, 1]} : vector<8x512xf32> to vector<8x128xf32>
    %554 = arith.negf %553 : vector<8x128xf32>
    %555 = math.exp %554 : vector<8x128xf32>
    %cst_235 = arith.constant 1.000000e+00 : f32
    %556 = vector.broadcast %cst_235 : f32 to vector<8x128xf32>
    %557 = arith.addf %556, %555 : vector<8x128xf32>
    %558 = arith.divf %556, %557 : vector<8x128xf32>
    %559 = arith.mulf %550, %531 : vector<8x128xf32>
    %560 = arith.mulf %544, %552 : vector<8x128xf32>
    %561 = arith.addf %559, %560 : vector<8x128xf32>
    %562 = math.tanh %561 : vector<8x128xf32>
    %563 = arith.mulf %558, %562 : vector<8x128xf32>
    %c48_236 = arith.constant 48 : index
    %c0_237 = arith.constant 0 : index
    %564 = vector.load %arg15[%c48_236, %c0_237] : memref<64x128xf32, #tpu.memory_space<vmem>>, vector<8x128xf32>
    tpu.vector_store %arg15[%c48_236, %c0_237], %563 {strides = array<i32>} : memref<64x128xf32, #tpu.memory_space<vmem>>, vector<8x128xf32>,
    %565 = arith.truncf %563 : vector<8x128xf32> to vector<8x128xbf16>
    %c56_238 = arith.constant 56 : index
    %c0_239 = arith.constant 0 : index
    %566 = vector.load %arg14[%c56_238, %c0_239] : memref<64x512xf32, #tpu.memory_space<vmem>>, vector<8x512xf32>
    %cst_240 = arith.constant dense<0.000000e+00> : vector<8x512xf32>
    %567 = tpu.matmul %565, %322, %cst_240 {dimension_numbers = #tpu.dot_dimension_numbers<[1], [0], [0], [1], [0, 0, 1, 1], [], []>} : vector<8x128xbf16>, vector<128x512xbf16>, vector<8x512xf32> -> vector<8x512xf32>
    %568 = arith.addf %566, %567 : vector<8x512xf32>
    %569 = vector.extract_strided_slice %568 {offsets = [0, 0], sizes = [8, 128], strides = [1, 1]} : vector<8x512xf32> to vector<8x128xf32>
    %570 = arith.negf %569 : vector<8x128xf32>
    %571 = math.exp %570 : vector<8x128xf32>
    %cst_241 = arith.constant 1.000000e+00 : f32
    %572 = vector.broadcast %cst_241 : f32 to vector<8x128xf32>
    %573 = arith.addf %572, %571 : vector<8x128xf32>
    %574 = arith.divf %572, %573 : vector<8x128xf32>
    %575 = vector.extract_strided_slice %568 {offsets = [0, 128], sizes = [8, 128], strides = [1, 1]} : vector<8x512xf32> to vector<8x128xf32>
    %576 = arith.negf %575 : vector<8x128xf32>
    %577 = math.exp %576 : vector<8x128xf32>
    %cst_242 = arith.constant 1.000000e+00 : f32
    %578 = vector.broadcast %cst_242 : f32 to vector<8x128xf32>
    %579 = arith.addf %578, %577 : vector<8x128xf32>
    %580 = arith.divf %578, %579 : vector<8x128xf32>
    %581 = vector.extract_strided_slice %568 {offsets = [0, 256], sizes = [8, 128], strides = [1, 1]} : vector<8x512xf32> to vector<8x128xf32>
    %582 = math.tanh %581 : vector<8x128xf32>
    %583 = vector.extract_strided_slice %568 {offsets = [0, 384], sizes = [8, 128], strides = [1, 1]} : vector<8x512xf32> to vector<8x128xf32>
    %584 = arith.negf %583 : vector<8x128xf32>
    %585 = math.exp %584 : vector<8x128xf32>
    %cst_243 = arith.constant 1.000000e+00 : f32
    %586 = vector.broadcast %cst_243 : f32 to vector<8x128xf32>
    %587 = arith.addf %586, %585 : vector<8x128xf32>
    %588 = arith.divf %586, %587 : vector<8x128xf32>
    %589 = arith.mulf %580, %561 : vector<8x128xf32>
    %590 = arith.mulf %574, %582 : vector<8x128xf32>
    %591 = arith.addf %589, %590 : vector<8x128xf32>
    %592 = math.tanh %591 : vector<8x128xf32>
    %593 = arith.mulf %588, %592 : vector<8x128xf32>
    %c56_244 = arith.constant 56 : index
    %c0_245 = arith.constant 0 : index
    %594 = vector.load %arg15[%c56_244, %c0_245] : memref<64x128xf32, #tpu.memory_space<vmem>>, vector<8x128xf32>
    tpu.vector_store %arg15[%c56_244, %c0_245], %593 {strides = array<i32>} : memref<64x128xf32, #tpu.memory_space<vmem>>, vector<8x128xf32>,
    %595 = arith.addf %296, %593 : vector<8x128xf32>
    %c0_246 = arith.constant 0 : index
    %c0_247 = arith.constant 0 : index
    %596 = vector.load %arg15[%c0_246, %c0_247] : memref<64x128xf32, #tpu.memory_space<vmem>>, vector<8x128xf32>
    %c56_248 = arith.constant 56 : index
    %c0_249 = arith.constant 0 : index
    %597 = vector.load %arg15[%c56_248, %c0_249] : memref<64x128xf32, #tpu.memory_space<vmem>>, vector<8x128xf32>
    %598 = arith.select %21, %596, %597 : vector<8x128xi1>, vector<8x128xf32>
    %c0_250 = arith.constant 0 : index
    %c0_251 = arith.constant 0 : index
    %599 = vector.load %arg15[%c0_250, %c0_251] : memref<64x128xf32, #tpu.memory_space<vmem>>, vector<8x128xf32>
    tpu.vector_store %arg15[%c0_250, %c0_251], %598 {strides = array<i32>} : memref<64x128xf32, #tpu.memory_space<vmem>>, vector<8x128xf32>,
    %600 = arith.select %21, %597, %596 : vector<8x128xi1>, vector<8x128xf32>
    %c56_252 = arith.constant 56 : index
    %c0_253 = arith.constant 0 : index
    %601 = vector.load %arg15[%c56_252, %c0_253] : memref<64x128xf32, #tpu.memory_space<vmem>>, vector<8x128xf32>
    tpu.vector_store %arg15[%c56_252, %c0_253], %600 {strides = array<i32>} : memref<64x128xf32, #tpu.memory_space<vmem>>, vector<8x128xf32>,
    %c8_254 = arith.constant 8 : index
    %c0_255 = arith.constant 0 : index
    %602 = vector.load %arg15[%c8_254, %c0_255] : memref<64x128xf32, #tpu.memory_space<vmem>>, vector<8x128xf32>
    %c48_256 = arith.constant 48 : index
    %c0_257 = arith.constant 0 : index
    %603 = vector.load %arg15[%c48_256, %c0_257] : memref<64x128xf32, #tpu.memory_space<vmem>>, vector<8x128xf32>
    %604 = arith.select %21, %602, %603 : vector<8x128xi1>, vector<8x128xf32>
    %c8_258 = arith.constant 8 : index
    %c0_259 = arith.constant 0 : index
    %605 = vector.load %arg15[%c8_258, %c0_259] : memref<64x128xf32, #tpu.memory_space<vmem>>, vector<8x128xf32>
    tpu.vector_store %arg15[%c8_258, %c0_259], %604 {strides = array<i32>} : memref<64x128xf32, #tpu.memory_space<vmem>>, vector<8x128xf32>,
    %606 = arith.select %21, %603, %602 : vector<8x128xi1>, vector<8x128xf32>
    %c48_260 = arith.constant 48 : index
    %c0_261 = arith.constant 0 : index
    %607 = vector.load %arg15[%c48_260, %c0_261] : memref<64x128xf32, #tpu.memory_space<vmem>>, vector<8x128xf32>
    tpu.vector_store %arg15[%c48_260, %c0_261], %606 {strides = array<i32>} : memref<64x128xf32, #tpu.memory_space<vmem>>, vector<8x128xf32>,
    %c16_262 = arith.constant 16 : index
    %c0_263 = arith.constant 0 : index
    %608 = vector.load %arg15[%c16_262, %c0_263] : memref<64x128xf32, #tpu.memory_space<vmem>>, vector<8x128xf32>
    %c40_264 = arith.constant 40 : index
    %c0_265 = arith.constant 0 : index
    %609 = vector.load %arg15[%c40_264, %c0_265] : memref<64x128xf32, #tpu.memory_space<vmem>>, vector<8x128xf32>
    %610 = arith.select %21, %608, %609 : vector<8x128xi1>, vector<8x128xf32>
    %c16_266 = arith.constant 16 : index
    %c0_267 = arith.constant 0 : index
    %611 = vector.load %arg15[%c16_266, %c0_267] : memref<64x128xf32, #tpu.memory_space<vmem>>, vector<8x128xf32>
    tpu.vector_store %arg15[%c16_266, %c0_267], %610 {strides = array<i32>} : memref<64x128xf32, #tpu.memory_space<vmem>>, vector<8x128xf32>,
    %612 = arith.select %21, %609, %608 : vector<8x128xi1>, vector<8x128xf32>
    %c40_268 = arith.constant 40 : index
    %c0_269 = arith.constant 0 : index
    %613 = vector.load %arg15[%c40_268, %c0_269] : memref<64x128xf32, #tpu.memory_space<vmem>>, vector<8x128xf32>
    tpu.vector_store %arg15[%c40_268, %c0_269], %612 {strides = array<i32>} : memref<64x128xf32, #tpu.memory_space<vmem>>, vector<8x128xf32>,
    %c24_270 = arith.constant 24 : index
    %c0_271 = arith.constant 0 : index
    %614 = vector.load %arg15[%c24_270, %c0_271] : memref<64x128xf32, #tpu.memory_space<vmem>>, vector<8x128xf32>
    %c32_272 = arith.constant 32 : index
    %c0_273 = arith.constant 0 : index
    %615 = vector.load %arg15[%c32_272, %c0_273] : memref<64x128xf32, #tpu.memory_space<vmem>>, vector<8x128xf32>
    %616 = arith.select %21, %614, %615 : vector<8x128xi1>, vector<8x128xf32>
    %c24_274 = arith.constant 24 : index
    %c0_275 = arith.constant 0 : index
    %617 = vector.load %arg15[%c24_274, %c0_275] : memref<64x128xf32, #tpu.memory_space<vmem>>, vector<8x128xf32>
    tpu.vector_store %arg15[%c24_274, %c0_275], %616 {strides = array<i32>} : memref<64x128xf32, #tpu.memory_space<vmem>>, vector<8x128xf32>,
    %618 = arith.select %21, %615, %614 : vector<8x128xi1>, vector<8x128xf32>
    %c32_276 = arith.constant 32 : index
    %c0_277 = arith.constant 0 : index
    %619 = vector.load %arg15[%c32_276, %c0_277] : memref<64x128xf32, #tpu.memory_space<vmem>>, vector<8x128xf32>
    tpu.vector_store %arg15[%c32_276, %c0_277], %618 {strides = array<i32>} : memref<64x128xf32, #tpu.memory_space<vmem>>, vector<8x128xf32>,
    %c0_278 = arith.constant 0 : index
    %c0_279 = arith.constant 0 : index
    %620 = vector.load %arg15[%c0_278, %c0_279] : memref<64x128xf32, #tpu.memory_space<vmem>>, vector<64x128xf32>
    %621 = vector.extract_strided_slice %620 {offsets = [0, 0], sizes = [64, 32], strides = [1, 1]} : vector<64x128xf32> to vector<64x32xf32>
    %622 = vector.extract_strided_slice %620 {offsets = [0, 32], sizes = [64, 32], strides = [1, 1]} : vector<64x128xf32> to vector<64x32xf32>
    %623 = arith.addf %621, %622 : vector<64x32xf32>
    %624 = math.tanh %623 : vector<64x32xf32>
    %625 = arith.truncf %595 : vector<8x128xf32> to vector<8x128xbf16>
    %c0_280 = arith.constant 0 : index
    %c0_281 = arith.constant 0 : index
    %626 = vector.load %arg7[%c0_280, %c0_281] : memref<128x32xbf16, #tpu.memory_space<vmem>>, vector<128x32xbf16>
    %cst_282 = arith.constant dense<0.000000e+00> : vector<8x32xf32>
    %627 = tpu.matmul %625, %626, %cst_282 {dimension_numbers = #tpu.dot_dimension_numbers<[1], [0], [0], [1], [0, 0, 1, 1], [], []>} : vector<8x128xbf16>, vector<128x32xbf16>, vector<8x32xf32> -> vector<8x32xf32>
    %c0_283 = arith.constant 0 : index
    %c0_284 = arith.constant 0 : index
    %628 = vector.load %arg8[%c0_283, %c0_284] : memref<1x32xf32, #tpu.memory_space<vmem>>, vector<1x32xf32>
    %629 = vector.broadcast %628 : vector<1x32xf32> to vector<8x32xf32>
    %630 = arith.addf %627, %629 : vector<8x32xf32>
    %cst_285 = arith.constant 0.000000e+00 : f32
    %631 = vector.broadcast %cst_285 : f32 to vector<8x32xf32>
    %632 = arith.maximumf %630, %631 : vector<8x32xf32>
    %633 = arith.truncf %632 : vector<8x32xf32> to vector<8x32xbf16>
    %634 = arith.truncf %624 : vector<64x32xf32> to vector<64x32xbf16>
    %cst_286 = arith.constant dense<0.000000e+00> : vector<8x64xf32>
    %635 = tpu.matmul %633, %634, %cst_286 {dimension_numbers = #tpu.dot_dimension_numbers<[1], [1], [0], [0], [0, 0, 1, 0], [], []>} : vector<8x32xbf16>, vector<64x32xbf16>, vector<8x64xf32> -> vector<8x64xf32>
    %636 = tpu.iota {dimensions = array<i32: 1>} : vector<8x64xi32>
    %637 = tpu.iota {dimensions = array<i32: 0>} : vector<8x64xi32>
    %c8_i32 = arith.constant 8 : i32
    %c0_i32_287 = arith.constant 0 : i32
    %638 = arith.cmpi eq, %c8_i32, %c0_i32_287 : i32
    %c1_i32_288 = arith.constant 1 : i32
    %639 = arith.select %638, %c1_i32_288, %c8_i32 : i32
    %640 = vector.broadcast %639 : i32 to vector<8x64xi32>
    %641 = arith.remsi %636, %640 : vector<8x64xi32>
    %c0_i32_289 = arith.constant 0 : i32
    %642 = vector.broadcast %c0_i32_289 : i32 to vector<8x64xi32>
    %643 = arith.cmpi ne, %641, %642 : vector<8x64xi32>
    %c0_i32_290 = arith.constant 0 : i32
    %644 = vector.broadcast %c0_i32_290 : i32 to vector<8x64xi32>
    %645 = arith.cmpi slt, %641, %644 : vector<8x64xi32>
    %c0_i32_291 = arith.constant 0 : i32
    %646 = arith.cmpi slt, %639, %c0_i32_291 : i32
    %647 = vector.broadcast %646 : i1 to vector<8x64xi1>
    %648 = vector.broadcast %647 : vector<8x64xi1> to vector<8x64xi1>
    %649 = arith.xori %645, %648 : vector<8x64xi1>
    %650 = arith.andi %649, %643 : vector<8x64xi1>
    %651 = vector.broadcast %639 : i32 to vector<8x64xi32>
    %652 = arith.addi %641, %651 : vector<8x64xi32>
    %653 = arith.select %650, %652, %641 : vector<8x64xi1>, vector<8x64xi32>
    %654 = arith.cmpi eq, %653, %637 : vector<8x64xi32>
    %cst_292 = arith.constant -1.000000e+30 : f32
    %655 = vector.broadcast %cst_292 : f32 to vector<8x64xf32>
    %656 = arith.select %654, %635, %655 : vector<8x64xi1>, vector<8x64xf32>
    %cst_293 = arith.constant dense<0xFF800000> : vector<8xf32>
    %657 = vector.multi_reduction <maximumf>, %656, %cst_293 [1] : vector<8x64xf32> to vector<8xf32>
    %658 = vector.shape_cast %657 : vector<8xf32> to vector<8x1xf32>
    %659 = vector.broadcast %658 : vector<8x1xf32> to vector<8x64xf32>
    %660 = arith.subf %656, %659 : vector<8x64xf32>
    %661 = math.exp %660 : vector<8x64xf32>
    %cst_294 = arith.constant 0.000000e+00 : f32
    %662 = vector.broadcast %cst_294 : f32 to vector<8x64xf32>
    %663 = arith.select %654, %661, %662 : vector<8x64xi1>, vector<8x64xf32>
    %cst_295 = arith.constant dense<0.000000e+00> : vector<8xf32>
    %664 = vector.multi_reduction <add>, %663, %cst_295 [1] : vector<8x64xf32> to vector<8xf32>
    %665 = vector.shape_cast %664 : vector<8xf32> to vector<8x1xf32>
    %666 = vector.broadcast %665 : vector<8x1xf32> to vector<8x64xf32>
    %667 = arith.divf %663, %666 : vector<8x64xf32>
    %668 = arith.truncf %667 : vector<8x64xf32> to vector<8x64xbf16>
    %669 = arith.truncf %623 : vector<64x32xf32> to vector<64x32xbf16>
    %cst_296 = arith.constant dense<0.000000e+00> : vector<8x32xf32>
    %670 = tpu.matmul %668, %669, %cst_296 {dimension_numbers = #tpu.dot_dimension_numbers<[1], [0], [0], [1], [0, 0, 1, 1], [], []>} : vector<8x64xbf16>, vector<64x32xbf16>, vector<8x32xf32> -> vector<8x32xf32>
    %671 = arith.truncf %670 : vector<8x32xf32> to vector<8x32xbf16>
    %c0_297 = arith.constant 0 : index
    %c0_298 = arith.constant 0 : index
    %672 = vector.load %arg9[%c0_297, %c0_298] : memref<32x32xbf16, #tpu.memory_space<vmem>>, vector<32x32xbf16>
    %cst_299 = arith.constant dense<0.000000e+00> : vector<8x32xf32>
    %673 = tpu.matmul %671, %672, %cst_299 {dimension_numbers = #tpu.dot_dimension_numbers<[1], [0], [0], [1], [0, 0, 1, 1], [], []>} : vector<8x32xbf16>, vector<32x32xbf16>, vector<8x32xf32> -> vector<8x32xf32>
    %c0_300 = arith.constant 0 : index
    %c0_301 = arith.constant 0 : index
    %674 = vector.load %arg10[%c0_300, %c0_301] : memref<1x32xf32, #tpu.memory_space<vmem>>, vector<1x32xf32>
    %675 = vector.broadcast %674 : vector<1x32xf32> to vector<8x32xf32>
    %676 = arith.addf %673, %675 : vector<8x32xf32>
    %cst_302 = arith.constant 0.000000e+00 : f32
    %677 = vector.broadcast %cst_302 : f32 to vector<8x32xf32>
    %678 = arith.maximumf %676, %677 : vector<8x32xf32>
    %679 = arith.truncf %678 : vector<8x32xf32> to vector<8x32xbf16>
    %c0_303 = arith.constant 0 : index
    %c0_304 = arith.constant 0 : index
    %680 = vector.load %arg11[%c0_303, %c0_304] : memref<32x128xbf16, #tpu.memory_space<vmem>>, vector<32x128xbf16>
    %cst_305 = arith.constant dense<0.000000e+00> : vector<8x128xf32>
    %681 = tpu.matmul %679, %680, %cst_305 {dimension_numbers = #tpu.dot_dimension_numbers<[1], [0], [0], [1], [0, 0, 1, 1], [], []>} : vector<8x32xbf16>, vector<32x128xbf16>, vector<8x128xf32> -> vector<8x128xf32>
    %c0_306 = arith.constant 0 : index
    %c0_307 = arith.constant 0 : index
    %682 = vector.load %arg12[%c0_306, %c0_307] : memref<1x128xf32, #tpu.memory_space<vmem>>, vector<1x128xf32>
    %683 = vector.broadcast %682 : vector<1x128xf32> to vector<8x128xf32>
    %684 = arith.addf %681, %683 : vector<8x128xf32>
    %c0_308 = arith.constant 0 : index
    %c0_309 = arith.constant 0 : index
    %685 = vector.load %arg13[%c0_308, %c0_309] : memref<8x128xf32, #tpu.memory_space<vmem>>, vector<8x128xf32>
    tpu.vector_store %arg13[%c0_308, %c0_309], %684 {strides = array<i32>} : memref<8x128xf32, #tpu.memory_space<vmem>>, vector<8x128xf32>,
    return
  }
}

</mosaic_0001>

<bundles_post_ra>
// kernel: text_bilstm_forward.1
= control target key start
LH: loop header
LB: loop body
LE: loop exit
PB: predicated region body
PF: predicated region fallthrough
CT: control target
= control target key end

     0   :  { %18 = vsyncpa [#allocation5], 0  ;;  %s6591_s0 = inlined_call_operand.vmem [shape: bf16[64,32], index: 0, kind: input, shape index: {}]   ;;  %s6592_s1 = inlined_call_operand.vmem [shape: bf16[32,512], index: 1, kind: input, shape index: {}]   ;;  %s6593_s2 = inlined_call_operand.hbm [shape: bf16[128,512], index: 2, kind: input, shape index: {}]   ;;  %s6594_s3 = inlined_call_operand.vmem [shape: f32[1,512], index: 3, kind: input, shape index: {}]   ;;  %s6595_s4 = inlined_call_operand.hbm [shape: bf16[128,512], index: 4, kind: input, shape index: {}]   ;;  %s6596_s5 = inlined_call_operand.hbm [shape: bf16[128,512], index: 5, kind: input, shape index: {}]   ;;  %s6597_s6 = inlined_call_operand.vmem [shape: f32[1,512], index: 6, kind: input, shape index: {}]   ;;  %s6598_s7 = inlined_call_operand.vmem [shape: bf16[128,32], index: 7, kind: input, shape index: {}]   ;;  %s6599_s8 = inlined_call_operand.vmem [shape: f32[1,32], index: 8, kind: input, shape index: {}]   ;;  %s6600_s9 = inlined_call_operand.vmem [shape: bf16[32,32], index: 9, kind: input, shape index: {}]   ;;  %s6601_s10 = inlined_call_operand.vmem [shape: f32[1,32], index: 10, kind: input, shape index: {}]   ;;  %s6602_s11 = inlined_call_operand.vmem [shape: bf16[32,128], index: 11, kind: input, shape index: {}]   ;;  %s6603_s12 = inlined_call_operand.vmem [shape: f32[1,128], index: 12, kind: input, shape index: {}]   ;;  %s6604_s13 = inlined_call_operand.vmem [shape: f32[8,128], index: 13, kind: output, shape index: {}]  }
   0x1   :  { %19 = vsyncpa [#allocation7], 0  ;;  %s4618_s25 = smov [#allocation6]   ;;  %s4619_s27 = smov [#allocation4]  }
   0x2   :  { %s43_s26 = sshll.u32 %s4618_s25, 4  ;;  %s29_s28 = sshll.u32 %s4619_s27, 4  ;;  %s44_s26 = int_to_ptr.vmem [resolvable:$true] %s43_s26  ;;  %s30_s28 = int_to_ptr.vmem [resolvable:$true] %s29_s28 }
   0x3   :  { %s4562_s29 = scalar_lea.vmem %s44_s26, 4096  ;;  %p4567_p1 = scmp.lt.s32.totalorder %s44_s26, %s44_s26 }
   0x4   :  { %p4563_p0 = scmp.ne.s32.totalorder %s44_s26, %s4562_s29  ;;  %p4568_p2 = scmp.lt.s32.totalorder %s4562_s29, %s4562_s29 }
   0x6   :  { %p4569_p3 = por %p4568_p2, %p4567_p1 }
   0x8   :  { %p4570_p4 = pnand %p4569_p3, %p4563_p0 }
   0xa   :  { %4573 = shalt.err (!%p4570_p4)
}
   0xb   :  { %s4620_s30 = smov 256   ;;  %s4621_s14 = smov 16  }
   0xc   :  { %49 = dma.hbm_to_vmem [thread:$0]  %s6595_s4, 4096, %s44_s26, [#allocation7], %s4620_s30, %s4620_s30, %s4621_s14  }
   0xd   :  { %s4582_s17 = scalar_lea.vmem %s30_s28, 4096  ;;  %p4587_p6 = scmp.lt.s32.totalorder %s30_s28, %s30_s28 }
   0xe   :  { %p4583_p5 = scmp.ne.s32.totalorder %s30_s28, %s4582_s17  ;;  %p4588_p7 = scmp.lt.s32.totalorder %s4582_s17, %s4582_s17 }
  0x10   :  { %p4589_p8 = por %p4588_p7, %p4587_p6 }
  0x12   :  { %p4590_p9 = pnand %p4589_p8, %p4583_p5 }
  0x14   :  { %4593 = shalt.err (!%p4590_p9)
}
  0x15   :  { %35 = dma.hbm_to_vmem [thread:$0]  %s6593_s2, 4096, %s30_s28, [#allocation5], %s4620_s30, %s4620_s30, %s4621_s14  }
  0x16   :  { %s4622_s20 = smov [#allocation8]  }
  0x17   :  { %s55_s21 = sshll.u32 %s4622_s20, 4  ;;  %s56_s21 = int_to_ptr.vmem [resolvable:$true] %s55_s21 }
  0x18   :  { %s4602_s22 = scalar_lea.vmem %s56_s21, 4096  ;;  %p4607_p11 = scmp.lt.s32.totalorder %s56_s21, %s56_s21 }
  0x19   :  { %p4603_p10 = scmp.ne.s32.totalorder %s56_s21, %s4602_s22  ;;  %p4608_p12 = scmp.lt.s32.totalorder %s4602_s22, %s4602_s22 }
  0x1b   :  { %p4609_p13 = por %p4608_p12, %p4607_p11 }
  0x1d   :  { %p4610_p0 = pnand %p4609_p13, %p4603_p10 }
  0x1f   :  { %4613 = shalt.err (!%p4610_p0)
}
  0x20   :  { %61 = dma.hbm_to_vmem [thread:$0]  %s6596_s5, 4096, %s56_s21, [#allocation7], %s4620_s30, %s4620_s30, %s4621_s14  }
  0x21   :  { %4614 = dma.done.wait [#allocation5], 4096  }
  0x22   :  { %4615 = vsyncadd [#allocation5], 4294963200 }
  0x23   :  { %4616 = dma.done.wait [#allocation7], 8192  }
  0x24   :  { %4617 = vsyncadd [#allocation7], 4294959104  ;;  %v6609_v0 = vmov 0   ;;  %v4042_v1 = vld [vmem:[%s6592_s1 + $0x24] ss:$16 sps:$4 sm:$0xff]   ;;  %vm274_vm0 = vcmask 261120   ;;  %v86_v45 = vlaneseq }
  0x25   :  { %319 = vmatprep.mubr.bf16.mxu0 %v6609_v0  ;;  %392 = vmatprep.mubr.bf16.mxu1 %v6609_v0  ;;  %v4044_v2 = vld [vmem:[%s6592_s1 + $0x2c] ss:$16 sps:$4 sm:$0xff]   ;;  %v4046_v3 = vld [vmem:[%s6592_s1 + $0x20] ss:$16 sps:$4 sm:$0xff]   ;;  %v4047_v4 = vld [vmem:[%s6592_s1 + $0x28] ss:$16 sps:$4 sm:$0xff]  }
  0x26   :  { %299 = vmatprep.subr.bf16.mxu0 %v4042_v1  ;;  %372 = vmatprep.subr.bf16.mxu1 %v4044_v2  ;;  %v4048_v5 = vld [vmem:[%s6592_s1 + $0x4] ss:$16 sps:$4 sm:$0xff]   ;;  %v4050_v6 = vld [vmem:[%s6592_s1 + $0xc] ss:$16 sps:$4 sm:$0xff]   ;;  %v4052_v7 = vld [vmem:[%s6592_s1] ss:$16 sps:$4 sm:$0xff]  }
  0x27   :  { %300 = vmatpush1.bf16.msra.mxu0 %v4046_v3  ;;  %373 = vmatpush1.bf16.msra.mxu1 %v4047_v4  ;;  %v4053_v8 = vld [vmem:[%s6592_s1 + $0x8] ss:$16 sps:$4 sm:$0xff]   ;;  %v4054_v9 = vld [vmem:[%s6591_s0] sm:$0xff]   ;;  %v4737_v11 = vld [vmem:[#allocation4 + $0xec] ss:$16 sps:$4 sm:$0xff]   ;;  %v4894_v46 = vshrl.u32 %v86_v45, 7 }
  0x28   :  { %301 = vmatprep.subr.bf16.mxu0 %v4048_v5  ;;  %374 = vmatprep.subr.bf16.mxu1 %v4050_v6  ;;  %v4735_v10 = vld [vmem:[#allocation4 + $0xe4] ss:$16 sps:$4 sm:$0xff]   ;;  %6704 = vst [vmem:[#allocation12_spill] sm:$0xff] %v4737_v11  ;;  %v4739_v12 = vld [vmem:[#allocation4 + $0xe0] ss:$16 sps:$4 sm:$0xff]   ;;  %v4067_v19 = vld [vmem:[%s6591_s0 + $0x8] sm:$0xff]  }
  0x29   :  { %6703 = vst [vmem:[#allocation11_spill] sm:$0xff] %v4735_v10  ;;  %v4741_v13 = vld [vmem:[#allocation4 + $0xe8] ss:$16 sps:$4 sm:$0xff]   ;;  %v4744_v14 = vld [vmem:[#allocation4 + $0xc4] ss:$16 sps:$4 sm:$0xff]   ;;  %6706 = vst [vmem:[#allocation14_spill] sm:$0xff] %v4894_v46 }
  0x2a   :  { %v4747_v15 = vld [vmem:[#allocation4 + $0xcc] ss:$16 sps:$4 sm:$0xff]   ;;  %v4751_v16 = vld [vmem:[#allocation4 + $0xc0] ss:$16 sps:$4 sm:$0xff]   ;;  %v4755_v17 = vld [vmem:[#allocation4 + $0xc8] ss:$16 sps:$4 sm:$0xff]  }
  0x2b   :  { %302 = vmatpush1.bf16.msra.mxu0 %v4052_v7  ;;  %375 = vmatpush1.bf16.msra.mxu1 %v4053_v8  ;;  %v4759_v18 = vld [vmem:[#allocation4 + $0xa4] ss:$16 sps:$4 sm:$0xff]   ;;  %v4766_v20 = vld [vmem:[#allocation4 + $0xac] ss:$16 sps:$4 sm:$0xff]   ;;  %v4768_v21 = vld [vmem:[#allocation4 + $0xa0] ss:$16 sps:$4 sm:$0xff]  }
  0x2c   :  { %725 = vmatprep.subr.bf16.mxu0 %v4735_v10  ;;  %766 = vmatprep.subr.bf16.mxu1 %v4737_v11  ;;  %v4772_v22 = vld [vmem:[#allocation4 + $0xa8] ss:$16 sps:$4 sm:$0xff]   ;;  %v4776_v23 = vld [vmem:[#allocation4 + $0x84] ss:$16 sps:$4 sm:$0xff]   ;;  %v4778_v24 = vld [vmem:[#allocation4 + $0x8c] ss:$16 sps:$4 sm:$0xff]  }
  0x2d   :  { %v4782_v25 = vld [vmem:[#allocation4 + $0x80] ss:$16 sps:$4 sm:$0xff]   ;;  %v4786_v26 = vld [vmem:[#allocation4 + $0x88] ss:$16 sps:$4 sm:$0xff]   ;;  %v4790_v27 = vld [vmem:[#allocation4 + $0x64] ss:$16 sps:$4 sm:$0xff]  }
  0x2e   :  { %3777 = vmatmul.mubr.msk.bf16.vlgmr.msra.gmra.mxu0 %vm274_vm0, %v4054_v9  ;;  %3781 = vmatmul.mubr.msk.bf16.vlgmr.msra.gmra.mxu1 %vm274_vm0, %v4054_v9  ;;  %v4792_v28 = vld [vmem:[#allocation4 + $0x6c] ss:$16 sps:$4 sm:$0xff]   ;;  %v4080_v29 = vld [vmem:[%s6591_s0 + $0x10] sm:$0xff]   ;;  %v4801_v31 = vld [vmem:[#allocation4 + $0x68] ss:$16 sps:$4 sm:$0xff]   ;;  %v6607_v47 = vsub.s32 2, %v4894_v46 }
  0x2f   :  { %726 = vmatpush1.bf16.msra.mxu0 %v4739_v12  ;;  %767 = vmatpush1.bf16.msra.mxu1 %v4741_v13  ;;  %v4799_v30 = vld [vmem:[#allocation4 + $0x60] ss:$16 sps:$4 sm:$0xff]   ;;  %v4805_v32 = vld [vmem:[#allocation4 + $0x44] ss:$16 sps:$4 sm:$0xff]   ;;  %v4809_v33 = vld [vmem:[#allocation4 + $0x4c] ss:$16 sps:$4 sm:$0xff]  }
  0x30   :  { %727 = vmatprep.subr.bf16.mxu0 %v4744_v14  ;;  %768 = vmatprep.subr.bf16.mxu1 %v4747_v15  ;;  %v4813_v34 = vld [vmem:[#allocation4 + $0x40] ss:$16 sps:$4 sm:$0xff]   ;;  %v4815_v35 = vld [vmem:[#allocation4 + $0x48] ss:$16 sps:$4 sm:$0xff]   ;;  %v4819_v36 = vld [vmem:[#allocation4 + $0x24] ss:$16 sps:$4 sm:$0xff]  }
  0x31   :  { %329 = vmatprep.mubr.bf16.mxu0 %v6609_v0  ;;  %402 = vmatprep.mubr.bf16.mxu1 %v6609_v0  ;;  %v4823_v37 = vld [vmem:[#allocation4 + $0x2c] ss:$16 sps:$4 sm:$0xff]   ;;  %v4830_v39 = vld [vmem:[#allocation4 + $0x20] ss:$16 sps:$4 sm:$0xff]   ;;  %v4832_v40 = vld [vmem:[#allocation4 + $0x28] ss:$16 sps:$4 sm:$0xff]  }
  0x32   :  { %v4093_v38 = vld [vmem:[%s6591_s0 + $0x18] sm:$0xff]   ;;  %v4834_v41 = vld [vmem:[#allocation4 + $0x4] ss:$16 sps:$4 sm:$0xff]   ;;  %v4842_v43 = vld [vmem:[#allocation4] ss:$16 sps:$4 sm:$0xff]   ;;  %v6608_v48 = vsub.s32 0, %v4894_v46 }
  0x33   :  { %728 = vmatpush1.bf16.msra.mxu0 %v4751_v16  ;;  %769 = vmatpush1.bf16.msra.mxu1 %v4755_v17  ;;  %v4836_v42 = vld [vmem:[#allocation4 + $0xc] ss:$16 sps:$4 sm:$0xff]   ;;  %v4844_v44 = vld [vmem:[#allocation4 + $0x8] ss:$16 sps:$4 sm:$0xff]   ;;  %v6605_v49 = vsub.s32 3, %v4894_v46  ;;  %v6606_v54 = vsub.s32 1, %v4894_v46 }
  0x34   :  { %729 = vmatprep.subr.bf16.mxu0 %v4759_v18  ;;  %770 = vmatprep.subr.bf16.mxu1 %v4766_v20  ;;  %6705 = vst [vmem:[#allocation13_spill] sm:$0xff] %v4844_v44  ;;  %v184_v50 = vld [vmem:[%s6594_s3] sm:$0xf]  ;;  %v4933_v1 = vand.u32 127, %v86_v45  ;;  %vm4626_vm5 = vmmov 0   ;;  %vm3562_vm7 = vcmask 523264  }
  0x35   :  { %v4908_v53 = vrot.slane %v184_v50, %v6607_v47  ;;  %v4917_v57 = vrot.slane %v184_v50, %v6608_v48  ;;  %v4921_v58 = vrot.slane %v184_v50, %v6605_v49  ;;  %v4925_v61 = vrot.slane %v184_v50, %v6606_v54 }
  0x36   :  { %3778 = vmatmul.mubr.msk.bf16.gmra.mxu0 %vm274_vm0, %v4067_v19  ;;  %3782 = vmatmul.mubr.msk.bf16.gmra.mxu1 %vm274_vm0, %v4067_v19  ;;  %6708 = vst [vmem:[#allocation16_spill] sm:$0xff] %v4933_v1  ;;  %v88_v19 = vadd.s32 128, %v4933_v1  ;;  %vm139_vm1 = vcmp.lt.s32.totalorder %v4933_v1, 32 }
  0x37   :  { %730 = vmatpush1.bf16.msra.mxu0 %v4768_v21  ;;  %771 = vmatpush1.bf16.msra.mxu1 %v4772_v22 }
  0x38   :  { %731 = vmatprep.subr.bf16.mxu0 %v4776_v23  ;;  %772 = vmatprep.subr.bf16.mxu1 %v4778_v24  ;;  %v102_v49 = vand.u32 127, %v88_v19 }
  0x39   :  { %339 = vmatprep.mubr.bf16.mxu0 %v6609_v0  ;;  %412 = vmatprep.mubr.bf16.mxu1 %v6609_v0 }
  0x3a   :  { %vm4969_vm2 = vcmp.lt.s32.totalorder %v102_v49, 32 }
  0x3b   :  { %732 = vmatpush1.bf16.msra.mxu0 %v4782_v25  ;;  %773 = vmatpush1.bf16.msra.mxu1 %v4786_v26 }
  0x3c   :  { %733 = vmatprep.subr.bf16.mxu0 %v4790_v27  ;;  %774 = vmatprep.subr.bf16.mxu1 %v4792_v28 }
  0x3e   :  { %3779 = vmatmul.mubr.msk.bf16.gmra.mxu0 %vm274_vm0, %v4080_v29  ;;  %3783 = vmatmul.mubr.msk.bf16.gmra.mxu1 %vm274_vm0, %v4080_v29  ;;  %v89_v29 = vadd.s32 256, %v4933_v1 }
  0x3f   :  { %734 = vmatpush1.bf16.msra.mxu0 %v4799_v30  ;;  %775 = vmatpush1.bf16.msra.mxu1 %v4801_v31 }
  0x40   :  { %735 = vmatprep.subr.bf16.mxu0 %v4805_v32  ;;  %776 = vmatprep.subr.bf16.mxu1 %v4809_v33  ;;  %v109_v54 = vand.u32 127, %v89_v29 }
  0x41   :  { %349 = vmatprep.mubr.bf16.mxu0 %v6609_v0  ;;  %422 = vmatprep.mubr.bf16.mxu1 %v6609_v0 }
  0x42   :  { %vm4973_vm3 = vcmp.lt.s32.totalorder %v109_v54, 32 }
  0x43   :  { %736 = vmatpush1.bf16.msra.mxu0 %v4813_v34  ;;  %777 = vmatpush1.bf16.msra.mxu1 %v4815_v35 }
  0x44   :  { %737 = vmatprep.subr.bf16.mxu0 %v4819_v36  ;;  %778 = vmatprep.subr.bf16.mxu1 %v4823_v37 }
  0x46   :  { %3780 = vmatmul.mubr.msk.bf16.gmra.mxu0 %vm274_vm0, %v4093_v38  ;;  %3784 = vmatmul.mubr.msk.bf16.gmra.mxu1 %vm274_vm0, %v4093_v38  ;;  %v90_v38 = vadd.s32 384, %v4933_v1 }
  0x47   :  { %738 = vmatpush1.bf16.msra.mxu0 %v4830_v39  ;;  %779 = vmatpush1.bf16.msra.mxu1 %v4832_v40 }
  0x48   :  { %739 = vmatprep.subr.bf16.mxu0 %v4834_v41  ;;  %780 = vmatprep.subr.bf16.mxu1 %v4836_v42  ;;  %v116_v47 = vand.u32 127, %v90_v38 }
  0x49   :  { %757 = vmatprep.mubr.bf16.mxu0 %v6609_v0  ;;  %798 = vmatprep.mubr.bf16.mxu1 %v6609_v0 }
  0x4a   :  { %vm4977_vm4 = vcmp.lt.s32.totalorder %v116_v47, 32 }
  0x4b   :  { %740 = vmatpush1.bf16.msra.mxu0 %v4842_v43  ;;  %781 = vmatpush1.bf16.msra.mxu1 %v4844_v44 }
  0x4c   :  { %841 = vmatprep.subr.bf16.mxu0 %v4735_v10  ;;  %882 = vmatprep.subr.bf16.mxu1 %v4737_v11 }
  0x4e   :  { %758 = vmatmul.mubr.bf16.vlgmr.msra.gmra.mxu0 %v6609_v0  ;;  %799 = vmatmul.mubr.bf16.vlgmr.msra.gmra.mxu1 %v6609_v0 }
  0x4f   :  { %842 = vmatpush1.bf16.msra.mxu0 %v4739_v12  ;;  %883 = vmatpush1.bf16.msra.mxu1 %v4741_v13 }
  0x50   :  { %843 = vmatprep.subr.bf16.mxu0 %v4744_v14  ;;  %884 = vmatprep.subr.bf16.mxu1 %v4747_v15 }
  0x51   :  { %873 = vmatprep.mubr.bf16.mxu0 %v6609_v0  ;;  %914 = vmatprep.mubr.bf16.mxu1 %v6609_v0 }
  0x53   :  { %844 = vmatpush1.bf16.msra.mxu0 %v4751_v16  ;;  %885 = vmatpush1.bf16.msra.mxu1 %v4755_v17 }
  0x54   :  { %845 = vmatprep.subr.bf16.mxu0 %v4759_v18  ;;  %886 = vmatprep.subr.bf16.mxu1 %v4766_v20 }
  0x57   :  { %846 = vmatpush1.bf16.msra.mxu0 %v4768_v21  ;;  %887 = vmatpush1.bf16.msra.mxu1 %v4772_v22 }
  0x58   :  { %847 = vmatprep.subr.bf16.mxu0 %v4776_v23  ;;  %888 = vmatprep.subr.bf16.mxu1 %v4778_v24 }
  0x5b   :  { %848 = vmatpush1.bf16.msra.mxu0 %v4782_v25  ;;  %889 = vmatpush1.bf16.msra.mxu1 %v4786_v26 }
  0x5c   :  { %849 = vmatprep.subr.bf16.mxu0 %v4790_v27  ;;  %890 = vmatprep.subr.bf16.mxu1 %v4792_v28 }
  0x5f   :  { %850 = vmatpush1.bf16.msra.mxu0 %v4799_v30  ;;  %891 = vmatpush1.bf16.msra.mxu1 %v4801_v31 }
  0x60   :  { %851 = vmatprep.subr.bf16.mxu0 %v4805_v32  ;;  %892 = vmatprep.subr.bf16.mxu1 %v4809_v33 }
  0x63   :  { %852 = vmatpush1.bf16.msra.mxu0 %v4813_v34  ;;  %893 = vmatpush1.bf16.msra.mxu1 %v4815_v35 }
  0x64   :  { %853 = vmatprep.subr.bf16.mxu0 %v4819_v36  ;;  %894 = vmatprep.subr.bf16.mxu1 %v4823_v37 }
  0x67   :  { %854 = vmatpush1.bf16.msra.mxu0 %v4830_v39  ;;  %895 = vmatpush1.bf16.msra.mxu1 %v4832_v40 }
  0x68   :  { %855 = vmatprep.subr.bf16.mxu0 %v4834_v41  ;;  %896 = vmatprep.subr.bf16.mxu1 %v4836_v42 }
  0x6b   :  { %856 = vmatpush1.bf16.msra.mxu0 %v4842_v43  ;;  %897 = vmatpush1.bf16.msra.mxu1 %v4844_v44 }
  0x6c   :  { %957 = vmatprep.subr.bf16.mxu0 %v4735_v10  ;;  %998 = vmatprep.subr.bf16.mxu1 %v4737_v11 }
  0xee   :  { %v4902_v51 = vpop.f32.mrf.mxu0  ;;  %v4904_v52 = vpop.f32.mrf.mxu1 }
  0xf0   :  { %v4911_v55 = vpop.f32.mrf.mxu0  ;;  %v4913_v56 = vpop.f32.mrf.mxu1 }
  0xf2   :  { %v325_v59 = vpop.f32.mrf.mxu0  ;;  %v398_v60 = vpop.f32.mrf.mxu1 }
  0xf3   :  { %v4928_v62 = vadd.f32 %v325_v59, %v4917_v57  ;;  %v4931_v63 = vadd.f32 %v398_v60, %v4908_v53 }
  0xf4   :  { %v327_v2 = vpop.f32.mrf.mxu0  ;;  %v400_v3 = vpop.f32.mrf.mxu1 }
  0xf5   :  { %6707 = vst [vmem:[#allocation15_spill] sm:$0xff] %v4931_v63  ;;  %v4936_v4 = vadd.f32 %v327_v2, %v4925_v61  ;;  %v4939_v5 = vadd.f32 %v400_v3, %v4921_v58 }
  0xf6   :  { %v331_v6 = vpop.f32.mrf.mxu0  ;;  %v404_v7 = vpop.f32.mrf.mxu1 }
  0xf7   :  { %6709 = vst [vmem:[#allocation17_spill] sm:$0xff] %v4936_v4  ;;  %6710 = vst [vmem:[#allocation18_spill] sm:$0xff] %v4939_v5  ;;  %v332_v8 = vadd.f32 %v331_v6, %v4917_v57  ;;  %v4943_v9 = vadd.f32 %v404_v7, %v4908_v53 }
  0xf8   :  { %v333_v45 = vpop.f32.mrf.mxu0  ;;  %v406_v50 = vpop.f32.mrf.mxu1 }
  0xf9   :  { %6711 = vst [vmem:[#allocation19_spill] sm:$0xff] %v4943_v9  ;;  %v4949_v59 = vadd.f32 %v333_v45, %v4925_v61  ;;  %v4952_v60 = vadd.f32 %v406_v50, %v4921_v58 }
  0xfa   :  { %v335_v2 = vpop.f32.mrf.mxu0  ;;  %v408_v3 = vpop.f32.mrf.mxu1 }
  0xfb   :  { %v336_v6 = vadd.f32 %v335_v2, %v4917_v57  ;;  %v4956_v7 = vadd.f32 %v408_v3, %v4908_v53 }
  0xfc   :  { %v337_v48 = vpop.f32.mrf.mxu0  ;;  %v410_v0 = vpop.f32.mrf.mxu1 }
  0xfd   :  { %6712 = vst [vmem:[#allocation20_spill] sm:$0xff] %v4956_v7  ;;  %v4959_v46 = vadd.f32 %v337_v48, %v4925_v61  ;;  %v4962_v45 = vadd.f32 %v410_v0, %v4921_v58 }
  0xfe   :  { %v341_v50 = vpop.f32.mrf.mxu0  ;;  %v414_v11 = vpop.f32.mrf.mxu1 }
  0xff   :  { %6713 = vst [vmem:[#allocation21_spill] sm:$0xff] %v4959_v46  ;;  %6714 = vst [vmem:[#allocation22_spill] sm:$0xff] %v4962_v45  ;;  %v342_v2 = vadd.f32 %v341_v50, %v4917_v57  ;;  %v4967_v3 = vadd.f32 %v414_v11, %v4908_v53  ;;  %v322_v45 = vadd.f32 %v4902_v51, %v4917_v57 }
 0x100   :  { %v343_v48 = vpop.f32.mrf.mxu0  ;;  %v416_v38 = vpop.f32.mrf.mxu1 }
 0x101   :  { %6715 = vst [vmem:[#allocation23_spill] sm:$0xff] %v4967_v3  ;;  %v4982_v10 = vadd.f32 %v343_v48, %v4925_v61  ;;  %v4985_v11 = vadd.f32 %v416_v38, %v4921_v58  ;;  %v4989_v49 = vsel %vm139_vm1, %v336_v6, %v342_v2  ;;  %v4997_v44 = vsel %vm139_vm1, %v342_v2, %v336_v6 }
 0x102   :  { %6724 = vst [vmem:[#allocation26_spill] sm:$0xff] %v4989_v49  ;;  %v345_v54 = vpop.f32.mrf.mxu0  ;;  %v418_v50 = vpop.f32.mrf.mxu1  ;;  %6725 = vst [vmem:[#allocation27_spill] sm:$0xff] %v4997_v44 }
 0x103   :  { %6722 = vst [vmem:[#allocation24_spill] sm:$0xff] %v4982_v10  ;;  %6723 = vst [vmem:[#allocation25_spill] sm:$0xff] %v4985_v11  ;;  %v346_v38 = vadd.f32 %v345_v54, %v4917_v57  ;;  %v5005_v49 = vadd.f32 %v418_v50, %v4908_v53 }
 0x104   :  { %v347_v2 = vpop.f32.mrf.mxu0  ;;  %v420_v44 = vpop.f32.mrf.mxu1 }
 0x105   :  { %6726 = vst [vmem:[#allocation28_spill] sm:$0xff] %v5005_v49  ;;  %v5024_v48 = vadd.f32 %v347_v2, %v4925_v61  ;;  %v5027_v47 = vadd.f32 %v420_v44, %v4921_v58  ;;  %v5031_v6 = vsel %vm139_vm1, %v332_v8, %v346_v38  ;;  %v5039_v50 = vsel %vm139_vm1, %v346_v38, %v332_v8 }
 0x106   :  { %v351_v3 = vpop.f32.mrf.mxu0  ;;  %v424_v7 = vpop.f32.mrf.mxu1  ;;  %6728 = vst [vmem:[#allocation30_spill] sm:$0xff] %v5039_v50 }
 0x107   :  { %6727 = vst [vmem:[#allocation29_spill] sm:$0xff] %v5027_v47  ;;  %v352_v2 = vadd.f32 %v351_v3, %v4917_v57  ;;  %v5047_v11 = vadd.f32 %v424_v7, %v4908_v53 }
 0x108   :  { %v353_v38 = vpop.f32.mrf.mxu0  ;;  %v426_v50 = vpop.f32.mrf.mxu1 }
 0x109   :  { %6729 = vst [vmem:[#allocation31_spill] sm:$0xff] %v5047_v11  ;;  %v5066_v44 = vadd.f32 %v353_v38, %v4925_v61  ;;  %v5069_v54 = vadd.f32 %v426_v50, %v4921_v58  ;;  %v5074_v8 = vsel %vm139_vm1, %v4928_v62, %v352_v2  ;;  %v5085_v50 = vsel %vm139_vm1, %v352_v2, %v4928_v62 }
 0x10a   :  { %v355_v7 = vpop.f32.mrf.mxu0  ;;  %v428_v10 = vpop.f32.mrf.mxu1  ;;  %6732 = vst [vmem:[#allocation34_spill] sm:$0xff] %v5085_v50  ;;  %v5105_v2 = vadd.f32 %v4904_v52, %v4908_v53 }
 0x10b   :  { %6730 = vst [vmem:[#allocation32_spill] sm:$0xff] %v5066_v44  ;;  %6731 = vst [vmem:[#allocation33_spill] sm:$0xff] %v5069_v54  ;;  %v356_v46 = vadd.f32 %v355_v7, %v4917_v57  ;;  %v5093_v49 = vadd.f32 %v428_v10, %v4908_v53  ;;  %v5117_v7 = vadd.f32 %v4911_v55, %v4925_v61 }
 0x10c   :  { %6734 = vst [vmem:[#allocation36_spill] sm:$0xff] %v5105_v2  ;;  %v357_v38 = vpop.f32.mrf.mxu0  ;;  %v430_v3 = vpop.f32.mrf.mxu1  ;;  %v5129_v10 = vadd.f32 %v4913_v56, %v4921_v58 }
 0x10d   :  { %6733 = vst [vmem:[#allocation35_spill] sm:$0xff] %v5093_v49  ;;  %6735 = vst [vmem:[#allocation37_spill] sm:$0xff] %v5117_v7  ;;  %v5120_v62 = vadd.f32 %v357_v38, %v4925_v61  ;;  %v5123_v52 = vadd.f32 %v430_v3, %v4921_v58  ;;  %v473_v53 = vsel %vm139_vm1, %v322_v45, %v356_v46 }
 0x10e   :  { %6738 = vst [vmem:[#allocation40_spill] sm:$0xff] %v5129_v10  ;;  %v759_v51 = vpop.f32.mrf.mxu0  ;;  %v800_v50 = vpop.f32.mrf.mxu1  ;;  %v5133_v57 = vsel %vm139_vm1, %v356_v46, %v322_v45  ;;  %v475_v46 = vsel %vm4973_vm3, %v5105_v2, %v5093_v49 }
 0x10f   :  { %6736 = vst [vmem:[#allocation38_spill] sm:$0xff] %v5120_v62  ;;  %6737 = vst [vmem:[#allocation39_spill] sm:$0xff] %v5123_v52  ;;  %v807_v61 = vadd.f32 %v759_v51, %v473_v53  ;;  %v474_v3 = vsel %vm4969_vm2, %v5117_v7, %v5120_v62  ;;  %v476_v47 = vsel %vm4977_vm4, %v5129_v10, %v5123_v52 }
 0x110   :  { %6739 = vst [vmem:[#allocation41_spill] sm:$0xff] %v5133_v57  ;;  %v761_v38 = vpop.f32.mrf.mxu0  ;;  %v802_v56 = vpop.f32.mrf.mxu1 }
 0x111   :  { %v3817_v45 = vmul.f32 -1.442695, %v807_v61  ;;  %v808_v55 = vadd.f32 %v761_v38, %v474_v3  ;;  %v810_v58 = vadd.f32 %v802_v56, %v476_v47  ;;  %v809_v38 = vadd.f32 %v800_v50, %v475_v46 }
 0x112   :  { %v763_v51 = vpop.f32.mrf.mxu0  ;;  %v804_v53 = vpop.f32.mrf.mxu1 }
 0x113   :  { %4214 = vpow2.f32 %v3817_v45  ;;  %v3818_v57 = vmul.f32 -1.442695, %v808_v55  ;;  %v3819_v61 = vmul.f32 -1.442695, %v810_v58 }
 0x114   :  { %v764_v1 = vpop.f32.mrf.mxu0  ;;  %v805_v9 = vpop.f32.mrf.mxu1 }
 0x115   :  { %4216 = vpow2.f32 %v3818_v57 }
 0x116   :  { %4218 = vpow2.f32 %v3819_v61 }
 0x120   :  { %v4215_v3 = vpop.eup %4214 }
 0x121   :  { %v814_v51 = vadd.f32 1.0, %v4215_v3  ;;  %v6742_v3 = vld [vmem:[#allocation13_spill] sm:$0xff] }
 0x122   :  { %v4217_v45 = vpop.eup %4216 }
 0x123   :  { %4220 = vrcp.f32 %v814_v51  ;;  %v820_v1 = vadd.f32 1.0, %v4217_v45  ;;  %v4219_v9 = vpop.eup %4218  ;;  %v6744_v51 = vld [vmem:[#allocation12_spill] sm:$0xff] }
 0x124   :  { %4222 = vtanh.f32 %v809_v38  ;;  %v827_v47 = vadd.f32 1.0, %v4219_v9  ;;  %v6743_v38 = vld [vmem:[#allocation11_spill] sm:$0xff] }
 0x125   :  { %4224 = vrcp.f32 %v820_v1 }
 0x126   :  { %4226 = vrcp.f32 %v827_v47  ;;  %v6745_v47 = vsel %vm4969_vm2, %v4936_v4, %v5066_v44 }
 0x130   :  { %v4221_v57 = vpop.eup %4220 }
 0x131   :  { %v4223_v55 = vpop.eup %4222 }
 0x132   :  { %v4225_v53 = vpop.eup %4224  ;;  %v831_v10 = vmul.f32 %v4223_v55, %v4221_v57 }
 0x133   :  { %v830_v56 = vmul.f32 0.0, %v4225_v53  ;;  %v4227_v50 = vpop.eup %4226 }
 0x135   :  { %v5159_v52 = vadd.f32 %v831_v10, %v830_v56  ;;  %v6741_v10 = vmov 0  }
 0x137   :  { %4228 = vtanh.f32 %v5159_v52 }
 0x144   :  { %v4229_v58 = vpop.eup %4228 }
 0x145   :  { %v5162_v46 = vmul.f32 %v4229_v58, %v4227_v50 }
 0x147   :  { %6740 = vst [vmem:[#allocation42_spill] sm:$0xff] %v5162_v46  ;;  %v836_v61 = vpack.c.bf16 %v5162_v46, %v5162_v46 }
 0x149   :  { %874 = vmatmul.mubr.bf16.vlgmr.msra.gmra.mxu0 %v836_v61  ;;  %915 = vmatmul.mubr.bf16.vlgmr.msra.gmra.mxu1 %v836_v61 }
 0x14a   :  { %958 = vmatpush1.bf16.msra.mxu0 %v4739_v12  ;;  %999 = vmatpush1.bf16.msra.mxu1 %v4741_v13 }
 0x14b   :  { %959 = vmatprep.subr.bf16.mxu0 %v4744_v14  ;;  %1000 = vmatprep.subr.bf16.mxu1 %v4747_v15 }
 0x14c   :  { %989 = vmatprep.mubr.bf16.mxu0 %v6741_v10  ;;  %1030 = vmatprep.mubr.bf16.mxu1 %v6741_v10 }
 0x14e   :  { %960 = vmatpush1.bf16.msra.mxu0 %v4751_v16  ;;  %1001 = vmatpush1.bf16.msra.mxu1 %v4755_v17 }
 0x14f   :  { %961 = vmatprep.subr.bf16.mxu0 %v4759_v18  ;;  %1002 = vmatprep.subr.bf16.mxu1 %v4766_v20 }
 0x152   :  { %962 = vmatpush1.bf16.msra.mxu0 %v4768_v21  ;;  %1003 = vmatpush1.bf16.msra.mxu1 %v4772_v22 }
 0x153   :  { %963 = vmatprep.subr.bf16.mxu0 %v4776_v23  ;;  %1004 = vmatprep.subr.bf16.mxu1 %v4778_v24 }
 0x156   :  { %964 = vmatpush1.bf16.msra.mxu0 %v4782_v25  ;;  %1005 = vmatpush1.bf16.msra.mxu1 %v4786_v26 }
 0x157   :  { %965 = vmatprep.subr.bf16.mxu0 %v4790_v27  ;;  %1006 = vmatprep.subr.bf16.mxu1 %v4792_v28 }
 0x15a   :  { %966 = vmatpush1.bf16.msra.mxu0 %v4799_v30  ;;  %1007 = vmatpush1.bf16.msra.mxu1 %v4801_v31 }
 0x15b   :  { %967 = vmatprep.subr.bf16.mxu0 %v4805_v32  ;;  %1008 = vmatprep.subr.bf16.mxu1 %v4809_v33 }
 0x15e   :  { %968 = vmatpush1.bf16.msra.mxu0 %v4813_v34  ;;  %1009 = vmatpush1.bf16.msra.mxu1 %v4815_v35 }
 0x15f   :  { %969 = vmatprep.subr.bf16.mxu0 %v4819_v36  ;;  %1010 = vmatprep.subr.bf16.mxu1 %v4823_v37 }
 0x162   :  { %970 = vmatpush1.bf16.msra.mxu0 %v4830_v39  ;;  %1011 = vmatpush1.bf16.msra.mxu1 %v4832_v40 }
 0x163   :  { %971 = vmatprep.subr.bf16.mxu0 %v4834_v41  ;;  %1012 = vmatprep.subr.bf16.mxu1 %v4836_v42 }
 0x166   :  { %972 = vmatpush1.bf16.msra.mxu0 %v4842_v43  ;;  %1013 = vmatpush1.bf16.msra.mxu1 %v6742_v3 }
 0x167   :  { %1073 = vmatprep.subr.bf16.mxu0 %v6743_v38  ;;  %1114 = vmatprep.subr.bf16.mxu1 %v6744_v51 }
 0x209   :  { %v875_v45 = vpop.f32.mrf.mxu0  ;;  %v916_v1 = vpop.f32.mrf.mxu1 }
 0x20a   :  { %v923_v9 = vadd.f32 %v875_v45, %v5074_v8  ;;  %v6746_v8 = vsel %vm4977_vm4, %v4939_v5, %v5069_v54 }
 0x20b   :  { %v877_v57 = vpop.f32.mrf.mxu0  ;;  %v918_v55 = vpop.f32.mrf.mxu1 }
 0x20c   :  { %v3820_v53 = vmul.f32 -1.442695, %v923_v9  ;;  %v924_v56 = vadd.f32 %v877_v57, %v6745_v47  ;;  %v926_v45 = vadd.f32 %v918_v55, %v6746_v8  ;;  %v6747_v9 = vsel %vm4973_vm3, %v4931_v63, %v5047_v11 }
 0x20d   :  { %v879_v50 = vpop.f32.mrf.mxu0  ;;  %v920_v58 = vpop.f32.mrf.mxu1  ;;  %v925_v2 = vadd.f32 %v916_v1, %v6747_v9 }
 0x20e   :  { %4230 = vpow2.f32 %v3820_v53  ;;  %v3821_v61 = vmul.f32 -1.442695, %v924_v56  ;;  %v3822_v57 = vmul.f32 -1.442695, %v926_v45 }
 0x20f   :  { %v880_v38 = vpop.f32.mrf.mxu0  ;;  %v921_v46 = vpop.f32.mrf.mxu1 }
 0x210   :  { %4232 = vpow2.f32 %v3821_v61 }
 0x211   :  { %4234 = vtanh.f32 %v925_v2 }
 0x212   :  { %4236 = vpow2.f32 %v3822_v57  ;;  %v6753_v57 = vld [vmem:[#allocation28_spill] sm:$0xff] }
 0x21b   :  { %v4231_v47 = vpop.eup %4230 }
 0x21c   :  { %v930_v50 = vadd.f32 1.0, %v4231_v47 }
 0x21d   :  { %v4233_v53 = vpop.eup %4232 }
 0x21e   :  { %4238 = vrcp.f32 %v930_v50  ;;  %v936_v46 = vadd.f32 1.0, %v4233_v53  ;;  %v4235_v56 = vpop.eup %4234 }
 0x21f   :  { %v4237_v58 = vpop.eup %4236 }
 0x220   :  { %4240 = vrcp.f32 %v936_v46  ;;  %v943_v8 = vadd.f32 1.0, %v4237_v58 }
 0x222   :  { %4242 = vrcp.f32 %v943_v8 }
 0x22b   :  { %v4239_v61 = vpop.eup %4238 }
 0x22c   :  { %v947_v38 = vmul.f32 %v4239_v61, %v4235_v56 }
 0x22d   :  { %v4241_v55 = vpop.eup %4240 }
 0x22e   :  { %v946_v49 = vmul.f32 %v4241_v55, %v5159_v52 }
 0x22f   :  { %v4243_v1 = vpop.eup %4242 }
 0x230   :  { %v5217_v7 = vadd.f32 %v947_v38, %v946_v49  ;;  %v6750_v49 = vld [vmem:[#allocation29_spill] sm:$0xff] }
 0x232   :  { %4244 = vtanh.f32 %v5217_v7 }
 0x23f   :  { %v4245_v2 = vpop.eup %4244 }
 0x240   :  { %v5220_v45 = vmul.f32 %v4245_v2, %v4243_v1 }
 0x242   :  { %6748 = vst [vmem:[#allocation13_spill] sm:$0xff] %v5220_v45  ;;  %v952_v9 = vpack.c.bf16 %v5220_v45, %v5220_v45 }
 0x244   :  { %990 = vmatmul.mubr.bf16.vlgmr.msra.gmra.mxu0 %v952_v9  ;;  %1031 = vmatmul.mubr.bf16.vlgmr.msra.gmra.mxu1 %v952_v9 }
 0x245   :  { %1074 = vmatpush1.bf16.msra.mxu0 %v4739_v12  ;;  %1115 = vmatpush1.bf16.msra.mxu1 %v4741_v13  ;;  %v5256_v12 = vld [vmem:[#allocation4 + $0xe4] ss:$16 sps:$4 sm:$0xff]  }
 0x246   :  { %1075 = vmatprep.subr.bf16.mxu0 %v4744_v14  ;;  %1116 = vmatprep.subr.bf16.mxu1 %v4747_v15 }
 0x247   :  { %1105 = vmatprep.mubr.bf16.mxu0 %v6741_v10  ;;  %1146 = vmatprep.mubr.bf16.mxu1 %v6741_v10 }
 0x249   :  { %1076 = vmatpush1.bf16.msra.mxu0 %v4751_v16  ;;  %1117 = vmatpush1.bf16.msra.mxu1 %v4755_v17 }
 0x24a   :  { %1077 = vmatprep.subr.bf16.mxu0 %v4759_v18  ;;  %1118 = vmatprep.subr.bf16.mxu1 %v4766_v20  ;;  %v6749_v20 = vsel %vm4969_vm2, %v4949_v59, %v5024_v48 }
 0x24d   :  { %1078 = vmatpush1.bf16.msra.mxu0 %v4768_v21  ;;  %1119 = vmatpush1.bf16.msra.mxu1 %v4772_v22 }
 0x24e   :  { %1079 = vmatprep.subr.bf16.mxu0 %v4776_v23  ;;  %1120 = vmatprep.subr.bf16.mxu1 %v4778_v24 }
 0x251   :  { %1080 = vmatpush1.bf16.msra.mxu0 %v4782_v25  ;;  %1121 = vmatpush1.bf16.msra.mxu1 %v4786_v26 }
 0x252   :  { %1081 = vmatprep.subr.bf16.mxu0 %v4790_v27  ;;  %1122 = vmatprep.subr.bf16.mxu1 %v4792_v28 }
 0x255   :  { %1082 = vmatpush1.bf16.msra.mxu0 %v4799_v30  ;;  %1123 = vmatpush1.bf16.msra.mxu1 %v4801_v31 }
 0x256   :  { %1083 = vmatprep.subr.bf16.mxu0 %v4805_v32  ;;  %1124 = vmatprep.subr.bf16.mxu1 %v4809_v33 }
 0x259   :  { %1084 = vmatpush1.bf16.msra.mxu0 %v4813_v34  ;;  %1125 = vmatpush1.bf16.msra.mxu1 %v4815_v35 }
 0x25a   :  { %1085 = vmatprep.subr.bf16.mxu0 %v4819_v36  ;;  %1126 = vmatprep.subr.bf16.mxu1 %v4823_v37 }
 0x25d   :  { %1086 = vmatpush1.bf16.msra.mxu0 %v4830_v39  ;;  %1127 = vmatpush1.bf16.msra.mxu1 %v4832_v40 }
 0x25e   :  { %1087 = vmatprep.subr.bf16.mxu0 %v4834_v41  ;;  %1128 = vmatprep.subr.bf16.mxu1 %v4836_v42 }
 0x261   :  { %1088 = vmatpush1.bf16.msra.mxu0 %v4842_v43  ;;  %1129 = vmatpush1.bf16.msra.mxu1 %v6742_v3 }
 0x262   :  { %1189 = vmatprep.subr.bf16.mxu0 %v5256_v12  ;;  %1230 = vmatprep.subr.bf16.mxu1 %v6744_v51  ;;  %v6752_v51 = vld [vmem:[#allocation19_spill] sm:$0xff] }
 0x263   :  { %v6754_v47 = vsel %vm4973_vm3, %v6752_v51, %v6753_v57 }
 0x304   :  { %v991_v13 = vpop.f32.mrf.mxu0  ;;  %v1032_v14 = vpop.f32.mrf.mxu1 }
 0x305   :  { %v1039_v15 = vadd.f32 %v991_v13, %v5031_v6  ;;  %v6751_v6 = vsel %vm4977_vm4, %v4952_v60, %v6750_v49  ;;  %v1041_v50 = vadd.f32 %v1032_v14, %v6754_v47  ;;  %v5316_v47 = vld [vmem:[#allocation4 + $0x84] ss:$16 sps:$4 sm:$0xff]  }
 0x306   :  { %v993_v16 = vpop.f32.mrf.mxu0  ;;  %v1034_v17 = vpop.f32.mrf.mxu1 }
 0x307   :  { %v3823_v18 = vmul.f32 -1.442695, %v1039_v15  ;;  %v1040_v21 = vadd.f32 %v993_v16, %v6749_v20  ;;  %v1042_v52 = vadd.f32 %v1034_v17, %v6751_v6  ;;  %v5284_v20 = vld [vmem:[#allocation4 + $0xe0] ss:$16 sps:$4 sm:$0xff]  }
 0x308   :  { %v995_v22 = vpop.f32.mrf.mxu0  ;;  %v1036_v23 = vpop.f32.mrf.mxu1  ;;  %v5310_v6 = vld [vmem:[#allocation4 + $0xa0] ss:$16 sps:$4 sm:$0xff]  }
 0x309   :  { %4246 = vpow2.f32 %v3823_v18  ;;  %v3824_v24 = vmul.f32 -1.442695, %v1040_v21  ;;  %v3825_v53 = vmul.f32 -1.442695, %v1042_v52  ;;  %v5287_v21 = vld [vmem:[#allocation4 + $0xe8] ss:$16 sps:$4 sm:$0xff]  }
 0x30a   :  { %v996_v25 = vpop.f32.mrf.mxu0  ;;  %v1037_v26 = vpop.f32.mrf.mxu1  ;;  %v5293_v22 = vld [vmem:[#allocation4 + $0xcc] ss:$16 sps:$4 sm:$0xff]   ;;  %v5298_v23 = vld [vmem:[#allocation4 + $0xc0] ss:$16 sps:$4 sm:$0xff]   ;;  %v5313_v52 = vld [vmem:[#allocation4 + $0xa8] ss:$16 sps:$4 sm:$0xff]  }
 0x30b   :  { %4248 = vpow2.f32 %v3824_v24  ;;  %v5301_v24 = vld [vmem:[#allocation4 + $0xc8] ss:$16 sps:$4 sm:$0xff]   ;;  %v5304_v25 = vld [vmem:[#allocation4 + $0xa4] ss:$16 sps:$4 sm:$0xff]   ;;  %v5307_v26 = vld [vmem:[#allocation4 + $0xac] ss:$16 sps:$4 sm:$0xff]  }
 0x30c   :  { %4250 = vtanh.f32 %v1041_v50  ;;  %v5319_v50 = vld [vmem:[#allocation4 + $0x8c] ss:$16 sps:$4 sm:$0xff]  }
 0x30d   :  { %4252 = vpow2.f32 %v3825_v53  ;;  %v5322_v53 = vld [vmem:[#allocation4 + $0x80] ss:$16 sps:$4 sm:$0xff]  }
 0x316   :  { %v4247_v46 = vpop.eup %4246 }
 0x317   :  { %v1046_v56 = vadd.f32 1.0, %v4247_v46  ;;  %v5325_v46 = vld [vmem:[#allocation4 + $0x88] ss:$16 sps:$4 sm:$0xff]  }
 0x318   :  { %v4249_v58 = vpop.eup %4248 }
 0x319   :  { %4254 = vrcp.f32 %v1046_v56  ;;  %v1052_v61 = vadd.f32 1.0, %v4249_v58  ;;  %v4251_v38 = vpop.eup %4250  ;;  %v6760_v58 = vld [vmem:[#allocation22_spill] sm:$0xff] }
 0x31a   :  { %v4253_v55 = vpop.eup %4252 }
 0x31b   :  { %4256 = vrcp.f32 %v1052_v61  ;;  %v1059_v9 = vadd.f32 1.0, %v4253_v55  ;;  %v6761_v61 = vld [vmem:[#allocation25_spill] sm:$0xff] }
 0x31d   :  { %4258 = vrcp.f32 %v1059_v9 }
 0x326   :  { %v4255_v8 = vpop.eup %4254 }
 0x327   :  { %v1063_v1 = vmul.f32 %v4255_v8, %v4251_v38  ;;  %v6762_v38 = vsel %vm4977_vm4, %v6760_v58, %v6761_v61  ;;  %v6763_v8 = vld [vmem:[#allocation20_spill] sm:$0xff] }
 0x328   :  { %v4257_v2 = vpop.eup %4256 }
 0x329   :  { %v1062_v13 = vmul.f32 %v4257_v2, %v5217_v7  ;;  %v5290_v7 = vld [vmem:[#allocation4 + $0xc4] ss:$16 sps:$4 sm:$0xff]  }
 0x32a   :  { %v4259_v14 = vpop.eup %4258 }
 0x32b   :  { %v5277_v15 = vadd.f32 %v1063_v1, %v1062_v13  ;;  %v6764_v1 = vld [vmem:[#allocation23_spill] sm:$0xff] }
 0x32c   :  { %v6765_v2 = vsel %vm4973_vm3, %v6763_v8, %v6764_v1 }
 0x32d   :  { %4260 = vtanh.f32 %v5277_v15 }
 0x33a   :  { %v4261_v16 = vpop.eup %4260 }
 0x33b   :  { %v5280_v17 = vmul.f32 %v4261_v16, %v4259_v14 }
 0x33d   :  { %6755 = vst [vmem:[#allocation11_spill] sm:$0xff] %v5280_v17  ;;  %v1068_v18 = vpack.c.bf16 %v5280_v17, %v5280_v17 }
 0x33f   :  { %1106 = vmatmul.mubr.bf16.vlgmr.msra.gmra.mxu0 %v1068_v18  ;;  %1147 = vmatmul.mubr.bf16.vlgmr.msra.gmra.mxu1 %v1068_v18 }
 0x340   :  { %1190 = vmatpush1.bf16.msra.mxu0 %v5284_v20  ;;  %1231 = vmatpush1.bf16.msra.mxu1 %v5287_v21 }
 0x341   :  { %1191 = vmatprep.subr.bf16.mxu0 %v5290_v7  ;;  %1232 = vmatprep.subr.bf16.mxu1 %v5293_v22 }
 0x342   :  { %1221 = vmatprep.mubr.bf16.mxu0 %v6741_v10  ;;  %1262 = vmatprep.mubr.bf16.mxu1 %v6741_v10 }
 0x344   :  { %1192 = vmatpush1.bf16.msra.mxu0 %v5298_v23  ;;  %1233 = vmatpush1.bf16.msra.mxu1 %v5301_v24 }
 0x345   :  { %1193 = vmatprep.subr.bf16.mxu0 %v5304_v25  ;;  %1234 = vmatprep.subr.bf16.mxu1 %v5307_v26 }
 0x348   :  { %1194 = vmatpush1.bf16.msra.mxu0 %v5310_v6  ;;  %1235 = vmatpush1.bf16.msra.mxu1 %v5313_v52 }
 0x349   :  { %1195 = vmatprep.subr.bf16.mxu0 %v5316_v47  ;;  %1236 = vmatprep.subr.bf16.mxu1 %v5319_v50 }
 0x34c   :  { %1196 = vmatpush1.bf16.msra.mxu0 %v5322_v53  ;;  %1237 = vmatpush1.bf16.msra.mxu1 %v5325_v46 }
 0x34d   :  { %1197 = vmatprep.subr.bf16.mxu0 %v4790_v27  ;;  %1238 = vmatprep.subr.bf16.mxu1 %v4792_v28  ;;  %v5345_v27 = vld [vmem:[#allocation4 + $0xec] ss:$16 sps:$4 sm:$0xff]  }
 0x350   :  { %1198 = vmatpush1.bf16.msra.mxu0 %v4799_v30  ;;  %1239 = vmatpush1.bf16.msra.mxu1 %v4801_v31  ;;  %v6756_v31 = vld [vmem:[#allocation26_spill] sm:$0xff] }
 0x351   :  { %1199 = vmatprep.subr.bf16.mxu0 %v4805_v32  ;;  %1240 = vmatprep.subr.bf16.mxu1 %v4809_v33 }
 0x354   :  { %1200 = vmatpush1.bf16.msra.mxu0 %v4813_v34  ;;  %1241 = vmatpush1.bf16.msra.mxu1 %v4815_v35 }
 0x355   :  { %1201 = vmatprep.subr.bf16.mxu0 %v4819_v36  ;;  %1242 = vmatprep.subr.bf16.mxu1 %v4823_v37  ;;  %v6757_v36 = vld [vmem:[#allocation21_spill] sm:$0xff]  ;;  %v6758_v37 = vld [vmem:[#allocation24_spill] sm:$0xff] }
 0x356   :  { %v6767_v63 = vsel %vm4969_vm2, %v6758_v37, %v6757_v36 }
 0x358   :  { %1202 = vmatpush1.bf16.msra.mxu0 %v4830_v39  ;;  %1243 = vmatpush1.bf16.msra.mxu1 %v4832_v40  ;;  %v6759_v39 = vsel %vm4969_vm2, %v6757_v36, %v6758_v37 }
 0x359   :  { %1203 = vmatprep.subr.bf16.mxu0 %v4834_v41  ;;  %1244 = vmatprep.subr.bf16.mxu1 %v4836_v42 }
 0x35c   :  { %1204 = vmatpush1.bf16.msra.mxu0 %v4842_v43  ;;  %1245 = vmatpush1.bf16.msra.mxu1 %v6742_v3 }
 0x35d   :  { %1305 = vmatprep.subr.bf16.mxu0 %v5256_v12  ;;  %1346 = vmatprep.subr.bf16.mxu1 %v5345_v27 }
 0x3ff   :  { %v1107_v28 = vpop.f32.mrf.mxu0  ;;  %v1148_v30 = vpop.f32.mrf.mxu1 }
 0x400   :  { %v1155_v32 = vadd.f32 %v1107_v28, %v6756_v31  ;;  %v1157_v9 = vadd.f32 %v1148_v30, %v6765_v2  ;;  %v5400_v2 = vld [vmem:[#allocation4 + $0x44] ss:$16 sps:$4 sm:$0xff]  }
 0x401   :  { %v1109_v33 = vpop.f32.mrf.mxu0  ;;  %v1150_v34 = vpop.f32.mrf.mxu1 }
 0x402   :  { %v3826_v35 = vmul.f32 -1.442695, %v1155_v32  ;;  %v1156_v40 = vadd.f32 %v1109_v33, %v6759_v39  ;;  %v1158_v55 = vadd.f32 %v1150_v34, %v6762_v38  ;;  %v5394_v38 = vld [vmem:[#allocation4 + $0x60] ss:$16 sps:$4 sm:$0xff]  }
 0x403   :  { %v1111_v41 = vpop.f32.mrf.mxu0  ;;  %v1152_v42 = vpop.f32.mrf.mxu1 }
 0x404   :  { %4262 = vpow2.f32 %v3826_v35  ;;  %v3827_v43 = vmul.f32 -1.442695, %v1156_v40  ;;  %v3828_v13 = vmul.f32 -1.442695, %v1158_v55  ;;  %v5397_v55 = vld [vmem:[#allocation4 + $0x68] ss:$16 sps:$4 sm:$0xff]  }
 0x405   :  { %v1112_v3 = vpop.f32.mrf.mxu0  ;;  %v1153_v56 = vpop.f32.mrf.mxu1 }
 0x406   :  { %4264 = vpow2.f32 %v3827_v43  ;;  %v5391_v56 = vld [vmem:[#allocation4 + $0x6c] ss:$16 sps:$4 sm:$0xff]  }
 0x407   :  { %4266 = vtanh.f32 %v1157_v9  ;;  %v5403_v9 = vld [vmem:[#allocation4 + $0x4c] ss:$16 sps:$4 sm:$0xff]  }
 0x408   :  { %4268 = vpow2.f32 %v3828_v13  ;;  %v5406_v13 = vld [vmem:[#allocation4 + $0x40] ss:$16 sps:$4 sm:$0xff]  }
 0x411   :  { %v4263_v14 = vpop.eup %4262 }
 0x412   :  { %v1162_v16 = vadd.f32 1.0, %v4263_v14  ;;  %v5409_v14 = vld [vmem:[#allocation4 + $0x48] ss:$16 sps:$4 sm:$0xff]  }
 0x413   :  { %v4265_v18 = vpop.eup %4264 }
 0x414   :  { %4270 = vrcp.f32 %v1162_v16  ;;  %v1168_v28 = vadd.f32 1.0, %v4265_v18  ;;  %v4267_v31 = vpop.eup %4266  ;;  %v5412_v16 = vld [vmem:[#allocation4 + $0x24] ss:$16 sps:$4 sm:$0xff]   ;;  %v5415_v18 = vld [vmem:[#allocation4 + $0x2c] ss:$16 sps:$4 sm:$0xff]  }
 0x415   :  { %v4269_v32 = vpop.eup %4268 }
 0x416   :  { %4272 = vrcp.f32 %v1168_v28  ;;  %v1175_v39 = vadd.f32 1.0, %v4269_v32  ;;  %v5418_v28 = vld [vmem:[#allocation4 + $0x20] ss:$16 sps:$4 sm:$0xff]   ;;  %v5424_v32 = vld [vmem:[#allocation4 + $0x4] ss:$16 sps:$4 sm:$0xff]  }
 0x418   :  { %4274 = vrcp.f32 %v1175_v39 }
 0x421   :  { %v4271_v33 = vpop.eup %4270 }
 0x422   :  { %v1179_v35 = vmul.f32 %v4271_v33, %v4267_v31  ;;  %v5421_v31 = vld [vmem:[#allocation4 + $0x28] ss:$16 sps:$4 sm:$0xff]   ;;  %v5427_v33 = vld [vmem:[#allocation4 + $0xc] ss:$16 sps:$4 sm:$0xff]  }
 0x423   :  { %v4273_v34 = vpop.eup %4272 }
 0x424   :  { %v1178_v40 = vmul.f32 %v4273_v34, %v5277_v15  ;;  %v5388_v15 = vld [vmem:[#allocation4 + $0x64] ss:$16 sps:$4 sm:$0xff]   ;;  %v5433_v34 = vld [vmem:[#allocation4 + $0x8] ss:$16 sps:$4 sm:$0xff]  }
 0x425   :  { %v4275_v30 = vpop.eup %4274 }
 0x426   :  { %v5365_v41 = vadd.f32 %v1179_v35, %v1178_v40  ;;  %v5430_v35 = vld [vmem:[#allocation4] ss:$16 sps:$4 sm:$0xff]  }
 0x428   :  { %4276 = vtanh.f32 %v5365_v41 }
 0x435   :  { %v4277_v42 = vpop.eup %4276 }
 0x436   :  { %v5368_v43 = vmul.f32 %v4277_v42, %v4275_v30  ;;  %v6766_v30 = vld [vmem:[#allocation27_spill] sm:$0xff] }
 0x438   :  { %v1184_v3 = vpack.c.bf16 %v5368_v43, %v5368_v43 }
 0x43a   :  { %1222 = vmatmul.mubr.bf16.vlgmr.msra.gmra.mxu0 %v1184_v3  ;;  %1263 = vmatmul.mubr.bf16.vlgmr.msra.gmra.mxu1 %v1184_v3 }
 0x43b   :  { %1306 = vmatpush1.bf16.msra.mxu0 %v5284_v20  ;;  %1347 = vmatpush1.bf16.msra.mxu1 %v5287_v21 }
 0x43c   :  { %1307 = vmatprep.subr.bf16.mxu0 %v5290_v7  ;;  %1348 = vmatprep.subr.bf16.mxu1 %v5293_v22 }
 0x43d   :  { %1337 = vmatprep.mubr.bf16.mxu0 %v6741_v10  ;;  %1378 = vmatprep.mubr.bf16.mxu1 %v6741_v10 }
 0x43f   :  { %1308 = vmatpush1.bf16.msra.mxu0 %v5298_v23  ;;  %1349 = vmatpush1.bf16.msra.mxu1 %v5301_v24 }
 0x440   :  { %1309 = vmatprep.subr.bf16.mxu0 %v5304_v25  ;;  %1350 = vmatprep.subr.bf16.mxu1 %v5307_v26 }
 0x443   :  { %1310 = vmatpush1.bf16.msra.mxu0 %v5310_v6  ;;  %1351 = vmatpush1.bf16.msra.mxu1 %v5313_v52 }
 0x444   :  { %1311 = vmatprep.subr.bf16.mxu0 %v5316_v47  ;;  %1352 = vmatprep.subr.bf16.mxu1 %v5319_v50 }
 0x447   :  { %1312 = vmatpush1.bf16.msra.mxu0 %v5322_v53  ;;  %1353 = vmatpush1.bf16.msra.mxu1 %v5325_v46 }
 0x448   :  { %1313 = vmatprep.subr.bf16.mxu0 %v5388_v15  ;;  %1354 = vmatprep.subr.bf16.mxu1 %v5391_v56 }
 0x44b   :  { %1314 = vmatpush1.bf16.msra.mxu0 %v5394_v38  ;;  %1355 = vmatpush1.bf16.msra.mxu1 %v5397_v55 }
 0x44c   :  { %1315 = vmatprep.subr.bf16.mxu0 %v5400_v2  ;;  %1356 = vmatprep.subr.bf16.mxu1 %v5403_v9 }
 0x44f   :  { %1316 = vmatpush1.bf16.msra.mxu0 %v5406_v13  ;;  %1357 = vmatpush1.bf16.msra.mxu1 %v5409_v14 }
 0x450   :  { %1317 = vmatprep.subr.bf16.mxu0 %v5412_v16  ;;  %1358 = vmatprep.subr.bf16.mxu1 %v5415_v18 }
 0x453   :  { %1318 = vmatpush1.bf16.msra.mxu0 %v5418_v28  ;;  %1359 = vmatpush1.bf16.msra.mxu1 %v5421_v31 }
 0x454   :  { %1319 = vmatprep.subr.bf16.mxu0 %v5424_v32  ;;  %1360 = vmatprep.subr.bf16.mxu1 %v5427_v33 }
 0x457   :  { %1320 = vmatpush1.bf16.msra.mxu0 %v5430_v35  ;;  %1361 = vmatpush1.bf16.msra.mxu1 %v5433_v34 }
 0x458   :  { %1421 = vmatprep.subr.bf16.mxu0 %v5256_v12  ;;  %1462 = vmatprep.subr.bf16.mxu1 %v5345_v27 }
 0x4fa   :  { %v1223_v39 = vpop.f32.mrf.mxu0  ;;  %v1264_v40 = vpop.f32.mrf.mxu1 }
 0x4fb   :  { %v1271_v42 = vadd.f32 %v1223_v39, %v6766_v30  ;;  %v6768_v39 = vsel %vm4977_vm4, %v6761_v61, %v6760_v58 }
 0x4fc   :  { %v1225_v3 = vpop.f32.mrf.mxu0  ;;  %v1266_v45 = vpop.f32.mrf.mxu1 }
 0x4fd   :  { %v3829_v62 = vmul.f32 -1.442695, %v1271_v42  ;;  %v1272_v11 = vadd.f32 %v1225_v3, %v6767_v63  ;;  %v1274_v30 = vadd.f32 %v1266_v45, %v6768_v39  ;;  %v6769_v42 = vsel %vm4973_vm3, %v6764_v1, %v6763_v8 }
 0x4fe   :  { %v1227_v5 = vpop.f32.mrf.mxu0  ;;  %v1268_v54 = vpop.f32.mrf.mxu1  ;;  %v1273_v36 = vadd.f32 %v1264_v40, %v6769_v42  ;;  %v6770_v42 = vld [vmem:[#allocation30_spill] sm:$0xff] }
 0x4ff   :  { %4278 = vpow2.f32 %v3829_v62  ;;  %v3830_v4 = vmul.f32 -1.442695, %v1272_v11  ;;  %v3831_v63 = vmul.f32 -1.442695, %v1274_v30 }
 0x500   :  { %v1228_v44 = vpop.f32.mrf.mxu0  ;;  %v1269_v17 = vpop.f32.mrf.mxu1 }
 0x501   :  { %4280 = vpow2.f32 %v3830_v4 }
 0x502   :  { %4282 = vtanh.f32 %v1273_v36 }
 0x503   :  { %4284 = vpow2.f32 %v3831_v63 }
 0x50c   :  { %v4279_v5 = vpop.eup %4278 }
 0x50d   :  { %v1278_v54 = vadd.f32 1.0, %v4279_v5 }
 0x50e   :  { %v4281_v11 = vpop.eup %4280 }
 0x50f   :  { %4286 = vrcp.f32 %v1278_v54  ;;  %v1284_v4 = vadd.f32 1.0, %v4281_v11  ;;  %v4283_v44 = vpop.eup %4282  ;;  %v6771_v11 = vsel %vm4969_vm2, %v5024_v48, %v4949_v59 }
 0x510   :  { %v4285_v62 = vpop.eup %4284 }
 0x511   :  { %4288 = vrcp.f32 %v1284_v4  ;;  %v1291_v58 = vadd.f32 1.0, %v4285_v62 }
 0x513   :  { %4290 = vrcp.f32 %v1291_v58  ;;  %v6773_v58 = vsel %vm4973_vm3, %v6753_v57, %v6752_v51 }
 0x51c   :  { %v4287_v17 = vpop.eup %4286 }
 0x51d   :  { %v1295_v37 = vmul.f32 %v4287_v17, %v4283_v44 }
 0x51e   :  { %v4289_v45 = vpop.eup %4288 }
 0x51f   :  { %v1294_v61 = vmul.f32 %v4289_v45, %v5365_v41 }
 0x520   :  { %v4291_v8 = vpop.eup %4290 }
 0x521   :  { %v5455_v3 = vadd.f32 %v1295_v37, %v1294_v61 }
 0x523   :  { %4292 = vtanh.f32 %v5455_v3 }
 0x530   :  { %v4293_v1 = vpop.eup %4292 }
 0x531   :  { %v5458_v40 = vmul.f32 %v4293_v1, %v4291_v8 }
 0x533   :  { %v1300_v39 = vpack.c.bf16 %v5458_v40, %v5458_v40 }
 0x535   :  { %1338 = vmatmul.mubr.bf16.vlgmr.msra.gmra.mxu0 %v1300_v39  ;;  %1379 = vmatmul.mubr.bf16.vlgmr.msra.gmra.mxu1 %v1300_v39 }
 0x536   :  { %1422 = vmatpush1.bf16.msra.mxu0 %v5284_v20  ;;  %1463 = vmatpush1.bf16.msra.mxu1 %v5287_v21 }
 0x537   :  { %1423 = vmatprep.subr.bf16.mxu0 %v5290_v7  ;;  %1464 = vmatprep.subr.bf16.mxu1 %v5293_v22 }
 0x538   :  { %1453 = vmatprep.mubr.bf16.mxu0 %v6741_v10  ;;  %1494 = vmatprep.mubr.bf16.mxu1 %v6741_v10 }
 0x53a   :  { %1424 = vmatpush1.bf16.msra.mxu0 %v5298_v23  ;;  %1465 = vmatpush1.bf16.msra.mxu1 %v5301_v24 }
 0x53b   :  { %1425 = vmatprep.subr.bf16.mxu0 %v5304_v25  ;;  %1466 = vmatprep.subr.bf16.mxu1 %v5307_v26 }
 0x53e   :  { %1426 = vmatpush1.bf16.msra.mxu0 %v5310_v6  ;;  %1467 = vmatpush1.bf16.msra.mxu1 %v5313_v52 }
 0x53f   :  { %1427 = vmatprep.subr.bf16.mxu0 %v5316_v47  ;;  %1468 = vmatprep.subr.bf16.mxu1 %v5319_v50 }
 0x542   :  { %1428 = vmatpush1.bf16.msra.mxu0 %v5322_v53  ;;  %1469 = vmatpush1.bf16.msra.mxu1 %v5325_v46 }
 0x543   :  { %1429 = vmatprep.subr.bf16.mxu0 %v5388_v15  ;;  %1470 = vmatprep.subr.bf16.mxu1 %v5391_v56 }
 0x546   :  { %1430 = vmatpush1.bf16.msra.mxu0 %v5394_v38  ;;  %1471 = vmatpush1.bf16.msra.mxu1 %v5397_v55 }
 0x547   :  { %1431 = vmatprep.subr.bf16.mxu0 %v5400_v2  ;;  %1472 = vmatprep.subr.bf16.mxu1 %v5403_v9 }
 0x54a   :  { %1432 = vmatpush1.bf16.msra.mxu0 %v5406_v13  ;;  %1473 = vmatpush1.bf16.msra.mxu1 %v5409_v14 }
 0x54b   :  { %1433 = vmatprep.subr.bf16.mxu0 %v5412_v16  ;;  %1474 = vmatprep.subr.bf16.mxu1 %v5415_v18 }
 0x54e   :  { %1434 = vmatpush1.bf16.msra.mxu0 %v5418_v28  ;;  %1475 = vmatpush1.bf16.msra.mxu1 %v5421_v31 }
 0x54f   :  { %1435 = vmatprep.subr.bf16.mxu0 %v5424_v32  ;;  %1476 = vmatprep.subr.bf16.mxu1 %v5427_v33 }
 0x552   :  { %1436 = vmatpush1.bf16.msra.mxu0 %v5430_v35  ;;  %1477 = vmatpush1.bf16.msra.mxu1 %v5433_v34 }
 0x553   :  { %1537 = vmatprep.subr.bf16.mxu0 %v5256_v12  ;;  %1578 = vmatprep.subr.bf16.mxu1 %v5345_v27  ;;  %v6772_v27 = vsel %vm4977_vm4, %v6750_v49, %v4952_v60 }
 0x5f5   :  { %v1339_v41 = vpop.f32.mrf.mxu0  ;;  %v1380_v30 = vpop.f32.mrf.mxu1 }
 0x5f6   :  { %v1387_v36 = vadd.f32 %v1339_v41, %v6770_v42  ;;  %v1389_v59 = vadd.f32 %v1380_v30, %v6773_v58 }
 0x5f7   :  { %v1341_v63 = vpop.f32.mrf.mxu0  ;;  %v1382_v5 = vpop.f32.mrf.mxu1 }
 0x5f8   :  { %v3832_v54 = vmul.f32 -1.442695, %v1387_v36  ;;  %v1388_v4 = vadd.f32 %v1341_v63, %v6771_v11  ;;  %v1390_v45 = vadd.f32 %v1382_v5, %v6772_v27 }
 0x5f9   :  { %v1343_v44 = vpop.f32.mrf.mxu0  ;;  %v1384_v62 = vpop.f32.mrf.mxu1 }
 0x5fa   :  { %4294 = vpow2.f32 %v3832_v54  ;;  %v3833_v17 = vmul.f32 -1.442695, %v1388_v4  ;;  %v3834_v48 = vmul.f32 -1.442695, %v1390_v45  ;;  %v1669_v4 = vsel %vm139_vm1, %v5368_v43, %v5458_v40  ;;  %v6775_v62 = vld [vmem:[#allocation11_spill] sm:$0xff] }
 0x5fb   :  { %v1344_v12 = vpop.f32.mrf.mxu0  ;;  %v1385_v37 = vpop.f32.mrf.mxu1 }
 0x5fc   :  { %4296 = vpow2.f32 %v3833_v17  ;;  %v1671_v12 = vsel %vm139_vm1, %v5458_v40, %v5368_v43 }
 0x5fd   :  { %4298 = vtanh.f32 %v1389_v59 }
 0x5fe   :  { %4300 = vpow2.f32 %v3834_v48 }
 0x607   :  { %v4295_v61 = vpop.eup %4294 }
 0x608   :  { %v1394_v8 = vadd.f32 1.0, %v4295_v61 }
 0x609   :  { %v4297_v1 = vpop.eup %4296 }
 0x60a   :  { %4302 = vrcp.f32 %v1394_v8  ;;  %v1400_v39 = vadd.f32 1.0, %v4297_v1  ;;  %v4299_v41 = vpop.eup %4298 }
 0x60b   :  { %v4301_v42 = vpop.eup %4300 }
 0x60c   :  { %4304 = vrcp.f32 %v1400_v39  ;;  %v1407_v63 = vadd.f32 1.0, %v4301_v42  ;;  %v4108_v42 = vld [vmem:[#allocation6 + $0xe4] ss:$16 sps:$4 sm:$0xff]  }
 0x60e   :  { %4306 = vrcp.f32 %v1407_v63  ;;  %v4114_v63 = vld [vmem:[#allocation6 + $0xc4] ss:$16 sps:$4 sm:$0xff]  }
 0x617   :  { %v4303_v36 = vpop.eup %4302 }
 0x618   :  { %v1411_v60 = vmul.f32 %v4303_v36, %v4299_v41  ;;  %v4111_v36 = vld [vmem:[#allocation6 + $0xec] ss:$16 sps:$4 sm:$0xff]  }
 0x619   :  { %v4305_v49 = vpop.eup %4304 }
 0x61a   :  { %v1410_v5 = vmul.f32 %v4305_v49, %v5455_v3  ;;  %v4109_v49 = vld [vmem:[#allocation6 + $0xe8] ss:$16 sps:$4 sm:$0xff]  }
 0x61b   :  { %v4307_v51 = vpop.eup %4306 }
 0x61c   :  { %v5513_v54 = vadd.f32 %v1411_v60, %v1410_v5  ;;  %v4106_v60 = vld [vmem:[#allocation6 + $0xe0] ss:$16 sps:$4 sm:$0xff]   ;;  %v4117_v5 = vld [vmem:[#allocation6 + $0xcc] ss:$16 sps:$4 sm:$0xff]  }
 0x61e   :  { %4308 = vtanh.f32 %v5513_v54 }
 0x62b   :  { %v4309_v57 = vpop.eup %4308 }
 0x62c   :  { %v1414_v30 = vmul.f32 %v4309_v57, %v4307_v51  ;;  %v4115_v51 = vld [vmem:[#allocation6 + $0xc8] ss:$16 sps:$4 sm:$0xff]   ;;  %v4120_v57 = vld [vmem:[#allocation6 + $0xa4] ss:$16 sps:$4 sm:$0xff]  }
 0x62e   :  { %v1416_v44 = vpack.c.bf16 %v1414_v30, %v1414_v30  ;;  %v1663_v17 = vsel %vm139_vm1, %v6775_v62, %v1414_v30  ;;  %v1665_v3 = vsel %vm139_vm1, %v1414_v30, %v6775_v62  ;;  %v4123_v30 = vld [vmem:[#allocation6 + $0xac] ss:$16 sps:$4 sm:$0xff]   ;;  %v4126_v62 = vld [vmem:[#allocation6 + $0x84] ss:$16 sps:$4 sm:$0xff]  }
 0x62f   :  { %v5530_v37 = vpack.c.bf16 %v1669_v4, %v1663_v17  ;;  %v5532_v27 = vpack.c.bf16 %v1665_v3, %v1671_v12  ;;  %v4118_v4 = vld [vmem:[#allocation6 + $0xa0] ss:$16 sps:$4 sm:$0xff]   ;;  %v4129_v17 = vld [vmem:[#allocation6 + $0x8c] ss:$16 sps:$4 sm:$0xff]   ;;  %v4127_v12 = vld [vmem:[#allocation6 + $0x88] ss:$16 sps:$4 sm:$0xff]  }
 0x630   :  { %1454 = vmatmul.mubr.bf16.vlgmr.msra.gmra.mxu0 %v1416_v44  ;;  %1495 = vmatmul.mubr.bf16.vlgmr.msra.gmra.mxu1 %v1416_v44  ;;  %v4121_v44 = vld [vmem:[#allocation6 + $0xa8] ss:$16 sps:$4 sm:$0xff]   ;;  %v4124_v3 = vld [vmem:[#allocation6 + $0x80] ss:$16 sps:$4 sm:$0xff]  }
 0x631   :  { %1538 = vmatpush1.bf16.msra.mxu0 %v5284_v20  ;;  %1579 = vmatpush1.bf16.msra.mxu1 %v5287_v21 }
 0x632   :  { %1539 = vmatprep.subr.bf16.mxu0 %v5290_v7  ;;  %1580 = vmatprep.subr.bf16.mxu1 %v5293_v22  ;;  %v6776_v7 = vld [vmem:[#allocation34_spill] sm:$0xff] }
 0x633   :  { %1569 = vmatprep.mubr.bf16.mxu0 %v6741_v10  ;;  %1610 = vmatprep.mubr.bf16.mxu1 %v6741_v10 }
 0x635   :  { %1540 = vmatpush1.bf16.msra.mxu0 %v5298_v23  ;;  %1581 = vmatpush1.bf16.msra.mxu1 %v5301_v24 }
 0x636   :  { %1541 = vmatprep.subr.bf16.mxu0 %v5304_v25  ;;  %1582 = vmatprep.subr.bf16.mxu1 %v5307_v26  ;;  %v6777_v26 = vld [vmem:[#allocation32_spill] sm:$0xff] }
 0x639   :  { %1542 = vmatpush1.bf16.msra.mxu0 %v5310_v6  ;;  %1583 = vmatpush1.bf16.msra.mxu1 %v5313_v52  ;;  %v6778_v6 = vld [vmem:[#allocation17_spill] sm:$0xff] }
 0x63a   :  { %1543 = vmatprep.subr.bf16.mxu0 %v5316_v47  ;;  %1584 = vmatprep.subr.bf16.mxu1 %v5319_v50  ;;  %v6779_v52 = vsel %vm4969_vm2, %v6777_v26, %v6778_v6  ;;  %v4139_v26 = vld [vmem:[#allocation6 + $0x48] ss:$16 sps:$4 sm:$0xff]   ;;  %v4144_v6 = vld [vmem:[#allocation6 + $0x24] ss:$16 sps:$4 sm:$0xff]  }
 0x63d   :  { %1544 = vmatpush1.bf16.msra.mxu0 %v5322_v53  ;;  %1585 = vmatpush1.bf16.msra.mxu1 %v5325_v46 }
 0x63e   :  { %1545 = vmatprep.subr.bf16.mxu0 %v5388_v15  ;;  %1586 = vmatprep.subr.bf16.mxu1 %v5391_v56  ;;  %v6780_v56 = vld [vmem:[#allocation33_spill] sm:$0xff] }
 0x641   :  { %1546 = vmatpush1.bf16.msra.mxu0 %v5394_v38  ;;  %1587 = vmatpush1.bf16.msra.mxu1 %v5397_v55  ;;  %v6781_v38 = vld [vmem:[#allocation18_spill] sm:$0xff] }
 0x642   :  { %1547 = vmatprep.subr.bf16.mxu0 %v5400_v2  ;;  %1588 = vmatprep.subr.bf16.mxu1 %v5403_v9  ;;  %v6782_v55 = vsel %vm4977_vm4, %v6780_v56, %v6781_v38  ;;  %v6783_v9 = vld [vmem:[#allocation31_spill] sm:$0xff]  ;;  %v5594_v38 = vld [vmem:[#allocation8 + $0xec] ss:$16 sps:$4 sm:$0xff]  }
 0x643   :  { %v5592_v56 = vld [vmem:[#allocation8 + $0xe4] ss:$16 sps:$4 sm:$0xff]   ;;  %6787 = vst [vmem:[#allocation29_spill] sm:$0xff] %v5594_v38 }
 0x644   :  { %6786 = vst [vmem:[#allocation12_spill] sm:$0xff] %v5592_v56 }
 0x645   :  { %1548 = vmatpush1.bf16.msra.mxu0 %v5406_v13  ;;  %1589 = vmatpush1.bf16.msra.mxu1 %v5409_v14  ;;  %v6784_v13 = vld [vmem:[#allocation15_spill] sm:$0xff] }
 0x646   :  { %1549 = vmatprep.subr.bf16.mxu0 %v5412_v16  ;;  %1590 = vmatprep.subr.bf16.mxu1 %v5415_v18  ;;  %v6785_v14 = vsel %vm4973_vm3, %v6783_v9, %v6784_v13  ;;  %v6788_v9 = vld [vmem:[#allocation41_spill] sm:$0xff] }
 0x649   :  { %1550 = vmatpush1.bf16.msra.mxu0 %v5418_v28  ;;  %1591 = vmatpush1.bf16.msra.mxu1 %v5421_v31 }
 0x64a   :  { %1551 = vmatprep.subr.bf16.mxu0 %v5424_v32  ;;  %1592 = vmatprep.subr.bf16.mxu1 %v5427_v33 }
 0x64d   :  { %1552 = vmatpush1.bf16.msra.mxu0 %v5430_v35  ;;  %1593 = vmatpush1.bf16.msra.mxu1 %v5433_v34 }
 0x64e   :  { %1931 = vmatprep.subr.bf16.mxu0 %v4108_v42  ;;  %2004 = vmatprep.subr.bf16.mxu1 %v4111_v36  ;;  %v6796_v42 = vld [vmem:[#allocation36_spill] sm:$0xff] }
 0x6f0   :  { %v1455_v20 = vpop.f32.mrf.mxu0  ;;  %v1496_v21 = vpop.f32.mrf.mxu1 }
 0x6f1   :  { %v1503_v22 = vadd.f32 %v1455_v20, %v6776_v7  ;;  %v1505_v16 = vadd.f32 %v1496_v21, %v6785_v14  ;;  %v4132_v20 = vld [vmem:[#allocation6 + $0x64] ss:$16 sps:$4 sm:$0xff]   ;;  %v4130_v21 = vld [vmem:[#allocation6 + $0x60] ss:$16 sps:$4 sm:$0xff]   ;;  %v4133_v7 = vld [vmem:[#allocation6 + $0x68] ss:$16 sps:$4 sm:$0xff]  }
 0x6f2   :  { %v1457_v23 = vpop.f32.mrf.mxu0  ;;  %v1498_v24 = vpop.f32.mrf.mxu1 }
 0x6f3   :  { %v3835_v25 = vmul.f32 -1.442695, %v1503_v22  ;;  %v1504_v47 = vadd.f32 %v1457_v23, %v6779_v52  ;;  %v1506_v2 = vadd.f32 %v1498_v24, %v6782_v55  ;;  %v4135_v22 = vld [vmem:[#allocation6 + $0x6c] ss:$16 sps:$4 sm:$0xff]   ;;  %v4138_v23 = vld [vmem:[#allocation6 + $0x44] ss:$16 sps:$4 sm:$0xff]  }
 0x6f4   :  { %v1459_v50 = vpop.f32.mrf.mxu0  ;;  %v1500_v53 = vpop.f32.mrf.mxu1  ;;  %v4141_v24 = vld [vmem:[#allocation6 + $0x4c] ss:$16 sps:$4 sm:$0xff]  }
 0x6f5   :  { %4310 = vpow2.f32 %v3835_v25  ;;  %v3836_v46 = vmul.f32 -1.442695, %v1504_v47  ;;  %v3837_v18 = vmul.f32 -1.442695, %v1506_v2  ;;  %v4136_v25 = vld [vmem:[#allocation6 + $0x40] ss:$16 sps:$4 sm:$0xff]  }
 0x6f6   :  { %v1460_v43 = vpop.f32.mrf.mxu0  ;;  %v1501_v15 = vpop.f32.mrf.mxu1  ;;  %v4147_v52 = vld [vmem:[#allocation6 + $0x2c] ss:$16 sps:$4 sm:$0xff]   ;;  %v4142_v47 = vld [vmem:[#allocation6 + $0x20] ss:$16 sps:$4 sm:$0xff]   ;;  %v4145_v50 = vld [vmem:[#allocation6 + $0x28] ss:$16 sps:$4 sm:$0xff]  }
 0x6f7   :  { %4312 = vpow2.f32 %v3836_v46  ;;  %v4150_v53 = vld [vmem:[#allocation6 + $0x4] ss:$16 sps:$4 sm:$0xff]   ;;  %v4153_v46 = vld [vmem:[#allocation6 + $0xc] ss:$16 sps:$4 sm:$0xff]   ;;  %v4148_v43 = vld [vmem:[#allocation6] ss:$16 sps:$4 sm:$0xff]  }
 0x6f8   :  { %4314 = vtanh.f32 %v1505_v16  ;;  %v4151_v15 = vld [vmem:[#allocation6 + $0x8] ss:$16 sps:$4 sm:$0xff]  }
 0x6f9   :  { %4316 = vpow2.f32 %v3837_v18 }
 0x702   :  { %v4311_v28 = vpop.eup %4310 }
 0x703   :  { %v1510_v31 = vadd.f32 1.0, %v4311_v28  ;;  %v6789_v28 = vld [vmem:[#allocation38_spill] sm:$0xff] }
 0x704   :  { %v4313_v32 = vpop.eup %4312 }
 0x705   :  { %4318 = vrcp.f32 %v1510_v31  ;;  %v1516_v33 = vadd.f32 1.0, %v4313_v32  ;;  %v4315_v35 = vpop.eup %4314  ;;  %v6790_v31 = vld [vmem:[#allocation37_spill] sm:$0xff] }
 0x706   :  { %v4317_v34 = vpop.eup %4316  ;;  %v6791_v32 = vsel %vm4969_vm2, %v6789_v28, %v6790_v31  ;;  %v5679_v28 = vld [vmem:[#allocation8 + $0x68] ss:$16 sps:$4 sm:$0xff]   ;;  %v5683_v31 = vld [vmem:[#allocation8 + $0x44] ss:$16 sps:$4 sm:$0xff]  }
 0x707   :  { %4320 = vrcp.f32 %v1516_v33  ;;  %v1523_v59 = vadd.f32 1.0, %v4317_v34 }
 0x709   :  { %4322 = vrcp.f32 %v1523_v59  ;;  %v6792_v59 = vld [vmem:[#allocation39_spill] sm:$0xff] }
 0x712   :  { %v4319_v40 = vpop.eup %4318 }
 0x713   :  { %v1527_v45 = vmul.f32 %v4319_v40, %v4315_v35 }
 0x714   :  { %v4321_v58 = vpop.eup %4320 }
 0x715   :  { %v1526_v48 = vmul.f32 %v4321_v58, %v5513_v54  ;;  %v4112_v54 = vld [vmem:[#allocation6 + $0xc0] ss:$16 sps:$4 sm:$0xff]  }
 0x716   :  { %v4323_v8 = vpop.eup %4322 }
 0x717   :  { %v5583_v61 = vadd.f32 %v1527_v45, %v1526_v48  ;;  %v6793_v48 = vld [vmem:[#allocation40_spill] sm:$0xff] }
 0x719   :  { %4324 = vtanh.f32 %v5583_v61 }
 0x726   :  { %v4325_v1 = vpop.eup %4324 }
 0x727   :  { %v5586_v39 = vmul.f32 %v4325_v1, %v4323_v8  ;;  %v6794_v8 = vsel %vm4977_vm4, %v6792_v59, %v6793_v48  ;;  %v5715_v59 = vld [vmem:[#allocation8 + $0x28] ss:$16 sps:$4 sm:$0xff]  }
 0x729   :  { %v1532_v41 = vpack.c.bf16 %v5586_v39, %v5586_v39 }
 0x72b   :  { %1570 = vmatmul.mubr.bf16.vlgmr.msra.gmra.mxu0 %v1532_v41  ;;  %1611 = vmatmul.mubr.bf16.vlgmr.msra.gmra.mxu1 %v1532_v41  ;;  %v6795_v41 = vld [vmem:[#allocation35_spill] sm:$0xff] }
 0x72c   :  { %1963 = vmatprep.mubr.bf16.mxu0 %v6741_v10  ;;  %2036 = vmatprep.mubr.bf16.mxu1 %v6741_v10  ;;  %v6797_v36 = vsel %vm4973_vm3, %v6795_v41, %v6796_v42  ;;  %v5727_v41 = vld [vmem:[#allocation8 + $0x8] ss:$16 sps:$4 sm:$0xff]   ;;  %v1737_v42 = vld [vmem:[%s6597_s6] sm:$0xf]  ;;  %s4624_s6 = smov 96  }
 0x72d   :  { %1932 = vmatpush1.bf16.msra.mxu0 %v4106_v60  ;;  %2005 = vmatpush1.bf16.msra.mxu1 %v4109_v49  ;;  %6802 = vst [vmem:[#allocation26_spill] sm:$0xff] %v5727_v41 }
 0x72e   :  { %1933 = vmatprep.subr.bf16.mxu0 %v4114_v63  ;;  %2006 = vmatprep.subr.bf16.mxu1 %v4117_v5 }
 0x731   :  { %1934 = vmatpush1.bf16.msra.mxu0 %v4112_v54  ;;  %2007 = vmatpush1.bf16.msra.mxu1 %v4115_v51 }
 0x732   :  { %1935 = vmatprep.subr.bf16.mxu0 %v4120_v57  ;;  %2008 = vmatprep.subr.bf16.mxu1 %v4123_v30 }
 0x735   :  { %1936 = vmatpush1.bf16.msra.mxu0 %v4118_v4  ;;  %2009 = vmatpush1.bf16.msra.mxu1 %v4121_v44 }
 0x736   :  { %1937 = vmatprep.subr.bf16.mxu0 %v4126_v62  ;;  %2010 = vmatprep.subr.bf16.mxu1 %v4129_v17 }
 0x739   :  { %1938 = vmatpush1.bf16.msra.mxu0 %v4124_v3  ;;  %2011 = vmatpush1.bf16.msra.mxu1 %v4127_v12 }
 0x73a   :  { %1939 = vmatprep.subr.bf16.mxu0 %v4132_v20  ;;  %2012 = vmatprep.subr.bf16.mxu1 %v4135_v22  ;;  %v6799_v22 = vld [vmem:[#allocation42_spill] sm:$0xff] }
 0x73d   :  { %1940 = vmatpush1.bf16.msra.mxu0 %v4130_v21  ;;  %2013 = vmatpush1.bf16.msra.mxu1 %v4133_v7 }
 0x73e   :  { %1941 = vmatprep.subr.bf16.mxu0 %v4138_v23  ;;  %2014 = vmatprep.subr.bf16.mxu1 %v4141_v24  ;;  %v6800_v24 = vld [vmem:[#allocation13_spill] sm:$0xff] }
 0x741   :  { %1942 = vmatpush1.bf16.msra.mxu0 %v4136_v25  ;;  %2015 = vmatpush1.bf16.msra.mxu1 %v4139_v26  ;;  %v1657_v25 = vsel %vm139_vm1, %v6800_v24, %v5586_v39  ;;  %v5625_v26 = vld [vmem:[#allocation8 + $0xe0] ss:$16 sps:$4 sm:$0xff]  }
 0x742   :  { %1943 = vmatprep.subr.bf16.mxu0 %v4144_v6  ;;  %2016 = vmatprep.subr.bf16.mxu1 %v4147_v52  ;;  %v5629_v52 = vld [vmem:[#allocation8 + $0xc4] ss:$16 sps:$4 sm:$0xff]  }
 0x745   :  { %1944 = vmatpush1.bf16.msra.mxu0 %v4142_v47  ;;  %2017 = vmatpush1.bf16.msra.mxu1 %v4145_v50  ;;  %v5631_v47 = vld [vmem:[#allocation8 + $0xcc] ss:$16 sps:$4 sm:$0xff]   ;;  %v5635_v50 = vld [vmem:[#allocation8 + $0xc0] ss:$16 sps:$4 sm:$0xff]  }
 0x746   :  { %1945 = vmatprep.subr.bf16.mxu0 %v4150_v53  ;;  %2018 = vmatprep.subr.bf16.mxu1 %v4153_v46  ;;  %v5637_v53 = vld [vmem:[#allocation8 + $0xc8] ss:$16 sps:$4 sm:$0xff]   ;;  %v5641_v46 = vld [vmem:[#allocation8 + $0xa4] ss:$16 sps:$4 sm:$0xff]  }
 0x749   :  { %1946 = vmatpush1.bf16.msra.mxu0 %v4148_v43  ;;  %2019 = vmatpush1.bf16.msra.mxu1 %v4151_v15  ;;  %v5643_v43 = vld [vmem:[#allocation8 + $0xac] ss:$16 sps:$4 sm:$0xff]   ;;  %v5649_v15 = vld [vmem:[#allocation8 + $0xa0] ss:$16 sps:$4 sm:$0xff]  }
 0x74a   :  { %2369 = vmatprep.subr.bf16.mxu0 %v5592_v56  ;;  %2410 = vmatprep.subr.bf16.mxu1 %v5594_v38 }
 0x7eb   :  { %v1571_v55 = vpop.f32.mrf.mxu0  ;;  %v1612_v2 = vpop.f32.mrf.mxu1 }
 0x7ec   :  { %v1619_v13 = vadd.f32 %v1571_v55, %v6788_v9  ;;  %v1621_v60 = vadd.f32 %v1612_v2, %v6797_v36  ;;  %v5651_v55 = vld [vmem:[#allocation8 + $0xa8] ss:$16 sps:$4 sm:$0xff]   ;;  %v5655_v2 = vld [vmem:[#allocation8 + $0x84] ss:$16 sps:$4 sm:$0xff]   ;;  %v5657_v9 = vld [vmem:[#allocation8 + $0x8c] ss:$16 sps:$4 sm:$0xff]  }
 0x7ed   :  { %v1573_v14 = vpop.f32.mrf.mxu0  ;;  %v1614_v16 = vpop.f32.mrf.mxu1 }
 0x7ee   :  { %v3838_v18 = vmul.f32 -1.442695, %v1619_v13  ;;  %v1620_v33 = vadd.f32 %v1573_v14, %v6791_v32  ;;  %v1622_v1 = vadd.f32 %v1614_v16, %v6794_v8  ;;  %v5663_v13 = vld [vmem:[#allocation8 + $0x80] ss:$16 sps:$4 sm:$0xff]   ;;  %v5665_v14 = vld [vmem:[#allocation8 + $0x88] ss:$16 sps:$4 sm:$0xff]  }
 0x7ef   :  { %v1575_v35 = vpop.f32.mrf.mxu0  ;;  %v1616_v34 = vpop.f32.mrf.mxu1  ;;  %v5669_v16 = vld [vmem:[#allocation8 + $0x64] ss:$16 sps:$4 sm:$0xff]   ;;  %v5685_v32 = vld [vmem:[#allocation8 + $0x4c] ss:$16 sps:$4 sm:$0xff]  }
 0x7f0   :  { %4326 = vpow2.f32 %v3838_v18  ;;  %v3839_v40 = vmul.f32 -1.442695, %v1620_v33  ;;  %v3840_v49 = vmul.f32 -1.442695, %v1622_v1  ;;  %v5671_v18 = vld [vmem:[#allocation8 + $0x6c] ss:$16 sps:$4 sm:$0xff]  }
 0x7f1   :  { %v1576_v45 = vpop.f32.mrf.mxu0  ;;  %v1617_v58 = vpop.f32.mrf.mxu1  ;;  %v5691_v33 = vld [vmem:[#allocation8 + $0x40] ss:$16 sps:$4 sm:$0xff]   ;;  %v5693_v35 = vld [vmem:[#allocation8 + $0x48] ss:$16 sps:$4 sm:$0xff]   ;;  %v5697_v34 = vld [vmem:[#allocation8 + $0x24] ss:$16 sps:$4 sm:$0xff]  }
 0x7f2   :  { %4328 = vpow2.f32 %v3839_v40  ;;  %v5699_v40 = vld [vmem:[#allocation8 + $0x2c] ss:$16 sps:$4 sm:$0xff]   ;;  %v1659_v45 = vsel %vm139_vm1, %v5586_v39, %v6800_v24  ;;  %v5713_v58 = vld [vmem:[#allocation8 + $0x20] ss:$16 sps:$4 sm:$0xff]   ;;  %v5719_v8 = vld [vmem:[#allocation8 + $0x4] ss:$16 sps:$4 sm:$0xff]  }
 0x7f3   :  { %4330 = vtanh.f32 %v1621_v60  ;;  %v5721_v1 = vld [vmem:[#allocation8 + $0xc] ss:$16 sps:$4 sm:$0xff]   ;;  %v5725_v39 = vld [vmem:[#allocation8] ss:$16 sps:$4 sm:$0xff]  }
 0x7f4   :  { %4332 = vpow2.f32 %v3840_v49  ;;  %6801 = vst [vmem:[#allocation28_spill] sm:$0xff] %v5725_v39 }
 0x7fd   :  { %v4327_v63 = vpop.eup %4326 }
 0x7fe   :  { %v1626_v5 = vadd.f32 1.0, %v4327_v63 }
 0x7ff   :  { %v4329_v54 = vpop.eup %4328 }
 0x800   :  { %4334 = vrcp.f32 %v1626_v5  ;;  %v1632_v51 = vadd.f32 1.0, %v4329_v54  ;;  %v4331_v57 = vpop.eup %4330  ;;  %v6803_v5 = vld [vmem:[#allocation14_spill] sm:$0xff] }
 0x801   :  { %v4333_v30 = vpop.eup %4332  ;;  %v6804_v54 = vsub.s32 0, %v6803_v5 }
 0x802   :  { %4336 = vrcp.f32 %v1632_v51  ;;  %v1639_v17 = vadd.f32 1.0, %v4333_v30 }
 0x803   :  { %v5786_v51 = vrot.slane %v1737_v42, %v6804_v54 }
 0x804   :  { %4338 = vrcp.f32 %v1639_v17 }
 0x80d   :  { %v4335_v4 = vpop.eup %4334 }
 0x80e   :  { %v1643_v44 = vmul.f32 %v4335_v4, %v4331_v57  ;;  %v6805_v57 = vsub.s32 2, %v6803_v5 }
 0x80f   :  { %v4337_v62 = vpop.eup %4336 }
 0x810   :  { %v1642_v3 = vmul.f32 %v4337_v62, %v5583_v61  ;;  %v5627_v61 = vld [vmem:[#allocation8 + $0xe8] ss:$16 sps:$4 sm:$0xff]   ;;  %v5790_v30 = vrot.slane %v1737_v42, %v6805_v57  ;;  %v6806_v62 = vsub.s32 1, %v6803_v5 }
 0x811   :  { %v4339_v20 = vpop.eup %4338 }
 0x812   :  { %v1644_v12 = vadd.f32 %v1643_v44, %v1642_v3  ;;  %v5794_v17 = vrot.slane %v1737_v42, %v6806_v62  ;;  %v6807_v3 = vsub.s32 3, %v6803_v5 }
 0x814   :  { %4340 = vtanh.f32 %v1644_v12  ;;  %v5798_v12 = vrot.slane %v1737_v42, %v6807_v3 }
 0x821   :  { %v4341_v21 = vpop.eup %4340 }
 0x822   :  { %v5615_v7 = vmul.f32 %v4341_v21, %v4339_v20 }
 0x824   :  { %6798 = vst [vmem:[#allocation19_spill] sm:$0xff] %v5615_v7  ;;  %v1651_v23 = vsel %vm139_vm1, %v6799_v22, %v5615_v7 }
 0x825   :  { %v1746_v6 = vpack.c.bf16 %v1657_v25, %v1651_v23 }
 0x827   :  { %1964 = vmatmul.mubr.bf16.vlgmr.msra.gmra.mxu0 %v1746_v6  ;;  %2037 = vmatmul.mubr.bf16.vlgmr.msra.gmra.mxu1 %v1746_v6 }
 0x828   :  { %2370 = vmatpush1.bf16.msra.mxu0 %v5625_v26  ;;  %2411 = vmatpush1.bf16.msra.mxu1 %v5627_v61 }
 0x829   :  { %2371 = vmatprep.subr.bf16.mxu0 %v5629_v52  ;;  %2412 = vmatprep.subr.bf16.mxu1 %v5631_v47 }
 0x82a   :  { %1973 = vmatprep.mubr.bf16.mxu0 %v6741_v10  ;;  %2046 = vmatprep.mubr.bf16.mxu1 %v6741_v10 }
 0x82c   :  { %2372 = vmatpush1.bf16.msra.mxu0 %v5635_v50  ;;  %2413 = vmatpush1.bf16.msra.mxu1 %v5637_v53 }
 0x82d   :  { %2373 = vmatprep.subr.bf16.mxu0 %v5641_v46  ;;  %2414 = vmatprep.subr.bf16.mxu1 %v5643_v43 }
 0x82f   :  { %1974 = vmatmul.mubr.bf16.gmra.mxu0 %v5530_v37  ;;  %2047 = vmatmul.mubr.bf16.gmra.mxu1 %v5530_v37  ;;  %v5677_v37 = vld [vmem:[#allocation8 + $0x60] ss:$16 sps:$4 sm:$0xff]  }
 0x830   :  { %2374 = vmatpush1.bf16.msra.mxu0 %v5649_v15  ;;  %2415 = vmatpush1.bf16.msra.mxu1 %v5651_v55 }
 0x831   :  { %2375 = vmatprep.subr.bf16.mxu0 %v5655_v2  ;;  %2416 = vmatprep.subr.bf16.mxu1 %v5657_v9 }
 0x832   :  { %1983 = vmatprep.mubr.bf16.mxu0 %v6741_v10  ;;  %2056 = vmatprep.mubr.bf16.mxu1 %v6741_v10 }
 0x834   :  { %2376 = vmatpush1.bf16.msra.mxu0 %v5663_v13  ;;  %2417 = vmatpush1.bf16.msra.mxu1 %v5665_v14 }
 0x835   :  { %2377 = vmatprep.subr.bf16.mxu0 %v5669_v16  ;;  %2418 = vmatprep.subr.bf16.mxu1 %v5671_v18 }
 0x837   :  { %1984 = vmatmul.mubr.bf16.gmra.mxu0 %v5532_v27  ;;  %2057 = vmatmul.mubr.bf16.gmra.mxu1 %v5532_v27  ;;  %v1653_v27 = vsel %vm139_vm1, %v5615_v7, %v6799_v22 }
 0x838   :  { %2378 = vmatpush1.bf16.msra.mxu0 %v5677_v37  ;;  %2419 = vmatpush1.bf16.msra.mxu1 %v5679_v28  ;;  %v1749_v48 = vpack.c.bf16 %v1653_v27, %v1659_v45 }
 0x839   :  { %2379 = vmatprep.subr.bf16.mxu0 %v5683_v31  ;;  %2420 = vmatprep.subr.bf16.mxu1 %v5685_v32 }
 0x83a   :  { %1993 = vmatprep.mubr.bf16.mxu0 %v6741_v10  ;;  %2066 = vmatprep.mubr.bf16.mxu1 %v6741_v10 }
 0x83c   :  { %2380 = vmatpush1.bf16.msra.mxu0 %v5691_v33  ;;  %2421 = vmatpush1.bf16.msra.mxu1 %v5693_v35 }
 0x83d   :  { %2381 = vmatprep.subr.bf16.mxu0 %v5697_v34  ;;  %2422 = vmatprep.subr.bf16.mxu1 %v5699_v40 }
 0x83f   :  { %1994 = vmatmul.mubr.bf16.gmra.mxu0 %v1749_v48  ;;  %2067 = vmatmul.mubr.bf16.gmra.mxu1 %v1749_v48 }
 0x840   :  { %2382 = vmatpush1.bf16.msra.mxu0 %v5713_v58  ;;  %2423 = vmatpush1.bf16.msra.mxu1 %v5715_v59 }
 0x841   :  { %2383 = vmatprep.subr.bf16.mxu0 %v5719_v8  ;;  %2424 = vmatprep.subr.bf16.mxu1 %v5721_v1 }
 0x842   :  { %2401 = vmatprep.mubr.bf16.mxu0 %v6741_v10  ;;  %2442 = vmatprep.mubr.bf16.mxu1 %v6741_v10 }
 0x844   :  { %2384 = vmatpush1.bf16.msra.mxu0 %v5725_v39  ;;  %2425 = vmatpush1.bf16.msra.mxu1 %v5727_v41 }
 0x845   :  { %2485 = vmatprep.subr.bf16.mxu0 %v5592_v56  ;;  %2526 = vmatprep.subr.bf16.mxu1 %v5594_v38 }
 0x847   :  { %2402 = vmatmul.mubr.bf16.vlgmr.msra.gmra.mxu0 %v6741_v10  ;;  %2443 = vmatmul.mubr.bf16.vlgmr.msra.gmra.mxu1 %v6741_v10 }
 0x848   :  { %2486 = vmatpush1.bf16.msra.mxu0 %v5625_v26  ;;  %2527 = vmatpush1.bf16.msra.mxu1 %v5627_v61 }
 0x849   :  { %2487 = vmatprep.subr.bf16.mxu0 %v5629_v52  ;;  %2528 = vmatprep.subr.bf16.mxu1 %v5631_v47 }
 0x84a   :  { %2517 = vmatprep.mubr.bf16.mxu0 %v6741_v10  ;;  %2558 = vmatprep.mubr.bf16.mxu1 %v6741_v10 }
 0x84c   :  { %2488 = vmatpush1.bf16.msra.mxu0 %v5635_v50  ;;  %2529 = vmatpush1.bf16.msra.mxu1 %v5637_v53 }
 0x84d   :  { %2489 = vmatprep.subr.bf16.mxu0 %v5641_v46  ;;  %2530 = vmatprep.subr.bf16.mxu1 %v5643_v43 }
 0x850   :  { %2490 = vmatpush1.bf16.msra.mxu0 %v5649_v15  ;;  %2531 = vmatpush1.bf16.msra.mxu1 %v5651_v55 }
 0x851   :  { %2491 = vmatprep.subr.bf16.mxu0 %v5655_v2  ;;  %2532 = vmatprep.subr.bf16.mxu1 %v5657_v9 }
 0x854   :  { %2492 = vmatpush1.bf16.msra.mxu0 %v5663_v13  ;;  %2533 = vmatpush1.bf16.msra.mxu1 %v5665_v14 }
 0x855   :  { %2493 = vmatprep.subr.bf16.mxu0 %v5669_v16  ;;  %2534 = vmatprep.subr.bf16.mxu1 %v5671_v18 }
 0x858   :  { %2494 = vmatpush1.bf16.msra.mxu0 %v5677_v37  ;;  %2535 = vmatpush1.bf16.msra.mxu1 %v5679_v28 }
 0x859   :  { %2495 = vmatprep.subr.bf16.mxu0 %v5683_v31  ;;  %2536 = vmatprep.subr.bf16.mxu1 %v5685_v32 }
 0x85c   :  { %2496 = vmatpush1.bf16.msra.mxu0 %v5691_v33  ;;  %2537 = vmatpush1.bf16.msra.mxu1 %v5693_v35 }
 0x85d   :  { %2497 = vmatprep.subr.bf16.mxu0 %v5697_v34  ;;  %2538 = vmatprep.subr.bf16.mxu1 %v5699_v40 }
 0x860   :  { %2498 = vmatpush1.bf16.msra.mxu0 %v5713_v58  ;;  %2539 = vmatpush1.bf16.msra.mxu1 %v5715_v59 }
 0x861   :  { %2499 = vmatprep.subr.bf16.mxu0 %v5719_v8  ;;  %2540 = vmatprep.subr.bf16.mxu1 %v5721_v1 }
 0x864   :  { %2500 = vmatpush1.bf16.msra.mxu0 %v5725_v39  ;;  %2541 = vmatpush1.bf16.msra.mxu1 %v5727_v41 }
 0x865   :  { %2601 = vmatprep.subr.bf16.mxu0 %v5592_v56  ;;  %2642 = vmatprep.subr.bf16.mxu1 %v5594_v38 }
 0x8e7   :  { %v5776_v36 = vpop.f32.mrf.mxu0  ;;  %v5778_v60 = vpop.f32.mrf.mxu1 }
 0x8e9   :  { %v5780_v49 = vpop.f32.mrf.mxu0  ;;  %v5782_v63 = vpop.f32.mrf.mxu1 }
 0x8eb   :  { %v1969_v4 = vpop.f32.mrf.mxu0  ;;  %v2042_v44 = vpop.f32.mrf.mxu1 }
 0x8ec   :  { %v5801_v20 = vadd.f32 %v1969_v4, %v5786_v51  ;;  %v5804_v21 = vadd.f32 %v2042_v44, %v5790_v30 }
 0x8ed   :  { %v1971_v22 = vpop.f32.mrf.mxu0  ;;  %v2044_v23 = vpop.f32.mrf.mxu1 }
 0x8ee   :  { %6808 = vst [vmem:[#allocation21_spill] sm:$0xff] %v5804_v21  ;;  %v5807_v24 = vadd.f32 %v1971_v22, %v5794_v17  ;;  %v5810_v25 = vadd.f32 %v2044_v23, %v5798_v12 }
 0x8ef   :  { %v1975_v6 = vpop.f32.mrf.mxu0  ;;  %v2048_v27 = vpop.f32.mrf.mxu1 }
 0x8f0   :  { %6809 = vst [vmem:[#allocation24_spill] sm:$0xff] %v5807_v24  ;;  %6810 = vst [vmem:[#allocation22_spill] sm:$0xff] %v5810_v25  ;;  %v1976_v45 = vadd.f32 %v1975_v6, %v5786_v51  ;;  %v5814_v48 = vadd.f32 %v2048_v27, %v5790_v30 }
 0x8f1   :  { %v1977_v42 = vpop.f32.mrf.mxu0  ;;  %v2050_v54 = vpop.f32.mrf.mxu1 }
 0x8f2   :  { %6811 = vst [vmem:[#allocation25_spill] sm:$0xff] %v5814_v48  ;;  %v5817_v57 = vadd.f32 %v1977_v42, %v5794_v17  ;;  %v5820_v4 = vadd.f32 %v2050_v54, %v5798_v12 }
 0x8f3   :  { %v1979_v44 = vpop.f32.mrf.mxu0  ;;  %v2052_v62 = vpop.f32.mrf.mxu1 }
 0x8f4   :  { %v1980_v3 = vadd.f32 %v1979_v44, %v5786_v51  ;;  %v5824_v22 = vadd.f32 %v2052_v62, %v5790_v30 }
 0x8f5   :  { %v1981_v23 = vpop.f32.mrf.mxu0  ;;  %v2054_v6 = vpop.f32.mrf.mxu1 }
 0x8f6   :  { %6812 = vst [vmem:[#allocation20_spill] sm:$0xff] %v5824_v22  ;;  %v5827_v27 = vadd.f32 %v1981_v23, %v5794_v17  ;;  %v5830_v5 = vadd.f32 %v2054_v6, %v5798_v12 }
 0x8f7   :  { %v1985_v42 = vpop.f32.mrf.mxu0  ;;  %v2058_v7 = vpop.f32.mrf.mxu1 }
 0x8f8   :  { %6813 = vst [vmem:[#allocation23_spill] sm:$0xff] %v5827_v27  ;;  %6814 = vst [vmem:[#allocation27_spill] sm:$0xff] %v5830_v5  ;;  %v1986_v54 = vadd.f32 %v1985_v42, %v5786_v51  ;;  %v5834_v38 = vadd.f32 %v2058_v7, %v5790_v30  ;;  %v1966_v5 = vadd.f32 %v5776_v36, %v5786_v51 }
 0x8f9   :  { %v1987_v56 = vpop.f32.mrf.mxu0  ;;  %v2060_v44 = vpop.f32.mrf.mxu1 }
 0x8fa   :  { %6815 = vst [vmem:[#allocation30_spill] sm:$0xff] %v5834_v38  ;;  %v5837_v62 = vadd.f32 %v1987_v56, %v5794_v17  ;;  %v5840_v41 = vadd.f32 %v2060_v44, %v5798_v12  ;;  %v5844_v23 = vsel %vm139_vm1, %v1980_v3, %v1986_v54  ;;  %v5852_v39 = vsel %vm139_vm1, %v1986_v54, %v1980_v3 }
 0x8fb   :  { %6818 = vst [vmem:[#allocation32_spill] sm:$0xff] %v5844_v23  ;;  %v1989_v42 = vpop.f32.mrf.mxu0  ;;  %v2062_v7 = vpop.f32.mrf.mxu1  ;;  %6819 = vst [vmem:[#allocation17_spill] sm:$0xff] %v5852_v39 }
 0x8fc   :  { %6816 = vst [vmem:[#allocation11_spill] sm:$0xff] %v5837_v62  ;;  %6817 = vst [vmem:[#allocation34_spill] sm:$0xff] %v5840_v41  ;;  %v1990_v44 = vadd.f32 %v1989_v42, %v5786_v51  ;;  %v5860_v23 = vadd.f32 %v2062_v7, %v5790_v30 }
 0x8fd   :  { %v1991_v54 = vpop.f32.mrf.mxu0  ;;  %v2064_v39 = vpop.f32.mrf.mxu1 }
 0x8fe   :  { %6820 = vst [vmem:[#allocation33_spill] sm:$0xff] %v5860_v23  ;;  %v5879_v56 = vadd.f32 %v1991_v54, %v5794_v17  ;;  %v5882_v6 = vadd.f32 %v2064_v39, %v5798_v12  ;;  %v5886_v3 = vsel %vm139_vm1, %v1976_v45, %v1990_v44  ;;  %v5894_v7 = vsel %vm139_vm1, %v1990_v44, %v1976_v45 }
 0x8ff   :  { %v1995_v38 = vpop.f32.mrf.mxu0  ;;  %v2068_v22 = vpop.f32.mrf.mxu1  ;;  %6822 = vst [vmem:[#allocation31_spill] sm:$0xff] %v5894_v7 }
 0x900   :  { %6821 = vst [vmem:[#allocation18_spill] sm:$0xff] %v5882_v6  ;;  %v1996_v54 = vadd.f32 %v1995_v38, %v5786_v51  ;;  %v5902_v41 = vadd.f32 %v2068_v22, %v5790_v30 }
 0x901   :  { %v1997_v44 = vpop.f32.mrf.mxu0  ;;  %v2070_v7 = vpop.f32.mrf.mxu1 }
 0x902   :  { %6823 = vst [vmem:[#allocation15_spill] sm:$0xff] %v5902_v41  ;;  %v5921_v39 = vadd.f32 %v1997_v44, %v5794_v17  ;;  %v5924_v42 = vadd.f32 %v2070_v7, %v5798_v12  ;;  %v5929_v45 = vsel %vm139_vm1, %v5801_v20, %v1996_v54  ;;  %v5940_v7 = vsel %vm139_vm1, %v1996_v54, %v5801_v20 }
 0x903   :  { %v1999_v22 = vpop.f32.mrf.mxu0  ;;  %v2072_v62 = vpop.f32.mrf.mxu1  ;;  %6826 = vst [vmem:[#allocation37_spill] sm:$0xff] %v5940_v7  ;;  %v5960_v54 = vadd.f32 %v5778_v60, %v5790_v30 }
 0x904   :  { %6824 = vst [vmem:[#allocation41_spill] sm:$0xff] %v5921_v39  ;;  %6825 = vst [vmem:[#allocation38_spill] sm:$0xff] %v5924_v42  ;;  %v2000_v27 = vadd.f32 %v1999_v22, %v5786_v51  ;;  %v5948_v23 = vadd.f32 %v2072_v62, %v5790_v30  ;;  %v5972_v22 = vadd.f32 %v5780_v49, %v5794_v17 }
 0x905   :  { %6828 = vst [vmem:[#allocation40_spill] sm:$0xff] %v5960_v54  ;;  %v2001_v44 = vpop.f32.mrf.mxu0  ;;  %v2074_v38 = vpop.f32.mrf.mxu1  ;;  %v5984_v51 = vadd.f32 %v5782_v63, %v5798_v12 }
 0x906   :  { %6827 = vst [vmem:[#allocation39_spill] sm:$0xff] %v5948_v23  ;;  %6829 = vst [vmem:[#allocation35_spill] sm:$0xff] %v5972_v22  ;;  %v5975_v20 = vadd.f32 %v2001_v44, %v5794_v17  ;;  %v5978_v60 = vadd.f32 %v2074_v38, %v5798_v12  ;;  %v2117_v30 = vsel %vm139_vm1, %v1966_v5, %v2000_v27 }
 0x907   :  { %6832 = vst [vmem:[#allocation13_spill] sm:$0xff] %v5984_v51  ;;  %v2403_v36 = vpop.f32.mrf.mxu0  ;;  %v2444_v7 = vpop.f32.mrf.mxu1  ;;  %v5988_v62 = vsel %vm139_vm1, %v2000_v27, %v1966_v5  ;;  %v2119_v5 = vsel %vm4973_vm3, %v5960_v54, %v5948_v23 }
 0x908   :  { %6830 = vst [vmem:[#allocation36_spill] sm:$0xff] %v5975_v20  ;;  %6831 = vst [vmem:[#allocation42_spill] sm:$0xff] %v5978_v60  ;;  %v2451_v17 = vadd.f32 %v2403_v36, %v2117_v30  ;;  %v2118_v38 = vsel %vm4969_vm2, %v5972_v22, %v5975_v20  ;;  %v2120_v6 = vsel %vm4977_vm4, %v5984_v51, %v5978_v60 }
 0x909   :  { %6833 = vst [vmem:[#allocation43_spill] sm:$0xff] %v5988_v62  ;;  %v2405_v44 = vpop.f32.mrf.mxu0  ;;  %v2446_v63 = vpop.f32.mrf.mxu1 }
 0x90a   :  { %v3905_v27 = vmul.f32 -1.442695, %v2451_v17  ;;  %v2452_v49 = vadd.f32 %v2405_v44, %v2118_v38  ;;  %v2454_v12 = vadd.f32 %v2446_v63, %v2120_v6  ;;  %v2453_v44 = vadd.f32 %v2444_v7, %v2119_v5 }
 0x90b   :  { %v2407_v36 = vpop.f32.mrf.mxu0  ;;  %v2448_v30 = vpop.f32.mrf.mxu1 }
 0x90c   :  { %4342 = vpow2.f32 %v3905_v27  ;;  %v3906_v62 = vmul.f32 -1.442695, %v2452_v49  ;;  %v3907_v17 = vmul.f32 -1.442695, %v2454_v12 }
 0x90d   :  { %v2408_v11 = vpop.f32.mrf.mxu0  ;;  %v2449_v48 = vpop.f32.mrf.mxu1  ;;  %v6888_v19 = vld [vmem:[#allocation39_spill] sm:$0xff] }
 0x90e   :  { %4344 = vpow2.f32 %v3906_v62 }
 0x90f   :  { %4346 = vpow2.f32 %v3907_v17 }
 0x919   :  { %v4343_v38 = vpop.eup %4342 }
 0x91a   :  { %v2458_v36 = vadd.f32 1.0, %v4343_v38  ;;  %v6836_v38 = vld [vmem:[#allocation26_spill] sm:$0xff] }
 0x91b   :  { %v4345_v27 = vpop.eup %4344 }
 0x91c   :  { %4348 = vrcp.f32 %v2458_v36  ;;  %v2464_v11 = vadd.f32 1.0, %v4345_v27  ;;  %v4347_v48 = vpop.eup %4346  ;;  %v6838_v36 = vld [vmem:[#allocation29_spill] sm:$0xff] }
 0x91d   :  { %4350 = vtanh.f32 %v2453_v44  ;;  %v2471_v6 = vadd.f32 1.0, %v4347_v48  ;;  %v6837_v44 = vld [vmem:[#allocation12_spill] sm:$0xff] }
 0x91e   :  { %4352 = vrcp.f32 %v2464_v11 }
 0x91f   :  { %4354 = vrcp.f32 %v2471_v6  ;;  %v6839_v6 = vsel %vm4969_vm2, %v5807_v24, %v5921_v39 }
 0x929   :  { %v4349_v62 = vpop.eup %4348 }
 0x92a   :  { %v4351_v49 = vpop.eup %4350 }
 0x92b   :  { %v4353_v30 = vpop.eup %4352  ;;  %v2475_v51 = vmul.f32 %v4351_v49, %v4349_v62 }
 0x92c   :  { %v2474_v63 = vmul.f32 0.0, %v4353_v30  ;;  %v4355_v7 = vpop.eup %4354 }
 0x92e   :  { %v6014_v60 = vadd.f32 %v2475_v51, %v2474_v63  ;;  %v6835_v51 = vld [vmem:[#allocation28_spill] sm:$0xff] }
 0x930   :  { %4356 = vtanh.f32 %v6014_v60 }
 0x93d   :  { %v4357_v12 = vpop.eup %4356 }
 0x93e   :  { %v6017_v5 = vmul.f32 %v4357_v12, %v4355_v7 }
 0x940   :  { %6834 = vst [vmem:[#allocation44_spill] sm:$0xff] %v6017_v5  ;;  %v2480_v17 = vpack.c.bf16 %v6017_v5, %v6017_v5 }
 0x942   :  { %2518 = vmatmul.mubr.bf16.vlgmr.msra.gmra.mxu0 %v2480_v17  ;;  %2559 = vmatmul.mubr.bf16.vlgmr.msra.gmra.mxu1 %v2480_v17 }
 0x943   :  { %2602 = vmatpush1.bf16.msra.mxu0 %v5625_v26  ;;  %2643 = vmatpush1.bf16.msra.mxu1 %v5627_v61 }
 0x944   :  { %2603 = vmatprep.subr.bf16.mxu0 %v5629_v52  ;;  %2644 = vmatprep.subr.bf16.mxu1 %v5631_v47 }
 0x945   :  { %2633 = vmatprep.mubr.bf16.mxu0 %v6741_v10  ;;  %2674 = vmatprep.mubr.bf16.mxu1 %v6741_v10 }
 0x947   :  { %2604 = vmatpush1.bf16.msra.mxu0 %v5635_v50  ;;  %2645 = vmatpush1.bf16.msra.mxu1 %v5637_v53 }
 0x948   :  { %2605 = vmatprep.subr.bf16.mxu0 %v5641_v46  ;;  %2646 = vmatprep.subr.bf16.mxu1 %v5643_v43 }
 0x94b   :  { %2606 = vmatpush1.bf16.msra.mxu0 %v5649_v15  ;;  %2647 = vmatpush1.bf16.msra.mxu1 %v5651_v55 }
 0x94c   :  { %2607 = vmatprep.subr.bf16.mxu0 %v5655_v2  ;;  %2648 = vmatprep.subr.bf16.mxu1 %v5657_v9 }
 0x94f   :  { %2608 = vmatpush1.bf16.msra.mxu0 %v5663_v13  ;;  %2649 = vmatpush1.bf16.msra.mxu1 %v5665_v14 }
 0x950   :  { %2609 = vmatprep.subr.bf16.mxu0 %v5669_v16  ;;  %2650 = vmatprep.subr.bf16.mxu1 %v5671_v18 }
 0x953   :  { %2610 = vmatpush1.bf16.msra.mxu0 %v5677_v37  ;;  %2651 = vmatpush1.bf16.msra.mxu1 %v5679_v28 }
 0x954   :  { %2611 = vmatprep.subr.bf16.mxu0 %v5683_v31  ;;  %2652 = vmatprep.subr.bf16.mxu1 %v5685_v32 }
 0x957   :  { %2612 = vmatpush1.bf16.msra.mxu0 %v5691_v33  ;;  %2653 = vmatpush1.bf16.msra.mxu1 %v5693_v35 }
 0x958   :  { %2613 = vmatprep.subr.bf16.mxu0 %v5697_v34  ;;  %2654 = vmatprep.subr.bf16.mxu1 %v5699_v40 }
 0x95b   :  { %2614 = vmatpush1.bf16.msra.mxu0 %v5713_v58  ;;  %2655 = vmatpush1.bf16.msra.mxu1 %v5715_v59 }
 0x95c   :  { %2615 = vmatprep.subr.bf16.mxu0 %v5719_v8  ;;  %2656 = vmatprep.subr.bf16.mxu1 %v5721_v1 }
 0x95f   :  { %2616 = vmatpush1.bf16.msra.mxu0 %v6835_v51  ;;  %2657 = vmatpush1.bf16.msra.mxu1 %v6836_v38 }
 0x960   :  { %2717 = vmatprep.subr.bf16.mxu0 %v6837_v44  ;;  %2758 = vmatprep.subr.bf16.mxu1 %v6838_v36 }
 0xa02   :  { %v2519_v27 = vpop.f32.mrf.mxu0  ;;  %v2560_v11 = vpop.f32.mrf.mxu1 }
 0xa03   :  { %v2567_v48 = vadd.f32 %v2519_v27, %v5929_v45  ;;  %v6840_v45 = vsel %vm4977_vm4, %v5810_v25, %v5924_v42  ;;  %v6858_v25 = vld [vmem:[#allocation30_spill] sm:$0xff] }
 0xa04   :  { %v2521_v62 = vpop.f32.mrf.mxu0  ;;  %v2562_v49 = vpop.f32.mrf.mxu1 }
 0xa05   :  { %v3908_v30 = vmul.f32 -1.442695, %v2567_v48  ;;  %v2568_v63 = vadd.f32 %v2521_v62, %v6839_v6  ;;  %v2570_v27 = vadd.f32 %v2562_v49, %v6840_v45  ;;  %v6841_v48 = vsel %vm4973_vm3, %v5804_v21, %v5902_v41 }
 0xa06   :  { %v2523_v7 = vpop.f32.mrf.mxu0  ;;  %v2564_v12 = vpop.f32.mrf.mxu1  ;;  %v2569_v23 = vadd.f32 %v2560_v11, %v6841_v48 }
 0xa07   :  { %4358 = vpow2.f32 %v3908_v30  ;;  %v3909_v17 = vmul.f32 -1.442695, %v2568_v63  ;;  %v3910_v62 = vmul.f32 -1.442695, %v2570_v27 }
 0xa08   :  { %v2524_v5 = vpop.f32.mrf.mxu0  ;;  %v2565_v54 = vpop.f32.mrf.mxu1 }
 0xa09   :  { %4360 = vpow2.f32 %v3909_v17 }
 0xa0a   :  { %4362 = vtanh.f32 %v2569_v23 }
 0xa0b   :  { %4364 = vpow2.f32 %v3910_v62 }
 0xa14   :  { %v4359_v6 = vpop.eup %4358 }
 0xa15   :  { %v2574_v7 = vadd.f32 1.0, %v4359_v6 }
 0xa16   :  { %v4361_v30 = vpop.eup %4360 }
 0xa17   :  { %4366 = vrcp.f32 %v2574_v7  ;;  %v2580_v54 = vadd.f32 1.0, %v4361_v30  ;;  %v4363_v5 = vpop.eup %4362 }
 0xa18   :  { %v4365_v63 = vpop.eup %4364 }
 0xa19   :  { %4368 = vrcp.f32 %v2580_v54  ;;  %v2587_v45 = vadd.f32 1.0, %v4365_v63  ;;  %v6843_v54 = vsel %vm4969_vm2, %v5817_v57, %v5879_v56 }
 0xa1b   :  { %4370 = vrcp.f32 %v2587_v45 }
 0xa24   :  { %v4367_v12 = vpop.eup %4366 }
 0xa25   :  { %v2591_v17 = vmul.f32 %v4367_v12, %v4363_v5 }
 0xa26   :  { %v4369_v49 = vpop.eup %4368 }
 0xa27   :  { %v2590_v22 = vmul.f32 %v4369_v49, %v6014_v60 }
 0xa28   :  { %v4371_v11 = vpop.eup %4370 }
 0xa29   :  { %v6072_v20 = vadd.f32 %v2591_v17, %v2590_v22 }
 0xa2b   :  { %4372 = vtanh.f32 %v6072_v20 }
 0xa38   :  { %v4373_v23 = vpop.eup %4372 }
 0xa39   :  { %v6075_v27 = vmul.f32 %v4373_v23, %v4371_v11 }
 0xa3b   :  { %6842 = vst [vmem:[#allocation28_spill] sm:$0xff] %v6075_v27  ;;  %v2596_v48 = vpack.c.bf16 %v6075_v27, %v6075_v27 }
 0xa3d   :  { %2634 = vmatmul.mubr.bf16.vlgmr.msra.gmra.mxu0 %v2596_v48  ;;  %2675 = vmatmul.mubr.bf16.vlgmr.msra.gmra.mxu1 %v2596_v48  ;;  %v6846_v48 = vld [vmem:[#allocation25_spill] sm:$0xff] }
 0xa3e   :  { %2718 = vmatpush1.bf16.msra.mxu0 %v5625_v26  ;;  %2759 = vmatpush1.bf16.msra.mxu1 %v5627_v61 }
 0xa3f   :  { %2719 = vmatprep.subr.bf16.mxu0 %v5629_v52  ;;  %2760 = vmatprep.subr.bf16.mxu1 %v5631_v47 }
 0xa40   :  { %2749 = vmatprep.mubr.bf16.mxu0 %v6741_v10  ;;  %2790 = vmatprep.mubr.bf16.mxu1 %v6741_v10 }
 0xa42   :  { %2720 = vmatpush1.bf16.msra.mxu0 %v5635_v50  ;;  %2761 = vmatpush1.bf16.msra.mxu1 %v5637_v53 }
 0xa43   :  { %2721 = vmatprep.subr.bf16.mxu0 %v5641_v46  ;;  %2762 = vmatprep.subr.bf16.mxu1 %v5643_v43 }
 0xa46   :  { %2722 = vmatpush1.bf16.msra.mxu0 %v5649_v15  ;;  %2763 = vmatpush1.bf16.msra.mxu1 %v5651_v55 }
 0xa47   :  { %2723 = vmatprep.subr.bf16.mxu0 %v5655_v2  ;;  %2764 = vmatprep.subr.bf16.mxu1 %v5657_v9 }
 0xa4a   :  { %2724 = vmatpush1.bf16.msra.mxu0 %v5663_v13  ;;  %2765 = vmatpush1.bf16.msra.mxu1 %v5665_v14 }
 0xa4b   :  { %2725 = vmatprep.subr.bf16.mxu0 %v5669_v16  ;;  %2766 = vmatprep.subr.bf16.mxu1 %v5671_v18 }
 0xa4e   :  { %2726 = vmatpush1.bf16.msra.mxu0 %v5677_v37  ;;  %2767 = vmatpush1.bf16.msra.mxu1 %v5679_v28 }
 0xa4f   :  { %2727 = vmatprep.subr.bf16.mxu0 %v5683_v31  ;;  %2768 = vmatprep.subr.bf16.mxu1 %v5685_v32 }
 0xa52   :  { %2728 = vmatpush1.bf16.msra.mxu0 %v5691_v33  ;;  %2769 = vmatpush1.bf16.msra.mxu1 %v5693_v35 }
 0xa53   :  { %2729 = vmatprep.subr.bf16.mxu0 %v5697_v34  ;;  %2770 = vmatprep.subr.bf16.mxu1 %v5699_v40 }
 0xa56   :  { %2730 = vmatpush1.bf16.msra.mxu0 %v5713_v58  ;;  %2771 = vmatpush1.bf16.msra.mxu1 %v5715_v59 }
 0xa57   :  { %2731 = vmatprep.subr.bf16.mxu0 %v5719_v8  ;;  %2772 = vmatprep.subr.bf16.mxu1 %v5721_v1 }
 0xa5a   :  { %2732 = vmatpush1.bf16.msra.mxu0 %v6835_v51  ;;  %2773 = vmatpush1.bf16.msra.mxu1 %v6836_v38 }
 0xa5b   :  { %2833 = vmatprep.subr.bf16.mxu0 %v6837_v44  ;;  %2874 = vmatprep.subr.bf16.mxu1 %v6838_v36 }
 0xafd   :  { %v2635_v22 = vpop.f32.mrf.mxu0  ;;  %v2676_v60 = vpop.f32.mrf.mxu1 }
 0xafe   :  { %v2683_v62 = vadd.f32 %v2635_v22, %v5886_v3  ;;  %v6844_v3 = vld [vmem:[#allocation18_spill] sm:$0xff]  ;;  %v6847_v22 = vld [vmem:[#allocation33_spill] sm:$0xff] }
 0xaff   :  { %v2637_v6 = vpop.f32.mrf.mxu0  ;;  %v2678_v7 = vpop.f32.mrf.mxu1  ;;  %v6845_v11 = vsel %vm4977_vm4, %v5820_v4, %v6844_v3 }
 0xb00   :  { %v3911_v30 = vmul.f32 -1.442695, %v2683_v62  ;;  %v2684_v5 = vadd.f32 %v2637_v6, %v6843_v54  ;;  %v2686_v23 = vadd.f32 %v2678_v7, %v6845_v11  ;;  %v6848_v62 = vsel %vm4973_vm3, %v6846_v48, %v6847_v22 }
 0xb01   :  { %v2639_v63 = vpop.f32.mrf.mxu0  ;;  %v2680_v12 = vpop.f32.mrf.mxu1  ;;  %v2685_v27 = vadd.f32 %v2676_v60, %v6848_v62 }
 0xb02   :  { %4374 = vpow2.f32 %v3911_v30  ;;  %v3912_v17 = vmul.f32 -1.442695, %v2684_v5  ;;  %v3913_v6 = vmul.f32 -1.442695, %v2686_v23 }
 0xb03   :  { %v2640_v49 = vpop.f32.mrf.mxu0  ;;  %v2681_v45 = vpop.f32.mrf.mxu1 }
 0xb04   :  { %4376 = vpow2.f32 %v3912_v17 }
 0xb05   :  { %4378 = vtanh.f32 %v2685_v27 }
 0xb06   :  { %4380 = vpow2.f32 %v3913_v6  ;;  %v6850_v6 = vld [vmem:[#allocation32_spill] sm:$0xff] }
 0xb0f   :  { %v4375_v54 = vpop.eup %4374 }
 0xb10   :  { %v2690_v63 = vadd.f32 1.0, %v4375_v54 }
 0xb11   :  { %v4377_v30 = vpop.eup %4376 }
 0xb12   :  { %4382 = vrcp.f32 %v2690_v63  ;;  %v2696_v5 = vadd.f32 1.0, %v4377_v30  ;;  %v4379_v12 = vpop.eup %4378 }
 0xb13   :  { %v4381_v17 = vpop.eup %4380 }
 0xb14   :  { %4384 = vrcp.f32 %v2696_v5  ;;  %v2703_v11 = vadd.f32 1.0, %v4381_v17  ;;  %v6852_v17 = vld [vmem:[#allocation11_spill] sm:$0xff] }
 0xb16   :  { %4386 = vrcp.f32 %v2703_v11 }
 0xb1f   :  { %v4383_v49 = vpop.eup %4382 }
 0xb20   :  { %v2707_v45 = vmul.f32 %v4383_v49, %v4379_v12  ;;  %v6851_v12 = vld [vmem:[#allocation23_spill] sm:$0xff] }
 0xb21   :  { %v4385_v7 = vpop.eup %4384  ;;  %v6853_v49 = vsel %vm4969_vm2, %v6851_v12, %v6852_v17 }
 0xb22   :  { %v2706_v21 = vmul.f32 %v4385_v7, %v6072_v20 }
 0xb23   :  { %v4387_v60 = vpop.eup %4386 }
 0xb24   :  { %v6130_v41 = vadd.f32 %v2707_v45, %v2706_v21 }
 0xb26   :  { %4388 = vtanh.f32 %v6130_v41 }
 0xb33   :  { %v4389_v27 = vpop.eup %4388 }
 0xb34   :  { %v6133_v23 = vmul.f32 %v4389_v27, %v4387_v60 }
 0xb36   :  { %6849 = vst [vmem:[#allocation26_spill] sm:$0xff] %v6133_v23  ;;  %v2712_v62 = vpack.c.bf16 %v6133_v23, %v6133_v23 }
 0xb38   :  { %2750 = vmatmul.mubr.bf16.vlgmr.msra.gmra.mxu0 %v2712_v62  ;;  %2791 = vmatmul.mubr.bf16.vlgmr.msra.gmra.mxu1 %v2712_v62  ;;  %v6855_v62 = vld [vmem:[#allocation34_spill] sm:$0xff] }
 0xb39   :  { %2834 = vmatpush1.bf16.msra.mxu0 %v5625_v26  ;;  %2875 = vmatpush1.bf16.msra.mxu1 %v5627_v61 }
 0xb3a   :  { %2835 = vmatprep.subr.bf16.mxu0 %v5629_v52  ;;  %2876 = vmatprep.subr.bf16.mxu1 %v5631_v47 }
 0xb3b   :  { %2865 = vmatprep.mubr.bf16.mxu0 %v6741_v10  ;;  %2906 = vmatprep.mubr.bf16.mxu1 %v6741_v10 }
 0xb3d   :  { %2836 = vmatpush1.bf16.msra.mxu0 %v5635_v50  ;;  %2877 = vmatpush1.bf16.msra.mxu1 %v5637_v53 }
 0xb3e   :  { %2837 = vmatprep.subr.bf16.mxu0 %v5641_v46  ;;  %2878 = vmatprep.subr.bf16.mxu1 %v5643_v43 }
 0xb41   :  { %2838 = vmatpush1.bf16.msra.mxu0 %v5649_v15  ;;  %2879 = vmatpush1.bf16.msra.mxu1 %v5651_v55 }
 0xb42   :  { %2839 = vmatprep.subr.bf16.mxu0 %v5655_v2  ;;  %2880 = vmatprep.subr.bf16.mxu1 %v5657_v9 }
 0xb45   :  { %2840 = vmatpush1.bf16.msra.mxu0 %v5663_v13  ;;  %2881 = vmatpush1.bf16.msra.mxu1 %v5665_v14 }
 0xb46   :  { %2841 = vmatprep.subr.bf16.mxu0 %v5669_v16  ;;  %2882 = vmatprep.subr.bf16.mxu1 %v5671_v18 }
 0xb49   :  { %2842 = vmatpush1.bf16.msra.mxu0 %v5677_v37  ;;  %2883 = vmatpush1.bf16.msra.mxu1 %v5679_v28 }
 0xb4a   :  { %2843 = vmatprep.subr.bf16.mxu0 %v5683_v31  ;;  %2884 = vmatprep.subr.bf16.mxu1 %v5685_v32 }
 0xb4d   :  { %2844 = vmatpush1.bf16.msra.mxu0 %v5691_v33  ;;  %2885 = vmatpush1.bf16.msra.mxu1 %v5693_v35 }
 0xb4e   :  { %2845 = vmatprep.subr.bf16.mxu0 %v5697_v34  ;;  %2886 = vmatprep.subr.bf16.mxu1 %v5699_v40 }
 0xb51   :  { %2846 = vmatpush1.bf16.msra.mxu0 %v5713_v58  ;;  %2887 = vmatpush1.bf16.msra.mxu1 %v5715_v59 }
 0xb52   :  { %2847 = vmatprep.subr.bf16.mxu0 %v5719_v8  ;;  %2888 = vmatprep.subr.bf16.mxu1 %v5721_v1 }
 0xb55   :  { %2848 = vmatpush1.bf16.msra.mxu0 %v6835_v51  ;;  %2889 = vmatpush1.bf16.msra.mxu1 %v6836_v38 }
 0xb56   :  { %2949 = vmatprep.subr.bf16.mxu0 %v6837_v44  ;;  %2990 = vmatprep.subr.bf16.mxu1 %v6838_v36  ;;  %v6854_v36 = vld [vmem:[#allocation27_spill] sm:$0xff] }
 0xbf8   :  { %v2751_v21 = vpop.f32.mrf.mxu0  ;;  %v2792_v20 = vpop.f32.mrf.mxu1 }
 0xbf9   :  { %v2799_v54 = vadd.f32 %v2751_v21, %v6850_v6  ;;  %v6856_v21 = vsel %vm4977_vm4, %v6854_v36, %v6855_v62 }
 0xbfa   :  { %v2753_v63 = vpop.f32.mrf.mxu0  ;;  %v2794_v30 = vpop.f32.mrf.mxu1 }
 0xbfb   :  { %v3914_v5 = vmul.f32 -1.442695, %v2799_v54  ;;  %v2800_v45 = vadd.f32 %v2753_v63, %v6853_v49  ;;  %v2802_v6 = vadd.f32 %v2794_v30, %v6856_v21  ;;  %v6857_v54 = vld [vmem:[#allocation20_spill] sm:$0xff] }
 0xbfc   :  { %v2755_v7 = vpop.f32.mrf.mxu0  ;;  %v2796_v11 = vpop.f32.mrf.mxu1  ;;  %v6859_v42 = vsel %vm4973_vm3, %v6857_v54, %v6858_v25 }
 0xbfd   :  { %4390 = vpow2.f32 %v3914_v5  ;;  %v3915_v60 = vmul.f32 -1.442695, %v2800_v45  ;;  %v2801_v24 = vadd.f32 %v2792_v20, %v6859_v42  ;;  %v3916_v63 = vmul.f32 -1.442695, %v2802_v6 }
 0xbfe   :  { %v2756_v44 = vpop.f32.mrf.mxu0  ;;  %v2797_v27 = vpop.f32.mrf.mxu1 }
 0xbff   :  { %4392 = vpow2.f32 %v3915_v60 }
 0xc00   :  { %4394 = vtanh.f32 %v2801_v24 }
 0xc01   :  { %4396 = vpow2.f32 %v3916_v63 }
 0xc0a   :  { %v4391_v49 = vpop.eup %4390 }
 0xc0b   :  { %v2806_v7 = vadd.f32 1.0, %v4391_v49  ;;  %v6268_v49 = vld [vmem:[#allocation8 + $0xe8] ss:$16 sps:$4 sm:$0xff]  }
 0xc0c   :  { %v4393_v5 = vpop.eup %4392 }
 0xc0d   :  { %4398 = vrcp.f32 %v2806_v7  ;;  %v2812_v45 = vadd.f32 1.0, %v4393_v5  ;;  %v4395_v11 = vpop.eup %4394  ;;  %v6271_v7 = vld [vmem:[#allocation8 + $0xc4] ss:$16 sps:$4 sm:$0xff]   ;;  %v6274_v5 = vld [vmem:[#allocation8 + $0xcc] ss:$16 sps:$4 sm:$0xff]  }
 0xc0e   :  { %v4397_v60 = vpop.eup %4396 }
 0xc0f   :  { %4400 = vrcp.f32 %v2812_v45  ;;  %v2819_v21 = vadd.f32 1.0, %v4397_v60  ;;  %v6279_v45 = vld [vmem:[#allocation8 + $0xc0] ss:$16 sps:$4 sm:$0xff]   ;;  %v6285_v60 = vld [vmem:[#allocation8 + $0xa4] ss:$16 sps:$4 sm:$0xff]  }
 0xc11   :  { %4402 = vrcp.f32 %v2819_v21  ;;  %v6297_v21 = vld [vmem:[#allocation8 + $0x84] ss:$16 sps:$4 sm:$0xff]  }
 0xc1a   :  { %v4399_v44 = vpop.eup %4398 }
 0xc1b   :  { %v2823_v27 = vmul.f32 %v4399_v44, %v4395_v11  ;;  %v6282_v11 = vld [vmem:[#allocation8 + $0xc8] ss:$16 sps:$4 sm:$0xff]   ;;  %v6288_v44 = vld [vmem:[#allocation8 + $0xac] ss:$16 sps:$4 sm:$0xff]  }
 0xc1c   :  { %v4401_v30 = vpop.eup %4400 }
 0xc1d   :  { %v2822_v39 = vmul.f32 %v4401_v30, %v6130_v41  ;;  %v6294_v30 = vld [vmem:[#allocation8 + $0xa8] ss:$16 sps:$4 sm:$0xff]  }
 0xc1e   :  { %v4403_v42 = vpop.eup %4402 }
 0xc1f   :  { %v6188_v23 = vadd.f32 %v2823_v27, %v2822_v39  ;;  %v6291_v27 = vld [vmem:[#allocation8 + $0xa0] ss:$16 sps:$4 sm:$0xff]  }
 0xc21   :  { %4404 = vtanh.f32 %v6188_v23 }
 0xc2e   :  { %v4405_v24 = vpop.eup %4404 }
 0xc2f   :  { %v6191_v20 = vmul.f32 %v4405_v24, %v4403_v42  ;;  %v6300_v42 = vld [vmem:[#allocation8 + $0x8c] ss:$16 sps:$4 sm:$0xff]   ;;  %v6303_v24 = vld [vmem:[#allocation8 + $0x80] ss:$16 sps:$4 sm:$0xff]  }
 0xc31   :  { %v2828_v6 = vpack.c.bf16 %v6191_v20, %v6191_v20 }
 0xc33   :  { %2866 = vmatmul.mubr.bf16.vlgmr.msra.gmra.mxu0 %v2828_v6  ;;  %2907 = vmatmul.mubr.bf16.vlgmr.msra.gmra.mxu1 %v2828_v6  ;;  %v6306_v6 = vld [vmem:[#allocation8 + $0x88] ss:$16 sps:$4 sm:$0xff]  }
 0xc34   :  { %2950 = vmatpush1.bf16.msra.mxu0 %v5625_v26  ;;  %2991 = vmatpush1.bf16.msra.mxu1 %v5627_v61  ;;  %v6227_v26 = vld [vmem:[#allocation8 + $0xe4] ss:$16 sps:$4 sm:$0xff]   ;;  %v6230_v61 = vld [vmem:[#allocation8 + $0xec] ss:$16 sps:$4 sm:$0xff]  }
 0xc35   :  { %2951 = vmatprep.subr.bf16.mxu0 %v5629_v52  ;;  %2992 = vmatprep.subr.bf16.mxu1 %v5631_v47 }
 0xc36   :  { %2981 = vmatprep.mubr.bf16.mxu0 %v6741_v10  ;;  %3022 = vmatprep.mubr.bf16.mxu1 %v6741_v10 }
 0xc38   :  { %2952 = vmatpush1.bf16.msra.mxu0 %v5635_v50  ;;  %2993 = vmatpush1.bf16.msra.mxu1 %v5637_v53  ;;  %v6860_v50 = vld [vmem:[#allocation17_spill] sm:$0xff] }
 0xc39   :  { %2953 = vmatprep.subr.bf16.mxu0 %v5641_v46  ;;  %2994 = vmatprep.subr.bf16.mxu1 %v5643_v43 }
 0xc3c   :  { %2954 = vmatpush1.bf16.msra.mxu0 %v5649_v15  ;;  %2995 = vmatpush1.bf16.msra.mxu1 %v5651_v55  ;;  %v6861_v55 = vsel %vm4969_vm2, %v6852_v17, %v6851_v12 }
 0xc3d   :  { %2955 = vmatprep.subr.bf16.mxu0 %v5655_v2  ;;  %2996 = vmatprep.subr.bf16.mxu1 %v5657_v9 }
 0xc40   :  { %2956 = vmatpush1.bf16.msra.mxu0 %v5663_v13  ;;  %2997 = vmatpush1.bf16.msra.mxu1 %v5665_v14 }
 0xc41   :  { %2957 = vmatprep.subr.bf16.mxu0 %v5669_v16  ;;  %2998 = vmatprep.subr.bf16.mxu1 %v5671_v18 }
 0xc44   :  { %2958 = vmatpush1.bf16.msra.mxu0 %v5677_v37  ;;  %2999 = vmatpush1.bf16.msra.mxu1 %v5679_v28  ;;  %v6862_v37 = vsel %vm4977_vm4, %v6855_v62, %v6854_v36  ;;  %v6864_v62 = vld [vmem:[#allocation16_spill] sm:$0xff] }
 0xc45   :  { %2959 = vmatprep.subr.bf16.mxu0 %v5683_v31  ;;  %3000 = vmatprep.subr.bf16.mxu1 %v5685_v32  ;;  %v6863_v31 = vsel %vm4973_vm3, %v6858_v25, %v6857_v54 }
 0xc48   :  { %2960 = vmatpush1.bf16.msra.mxu0 %v5691_v33  ;;  %3001 = vmatpush1.bf16.msra.mxu1 %v5693_v35 }
 0xc49   :  { %2961 = vmatprep.subr.bf16.mxu0 %v5697_v34  ;;  %3002 = vmatprep.subr.bf16.mxu1 %v5699_v40 }
 0xc4c   :  { %2962 = vmatpush1.bf16.msra.mxu0 %v5713_v58  ;;  %3003 = vmatpush1.bf16.msra.mxu1 %v5715_v59 }
 0xc4d   :  { %2963 = vmatprep.subr.bf16.mxu0 %v5719_v8  ;;  %3004 = vmatprep.subr.bf16.mxu1 %v5721_v1 }
 0xc50   :  { %2964 = vmatpush1.bf16.msra.mxu0 %v6835_v51  ;;  %3005 = vmatpush1.bf16.msra.mxu1 %v6836_v38 }
 0xc51   :  { %3065 = vmatprep.subr.bf16.mxu0 %v6227_v26  ;;  %3106 = vmatprep.subr.bf16.mxu1 %v6230_v61 }
 0xcf3   :  { %v2867_v52 = vpop.f32.mrf.mxu0  ;;  %v2908_v47 = vpop.f32.mrf.mxu1 }
 0xcf4   :  { %v2915_v53 = vadd.f32 %v2867_v52, %v6860_v50  ;;  %v2917_v32 = vadd.f32 %v2908_v47, %v6863_v31  ;;  %v6309_v52 = vld [vmem:[#allocation8 + $0x64] ss:$16 sps:$4 sm:$0xff]   ;;  %v6312_v47 = vld [vmem:[#allocation8 + $0x6c] ss:$16 sps:$4 sm:$0xff]   ;;  %v6315_v50 = vld [vmem:[#allocation8 + $0x60] ss:$16 sps:$4 sm:$0xff]  }
 0xcf5   :  { %v2869_v46 = vpop.f32.mrf.mxu0  ;;  %v2910_v43 = vpop.f32.mrf.mxu1 }
 0xcf6   :  { %v3917_v15 = vmul.f32 -1.442695, %v2915_v53  ;;  %v2916_v2 = vadd.f32 %v2869_v46, %v6861_v55  ;;  %v2918_v28 = vadd.f32 %v2910_v43, %v6862_v37  ;;  %v6318_v53 = vld [vmem:[#allocation8 + $0x68] ss:$16 sps:$4 sm:$0xff]   ;;  %v6321_v46 = vld [vmem:[#allocation8 + $0x44] ss:$16 sps:$4 sm:$0xff]  }
 0xcf7   :  { %v2871_v9 = vpop.f32.mrf.mxu0  ;;  %v2912_v13 = vpop.f32.mrf.mxu1  ;;  %v6324_v43 = vld [vmem:[#allocation8 + $0x4c] ss:$16 sps:$4 sm:$0xff]   ;;  %v6330_v55 = vld [vmem:[#allocation8 + $0x48] ss:$16 sps:$4 sm:$0xff]   ;;  %v6351_v37 = vld [vmem:[#allocation8] ss:$16 sps:$4 sm:$0xff]  }
 0xcf8   :  { %4406 = vpow2.f32 %v3917_v15  ;;  %v3918_v14 = vmul.f32 -1.442695, %v2916_v2  ;;  %v3919_v33 = vmul.f32 -1.442695, %v2918_v28  ;;  %v6327_v15 = vld [vmem:[#allocation8 + $0x40] ss:$16 sps:$4 sm:$0xff]  }
 0xcf9   :  { %v2872_v16 = vpop.f32.mrf.mxu0  ;;  %v2913_v18 = vpop.f32.mrf.mxu1  ;;  %v6333_v2 = vld [vmem:[#allocation8 + $0x24] ss:$16 sps:$4 sm:$0xff]   ;;  %v6336_v9 = vld [vmem:[#allocation8 + $0x2c] ss:$16 sps:$4 sm:$0xff]   ;;  %v6339_v13 = vld [vmem:[#allocation8 + $0x20] ss:$16 sps:$4 sm:$0xff]  }
 0xcfa   :  { %4408 = vpow2.f32 %v3918_v14  ;;  %v6342_v14 = vld [vmem:[#allocation8 + $0x28] ss:$16 sps:$4 sm:$0xff]   ;;  %v6345_v16 = vld [vmem:[#allocation8 + $0x4] ss:$16 sps:$4 sm:$0xff]   ;;  %v6348_v18 = vld [vmem:[#allocation8 + $0xc] ss:$16 sps:$4 sm:$0xff]  }
 0xcfb   :  { %4410 = vtanh.f32 %v2917_v32  ;;  %v6354_v28 = vld [vmem:[#allocation8 + $0x8] ss:$16 sps:$4 sm:$0xff]  }
 0xcfc   :  { %4412 = vpow2.f32 %v3919_v33  ;;  %v6865_v33 = vld [vmem:[#allocation31_spill] sm:$0xff] }
 0xd05   :  { %v4407_v35 = vpop.eup %4406 }
 0xd06   :  { %v2922_v34 = vadd.f32 1.0, %v4407_v35 }
 0xd07   :  { %v4409_v40 = vpop.eup %4408 }
 0xd08   :  { %4414 = vrcp.f32 %v2922_v34  ;;  %v2928_v58 = vadd.f32 1.0, %v4409_v40  ;;  %v4411_v59 = vpop.eup %4410 }
 0xd09   :  { %v4413_v8 = vpop.eup %4412 }
 0xd0a   :  { %4416 = vrcp.f32 %v2928_v58  ;;  %v2935_v51 = vadd.f32 1.0, %v4413_v8 }
 0xd0c   :  { %4418 = vrcp.f32 %v2935_v51 }
 0xd15   :  { %v4415_v1 = vpop.eup %4414 }
 0xd16   :  { %v2939_v41 = vmul.f32 %v4415_v1, %v4411_v59  ;;  %v6866_v59 = vsel %vm4969_vm2, %v5879_v56, %v5817_v57 }
 0xd17   :  { %v4417_v39 = vpop.eup %4416 }
 0xd18   :  { %v2938_v38 = vmul.f32 %v4417_v39, %v6188_v23  ;;  %v6265_v23 = vld [vmem:[#allocation8 + $0xe0] ss:$16 sps:$4 sm:$0xff]  }
 0xd19   :  { %v4419_v25 = vpop.eup %4418 }
 0xd1a   :  { %v6250_v12 = vadd.f32 %v2939_v41, %v2938_v38 }
 0xd1c   :  { %4420 = vtanh.f32 %v6250_v12 }
 0xd29   :  { %v4421_v17 = vpop.eup %4420 }
 0xd2a   :  { %v6253_v36 = vmul.f32 %v4421_v17, %v4419_v25  ;;  %v6868_v25 = vsel %vm4973_vm3, %v6847_v22, %v6846_v48 }
 0xd2c   :  { %v6259_v54 = vsel %vm139_vm1, %v6253_v36, %v6191_v20  ;;  %v2944_v63 = vpack.c.bf16 %v6253_v36, %v6253_v36 }
 0xd2d   :  { %3341 = vrot.lane.b32.xlu1 %v6259_v54, %s4624_s6 }
 0xd2e   :  { %2982 = vmatmul.mubr.bf16.vlgmr.msra.gmra.mxu0 %v2944_v63  ;;  %3023 = vmatmul.mubr.bf16.vlgmr.msra.gmra.mxu1 %v2944_v63 }
 0xd2f   :  { %3066 = vmatpush1.bf16.msra.mxu0 %v6265_v23  ;;  %3107 = vmatpush1.bf16.msra.mxu1 %v6268_v49 }
 0xd30   :  { %3067 = vmatprep.subr.bf16.mxu0 %v6271_v7  ;;  %3108 = vmatprep.subr.bf16.mxu1 %v6274_v5 }
 0xd31   :  { %3097 = vmatprep.mubr.bf16.mxu0 %v6741_v10  ;;  %3138 = vmatprep.mubr.bf16.mxu1 %v6741_v10 }
 0xd33   :  { %3068 = vmatpush1.bf16.msra.mxu0 %v6279_v45  ;;  %3109 = vmatpush1.bf16.msra.mxu1 %v6282_v11 }
 0xd34   :  { %3069 = vmatprep.subr.bf16.mxu0 %v6285_v60  ;;  %3110 = vmatprep.subr.bf16.mxu1 %v6288_v44 }
 0xd37   :  { %3070 = vmatpush1.bf16.msra.mxu0 %v6291_v27  ;;  %3111 = vmatpush1.bf16.msra.mxu1 %v6294_v30 }
 0xd38   :  { %3071 = vmatprep.subr.bf16.mxu0 %v6297_v21  ;;  %3112 = vmatprep.subr.bf16.mxu1 %v6300_v42 }
 0xd3b   :  { %3072 = vmatpush1.bf16.msra.mxu0 %v6303_v24  ;;  %3113 = vmatpush1.bf16.msra.mxu1 %v6306_v6 }
 0xd3c   :  { %3073 = vmatprep.subr.bf16.mxu0 %v6309_v52  ;;  %3114 = vmatprep.subr.bf16.mxu1 %v6312_v47 }
 0xd3f   :  { %3074 = vmatpush1.bf16.msra.mxu0 %v6315_v50  ;;  %3115 = vmatpush1.bf16.msra.mxu1 %v6318_v53 }
 0xd40   :  { %3075 = vmatprep.subr.bf16.mxu0 %v6321_v46  ;;  %3116 = vmatprep.subr.bf16.mxu1 %v6324_v43 }
 0xd43   :  { %3076 = vmatpush1.bf16.msra.mxu0 %v6327_v15  ;;  %3117 = vmatpush1.bf16.msra.mxu1 %v6330_v55 }
 0xd44   :  { %3077 = vmatprep.subr.bf16.mxu0 %v6333_v2  ;;  %3118 = vmatprep.subr.bf16.mxu1 %v6336_v9 }
 0xd47   :  { %3078 = vmatpush1.bf16.msra.mxu0 %v6339_v13  ;;  %3119 = vmatpush1.bf16.msra.mxu1 %v6342_v14 }
 0xd48   :  { %3079 = vmatprep.subr.bf16.mxu0 %v6345_v16  ;;  %3120 = vmatprep.subr.bf16.mxu1 %v6348_v18 }
 0xd4b   :  { %3080 = vmatpush1.bf16.msra.mxu0 %v6351_v37  ;;  %3121 = vmatpush1.bf16.msra.mxu1 %v6354_v28 }
 0xd4c   :  { %3181 = vmatprep.subr.bf16.mxu0 %v6227_v26  ;;  %3222 = vmatprep.subr.bf16.mxu1 %v6230_v61  ;;  %v6867_v61 = vsel %vm4977_vm4, %v6844_v3, %v5820_v4 }
 0xdee   :  { %v2983_v31 = vpop.f32.mrf.mxu0  ;;  %v3024_v32 = vpop.f32.mrf.mxu1 }
 0xdef   :  { %v3031_v35 = vadd.f32 %v2983_v31, %v6865_v33  ;;  %v3033_v57 = vadd.f32 %v3024_v32, %v6868_v25 }
 0xdf0   :  { %v2985_v34 = vpop.f32.mrf.mxu0  ;;  %v3026_v40 = vpop.f32.mrf.mxu1 }
 0xdf1   :  { %v3920_v58 = vmul.f32 -1.442695, %v3031_v35  ;;  %v3032_v8 = vadd.f32 %v2985_v34, %v6866_v59  ;;  %v3034_v38 = vadd.f32 %v3026_v40, %v6867_v61 }
 0xdf2   :  { %v2987_v1 = vpop.f32.mrf.mxu0  ;;  %v3028_v41 = vpop.f32.mrf.mxu1 }
 0xdf3   :  { %4422 = vpow2.f32 %v3920_v58  ;;  %v3921_v39 = vmul.f32 -1.442695, %v3032_v8  ;;  %v3922_v56 = vmul.f32 -1.442695, %v3034_v38  ;;  %v6869_v1 = vld [vmem:[#allocation26_spill] sm:$0xff] }
 0xdf4   :  { %v2988_v26 = vpop.f32.mrf.mxu0  ;;  %v3029_v51 = vpop.f32.mrf.mxu1 }
 0xdf5   :  { %4424 = vpow2.f32 %v3921_v39 }
 0xdf6   :  { %4426 = vtanh.f32 %v3033_v57 }
 0xdf7   :  { %4428 = vpow2.f32 %v3922_v56 }
 0xe00   :  { %v4423_v17 = vpop.eup %4422 }
 0xe01   :  { %v3038_v63 = vadd.f32 1.0, %v4423_v17  ;;  %v6880_v17 = vld [vmem:[#allocation28_spill] sm:$0xff] }
 0xe02   :  { %v4425_v31 = vpop.eup %4424 }
 0xe03   :  { %4430 = vrcp.f32 %v3038_v63  ;;  %v3044_v33 = vadd.f32 1.0, %v4425_v31  ;;  %v4427_v35 = vpop.eup %4426 }
 0xe04   :  { %v4429_v34 = vpop.eup %4428 }
 0xe05   :  { %4432 = vrcp.f32 %v3044_v33  ;;  %v3051_v40 = vadd.f32 1.0, %v4429_v34  ;;  %v4625_v34 = vmov 0.0  }
 0xe07   :  { %4434 = vrcp.f32 %v3051_v40  ;;  %v4206_v40 = vld [vmem:[%s6598_s7 + $0x18] sm:$0xff]  }
 0xe10   :  { %v4431_v58 = vpop.eup %4430 }
 0xe11   :  { %v3055_v4 = vmul.f32 %v4431_v58, %v4427_v35  ;;  %v4202_v35 = vld [vmem:[%s6598_s7 + $0x38] sm:$0xff]   ;;  %v4203_v58 = vld [vmem:[%s6598_s7 + $0x30] sm:$0xff]  }
 0xe12   :  { %v4433_v3 = vpop.eup %4432 }
 0xe13   :  { %v3054_v59 = vmul.f32 %v4433_v3, %v6250_v12  ;;  %v6397_v12 = vsel %vm139_vm1, %v6191_v20, %v6253_v36  ;;  %v6870_v36 = vld [vmem:[#allocation37_spill] sm:$0xff]  ;;  %v4205_v3 = vld [vmem:[%s6598_s7 + $0x20] sm:$0xff]  }
 0xe14   :  { %v4435_v48 = vpop.eup %4434 }
 0xe15   :  { %v6376_v8 = vadd.f32 %v3055_v4, %v3054_v59  ;;  %v4204_v4 = vld [vmem:[%s6598_s7 + $0x28] sm:$0xff]   ;;  %v4207_v59 = vld [vmem:[%s6598_s7 + $0x10] sm:$0xff]  }
 0xe17   :  { %4436 = vtanh.f32 %v6376_v8 }
 0xe24   :  { %v4437_v22 = vpop.eup %4436 }
 0xe25   :  { %v6379_v32 = vmul.f32 %v4437_v22, %v4435_v48  ;;  %v4209_v48 = vld [vmem:[%s6598_s7] sm:$0xff]  }
 0xe27   :  { %v6385_v41 = vsel %vm139_vm1, %v6379_v32, %v6869_v1  ;;  %v3060_v39 = vpack.c.bf16 %v6379_v32, %v6379_v32 }
 0xe28   :  { %3343 = vrot.lane.b32.xlu1 %v6385_v41, %s4624_s6 }
 0xe29   :  { %3098 = vmatmul.mubr.bf16.vlgmr.msra.gmra.mxu0 %v3060_v39  ;;  %3139 = vmatmul.mubr.bf16.vlgmr.msra.gmra.mxu1 %v3060_v39 }
 0xe2a   :  { %3182 = vmatpush1.bf16.msra.mxu0 %v6265_v23  ;;  %3223 = vmatpush1.bf16.msra.mxu1 %v6268_v49 }
 0xe2b   :  { %3183 = vmatprep.subr.bf16.mxu0 %v6271_v7  ;;  %3224 = vmatprep.subr.bf16.mxu1 %v6274_v5 }
 0xe2c   :  { %3339 = vrot.lane.b32.xlu1 %v6397_v12, %s4624_s6  ;;  %3213 = vmatprep.mubr.bf16.mxu0 %v6741_v10 }
 0xe2d   :  { %3254 = vmatprep.mubr.bf16.mxu1 %v6741_v10 }
 0xe2e   :  { %3184 = vmatpush1.bf16.msra.mxu0 %v6279_v45  ;;  %3225 = vmatpush1.bf16.msra.mxu1 %v6282_v11  ;;  %v6871_v45 = vld [vmem:[#allocation41_spill] sm:$0xff]  ;;  %v6872_v11 = vld [vmem:[#allocation24_spill] sm:$0xff] }
 0xe2f   :  { %3185 = vmatprep.subr.bf16.mxu0 %v6285_v60  ;;  %3226 = vmatprep.subr.bf16.mxu1 %v6288_v44  ;;  %v6873_v60 = vsel %vm4969_vm2, %v6871_v45, %v6872_v11 }
 0xe32   :  { %3186 = vmatpush1.bf16.msra.mxu0 %v6291_v27  ;;  %3227 = vmatpush1.bf16.msra.mxu1 %v6294_v30 }
 0xe33   :  { %3187 = vmatprep.subr.bf16.mxu0 %v6297_v21  ;;  %3228 = vmatprep.subr.bf16.mxu1 %v6300_v42 }
 0xe36   :  { %3188 = vmatpush1.bf16.msra.mxu0 %v6303_v24  ;;  %3229 = vmatpush1.bf16.msra.mxu1 %v6306_v6  ;;  %v6874_v6 = vld [vmem:[#allocation38_spill] sm:$0xff] }
 0xe37   :  { %3189 = vmatprep.subr.bf16.mxu0 %v6309_v52  ;;  %3230 = vmatprep.subr.bf16.mxu1 %v6312_v47  ;;  %v6875_v52 = vld [vmem:[#allocation22_spill] sm:$0xff] }
 0xe38   :  { %v6876_v47 = vsel %vm4977_vm4, %v6874_v6, %v6875_v52 }
 0xe3a   :  { %3190 = vmatpush1.bf16.msra.mxu0 %v6315_v50  ;;  %3231 = vmatpush1.bf16.msra.mxu1 %v6318_v53  ;;  %v6877_v53 = vld [vmem:[#allocation15_spill] sm:$0xff] }
 0xe3b   :  { %3191 = vmatprep.subr.bf16.mxu0 %v6321_v46  ;;  %3232 = vmatprep.subr.bf16.mxu1 %v6324_v43  ;;  %v6878_v46 = vld [vmem:[#allocation21_spill] sm:$0xff] }
 0xe3c   :  { %v6879_v43 = vsel %vm4973_vm3, %v6877_v53, %v6878_v46 }
 0xe3e   :  { %3192 = vmatpush1.bf16.msra.mxu0 %v6327_v15  ;;  %3233 = vmatpush1.bf16.msra.mxu1 %v6330_v55 }
 0xe3f   :  { %3193 = vmatprep.subr.bf16.mxu0 %v6333_v2  ;;  %3234 = vmatprep.subr.bf16.mxu1 %v6336_v9 }
 0xe42   :  { %3194 = vmatpush1.bf16.msra.mxu0 %v6339_v13  ;;  %3235 = vmatpush1.bf16.msra.mxu1 %v6342_v14 }
 0xe43   :  { %3195 = vmatprep.subr.bf16.mxu0 %v6345_v16  ;;  %3236 = vmatprep.subr.bf16.mxu1 %v6348_v18 }
 0xe46   :  { %3196 = vmatpush1.bf16.msra.mxu0 %v6351_v37  ;;  %3237 = vmatpush1.bf16.msra.mxu1 %v6354_v28 }
 0xe47   :  { %3973 = vmatprep.subr.bf16.mxu0 %v4625_v34  ;;  %3993 = vmatprep.subr.bf16.mxu1 %v4625_v34 }
 0xee9   :  { %v3099_v10 = vpop.f32.mrf.mxu0  ;;  %v3140_v20 = vpop.f32.mrf.mxu1 }
 0xeea   :  { %v3147_v23 = vadd.f32 %v3099_v10, %v6870_v36  ;;  %v3149_v15 = vadd.f32 %v3140_v20, %v6879_v43  ;;  %v6881_v10 = vld [vmem:[#allocation43_spill] sm:$0xff] }
 0xeeb   :  { %v3101_v49 = vpop.f32.mrf.mxu0  ;;  %v3142_v7 = vpop.f32.mrf.mxu1 }
 0xeec   :  { %v3923_v5 = vmul.f32 -1.442695, %v3147_v23  ;;  %v3148_v44 = vadd.f32 %v3101_v49, %v6873_v60  ;;  %v3150_v50 = vadd.f32 %v3142_v7, %v6876_v47  ;;  %v6882_v7 = vld [vmem:[#allocation36_spill] sm:$0xff] }
 0xeed   :  { %v3103_v27 = vpop.f32.mrf.mxu0  ;;  %v3144_v30 = vpop.f32.mrf.mxu1  ;;  %v6889_v47 = vld [vmem:[#allocation40_spill] sm:$0xff] }
 0xeee   :  { %4438 = vpow2.f32 %v3923_v5  ;;  %v3924_v21 = vmul.f32 -1.442695, %v3148_v44  ;;  %v3925_v55 = vmul.f32 -1.442695, %v3150_v50  ;;  %v6883_v5 = vld [vmem:[#allocation35_spill] sm:$0xff]  ;;  %v6890_v50 = vsel %vm4973_vm3, %v6888_v19, %v6889_v47 }
 0xeef   :  { %v3104_v42 = vpop.f32.mrf.mxu0  ;;  %v3145_v24 = vpop.f32.mrf.mxu1  ;;  %v6884_v45 = vsel %vm4969_vm2, %v6882_v7, %v6883_v5  ;;  %v3929_v47 = vld [vmem:[%s6599_s8] ss:$0 sm:$0xff] }
 0xef0   :  { %4440 = vpow2.f32 %v3924_v21  ;;  %v6885_v42 = vld [vmem:[#allocation42_spill] sm:$0xff]  ;;  %v6886_v24 = vld [vmem:[#allocation13_spill] sm:$0xff] }
 0xef1   :  { %4442 = vtanh.f32 %v3149_v15  ;;  %v6887_v6 = vsel %vm4977_vm4, %v6885_v42, %v6886_v24 }
 0xef2   :  { %4444 = vpow2.f32 %v3925_v55 }
 0xefb   :  { %v4439_v2 = vpop.eup %4438 }
 0xefc   :  { %v3154_v9 = vadd.f32 1.0, %v4439_v2 }
 0xefd   :  { %v4441_v13 = vpop.eup %4440 }
 0xefe   :  { %4446 = vrcp.f32 %v3154_v9  ;;  %v3160_v14 = vadd.f32 1.0, %v4441_v13  ;;  %v4443_v16 = vpop.eup %4442 }
 0xeff   :  { %v4445_v18 = vpop.eup %4444 }
 0xf00   :  { %4448 = vrcp.f32 %v3160_v14  ;;  %v3167_v51 = vadd.f32 1.0, %v4445_v18 }
 0xf02   :  { %4450 = vrcp.f32 %v3167_v51 }
 0xf0b   :  { %v4447_v37 = vpop.eup %4446 }
 0xf0c   :  { %v3171_v28 = vmul.f32 %v4447_v37, %v4443_v16 }
 0xf0d   :  { %v4449_v26 = vpop.eup %4448 }
 0xf0e   :  { %v3170_v61 = vmul.f32 %v4449_v26, %v6376_v8  ;;  %v4208_v8 = vld [vmem:[%s6598_s7 + $0x8] sm:$0xff]  }
 0xf0f   :  { %v4451_v25 = vpop.eup %4450 }
 0xf10   :  { %v6448_v38 = vadd.f32 %v3171_v28, %v3170_v61  ;;  %v6891_v61 = vld [vmem:[#allocation44_spill] sm:$0xff] }
 0xf12   :  { %4452 = vtanh.f32 %v6448_v38 }
 0xf1f   :  { %v4453_v57 = vpop.eup %4452 }
 0xf20   :  { %v3174_v56 = vmul.f32 %v4453_v57, %v4451_v25  ;;  %v6892_v57 = vld [vmem:[#allocation19_spill] sm:$0xff] }
 0xf22   :  { %v6454_v63 = vsel %vm139_vm1, %v3174_v56, %v6880_v17  ;;  %v6459_v31 = vsel %vm139_vm1, %v6880_v17, %v3174_v56  ;;  %v3176_v33 = vpack.c.bf16 %v3174_v56, %v3174_v56 }
 0xf23   :  { %3345 = vrot.lane.b32.xlu0 %v6454_v63, %s4624_s6  ;;  %3335 = vrot.lane.b32.xlu1 %v6459_v31, %s4624_s6 }
 0xf24   :  { %3214 = vmatmul.mubr.bf16.vlgmr.msra.gmra.mxu0 %v3176_v33  ;;  %3255 = vmatmul.mubr.bf16.vlgmr.msra.gmra.mxu1 %v3176_v33 }
 0xf25   :  { %3974 = vmatpush3.bf16.msra.mxu0 %v4202_v35  ;;  %3989 = vmatprep.mubr.msk.bf16.mxu0 %vm4626_vm5, %v4625_v34 }
 0xf26   :  { %3975 = vmatprep.subr.bf16.mxu0 %v4625_v34  ;;  %4001 = vmatprep.mubr.msk.bf16.mxu1 %vm4626_vm5, %v4625_v34 }
 0xf29   :  { %3976 = vmatpush3.bf16.msra.mxu0 %v4203_v58  ;;  %v3342_v58 = vpop.permute.xlu1 %3341 }
 0xf2a   :  { %3977 = vmatprep.subr.bf16.mxu0 %v4625_v34 }
 0xf2d   :  { %3978 = vmatpush3.bf16.msra.mxu0 %v4204_v4 }
 0xf2e   :  { %3979 = vmatprep.subr.bf16.mxu0 %v4625_v34 }
 0xf31   :  { %3980 = vmatpush3.bf16.msra.mxu0 %v4205_v3  ;;  %v3344_v3 = vpop.permute.xlu1 %3343 }
 0xf32   :  { %3981 = vmatprep.subr.bf16.mxu0 %v4625_v34 }
 0xf35   :  { %3982 = vmatpush3.bf16.msra.mxu0 %v4206_v40 }
 0xf36   :  { %3983 = vmatprep.subr.bf16.mxu0 %v4625_v34 }
 0xf39   :  { %3984 = vmatpush3.bf16.msra.mxu0 %v4207_v59 }
 0xf3a   :  { %3985 = vmatprep.subr.bf16.mxu0 %v4625_v34 }
 0xf3d   :  { %3986 = vmatpush3.bf16.msra.mxu0 %v4208_v8 }
 0xf3e   :  { %3987 = vmatprep.subr.bf16.mxu0 %v4625_v34 }
 0xf41   :  { %3988 = vmatpush3.bf16.msra.mxu0 %v4209_v48  ;;  %v3361_v48 = vadd.f32 %v3342_v58, %v6259_v54 }
 0xf42   :  { %4005 = vmatprep.subr.bf16.mxu0 %v4625_v34 }
 0xf95   :  { %v3346_v35 = vpop.permute.xlu0 %3345 }
 0xf96   :  { %v3363_v4 = vadd.f32 %v3346_v35, %v6454_v63  ;;  %v4211_v35 = vld [vmem:[%s6600_s9] sm:$0xff]  }
 0xfe4   :  { %v3215_v22 = vpop.f32.mrf.mxu0  ;;  %v3256_v39 = vpop.f32.mrf.mxu1 }
 0xfe5   :  { %v3263_v20 = vadd.f32 %v3215_v22, %v6881_v10  ;;  %v3265_v53 = vadd.f32 %v3256_v39, %v6890_v50  ;;  %v3340_v22 = vpop.permute.xlu1 %3339 }
 0xfe6   :  { %v3217_v36 = vpop.f32.mrf.mxu0  ;;  %v3258_v23 = vpop.f32.mrf.mxu1  ;;  %v3360_v63 = vadd.f32 %v3340_v22, %v6397_v12 }
 0xfe7   :  { %v3926_v49 = vmul.f32 -1.442695, %v3263_v20  ;;  %v3264_v11 = vadd.f32 %v3217_v36, %v6884_v45  ;;  %v3266_v52 = vadd.f32 %v3258_v23, %v6887_v6 }
 0xfe8   :  { %v3219_v60 = vpop.f32.mrf.mxu0  ;;  %v3260_v44 = vpop.f32.mrf.mxu1 }
 0xfe9   :  { %4454 = vpow2.f32 %v3926_v49  ;;  %v3927_v27 = vmul.f32 -1.442695, %v3264_v11  ;;  %v3928_v46 = vmul.f32 -1.442695, %v3266_v52  ;;  %v3336_v36 = vpop.permute.xlu1 %3335 }
 0xfea   :  { %v3220_v30 = vpop.f32.mrf.mxu0  ;;  %v3261_v21 = vpop.f32.mrf.mxu1  ;;  %v3358_v49 = vadd.f32 %v3336_v36, %v6459_v31 }
 0xfeb   :  { %4456 = vpow2.f32 %v3927_v27 }
 0xfec   :  { %4458 = vtanh.f32 %v3265_v53 }
 0xfed   :  { %4460 = vpow2.f32 %v3928_v46 }
 0xff6   :  { %v4455_v43 = vpop.eup %4454 }
 0xff7   :  { %v3270_v15 = vadd.f32 1.0, %v4455_v43 }
 0xff8   :  { %v4457_v55 = vpop.eup %4456 }
 0xff9   :  { %4462 = vrcp.f32 %v3270_v15  ;;  %v3276_v2 = vadd.f32 1.0, %v4457_v55  ;;  %v4459_v0 = vpop.eup %4458 }
 0xffa   :  { %v4461_v9 = vpop.eup %4460 }
 0xffb   :  { %4464 = vrcp.f32 %v3276_v2  ;;  %v3283_v18 = vadd.f32 1.0, %v4461_v9  ;;  %v6893_v9 = vld [vmem:[#allocation14_spill] sm:$0xff] }
 0xffd   :  { %4466 = vrcp.f32 %v3283_v18 }
0x1006   :  { %v4463_v13 = vpop.eup %4462 }
0x1007   :  { %v3287_v14 = vmul.f32 %v4463_v13, %v4459_v0  ;;  %v3552_v0 = vand.u32 7, %v6864_v62  ;;  %v4210_v62 = vld [vmem:[%s6600_s9 + $0x8] sm:$0xff]  }
0x1008   :  { %v4465_v16 = vpop.eup %4464 }
0x1009   :  { %v3286_v29 = vmul.f32 %v4465_v16, %v6448_v38  ;;  %v3307_v38 = vsel %vm139_vm1, %v6869_v1, %v6379_v32  ;;  %v3362_v32 = vadd.f32 %v3344_v3, %v6385_v41  ;;  %vm3560_vm6 = vcmp.eq.s32.totalorder %v3552_v0, %v6893_v9 }
0x100a   :  { %v4467_v28 = vpop.eup %4466 }
0x100b   :  { %v3288_v37 = vadd.f32 %v3287_v14, %v3286_v29  ;;  %v3578_v39 = vpack.c.bf16 %v3362_v32, %v3361_v48 }
0x100d   :  { %4468 = vtanh.f32 %v3288_v37 }
0x100e   :  { %4470 = vtanh.f32 %v3363_v4 }
0x101a   :  { %v4469_v26 = vpop.eup %4468 }
0x101b   :  { %v3290_v51 = vmul.f32 %v4469_v26, %v4467_v28  ;;  %v4471_v54 = vpop.eup %4470 }
0x101d   :  { %v3297_v25 = vsel %vm139_vm1, %v3290_v51, %v6891_v61  ;;  %v3292_v56 = vadd.f32 %v3290_v51, %v6892_v57  ;;  %v3295_v33 = vsel %vm139_vm1, %v6891_v61, %v3290_v51 }
0x101e   :  { %3347 = vrot.lane.b32.xlu0 %v3297_v25, %s4624_s6 }
0x101f   :  { %v3373_v17 = vpack.c.bf16 %v3292_v56, %v3292_v56 }
0x1021   :  { %3990 = vmatmul.mubr.bf16.vlgmr.msra.gmra.mxu0 %v3373_v17 }
0x1022   :  { %3337 = vrot.lane.b32.xlu0 %v3307_v38, %s4624_s6  ;;  %4013 = vmatprep.mubr.msk.bf16.mxu0 %vm4626_vm5, %v4625_v34 }
0x1026   :  { %3333 = vrot.lane.b32.xlu0 %v3295_v33, %s4624_s6 }
0x1090   :  { %v3348_v40 = vpop.permute.xlu0 %3347 }
0x1091   :  { %v3364_v59 = vadd.f32 %v3348_v40, %v3297_v25 }
0x1093   :  { %4472 = vtanh.f32 %v3364_v59  ;;  %v3579_v1 = vpack.c.bf16 %v3364_v59, %v3363_v4 }
0x1094   :  { %v3338_v8 = vpop.permute.xlu0 %3337  ;;  %4474 = vtanh.f32 %v3362_v32  ;;  %v4212_v32 = vld [vmem:[%s6602_s11 + $0x8] sm:$0xff]  }
0x1095   :  { %4006 = vmatpush3.bf16.msra.mxu0 %v3579_v1  ;;  %v3359_v10 = vadd.f32 %v3338_v8, %v3307_v38  ;;  %4476 = vtanh.f32 %v3361_v48  ;;  %v4213_v1 = vld [vmem:[%s6602_s11] sm:$0xff]  }
0x1096   :  { %4007 = vmatprep.subr.bf16.mxu0 %v4625_v34  ;;  %v3940_v8 = vld [vmem:[%s6601_s10] ss:$0 sm:$0xff] }
0x1097   :  { %v3577_v41 = vpack.c.bf16 %v3360_v63, %v3359_v10  ;;  %4478 = vtanh.f32 %v3359_v10 }
0x1098   :  { %v3334_v20 = vpop.permute.xlu0 %3333  ;;  %4480 = vtanh.f32 %v3360_v63 }
0x1099   :  { %4008 = vmatpush3.bf16.msra.mxu0 %v3578_v39  ;;  %v3357_v23 = vadd.f32 %v3334_v20, %v3295_v33 }
0x109a   :  { %4009 = vmatprep.subr.bf16.mxu0 %v4625_v34 }
0x109b   :  { %v3576_v7 = vpack.c.bf16 %v3358_v49, %v3357_v23  ;;  %4482 = vtanh.f32 %v3357_v23 }
0x109c   :  { %4484 = vtanh.f32 %v3358_v49 }
0x109d   :  { %4010 = vmatpush3.bf16.msra.mxu0 %v3577_v41 }
0x109e   :  { %4011 = vmatprep.subr.bf16.mxu0 %v4625_v34 }
0x10a0   :  { %v4473_v5 = vpop.eup %4472 }
0x10a1   :  { %4012 = vmatpush3.bf16.msra.mxu0 %v3576_v7  ;;  %v3490_v45 = vpack.c.bf16 %v4473_v5, %v4471_v54  ;;  %v4475_v11 = vpop.eup %4474 }
0x10a2   :  { %v4477_v60 = vpop.eup %4476 }
0x10a3   :  { %v3504_v12 = vsel %vm274_vm0, %v3490_v45, 0  ;;  %v3489_v44 = vpack.c.bf16 %v4475_v11, %v4477_v60 }
0x10a4   :  { %3994 = vmatpush3.bf16.xpose.msra.mxu1 %v3504_v12  ;;  %v4479_v27 = vpop.eup %4478 }
0x10a5   :  { %3995 = vmatprep.subr.bf16.mxu1 %v4625_v34  ;;  %v3501_v31 = vsel %vm274_vm0, %v3489_v44, 0  ;;  %v4481_v30 = vpop.eup %4480 }
0x10a6   :  { %v3488_v21 = vpack.c.bf16 %v4481_v30, %v4479_v27 }
0x10a8   :  { %v3498_v42 = vsel %vm274_vm0, %v3488_v21, 0  ;;  %v4483_v24 = vpop.eup %4482 }
0x10a9   :  { %v4485_v6 = vpop.eup %4484 }
0x10aa   :  { %v3487_v52 = vpack.c.bf16 %v4485_v6, %v4483_v24 }
0x10ac   :  { %3996 = vmatpush3.bf16.xpose.msra.mxu1 %v3501_v31  ;;  %v3495_v19 = vsel %vm274_vm0, %v3487_v52, 0 }
0x10ad   :  { %3997 = vmatprep.subr.bf16.mxu1 %v4625_v34 }
0x10b4   :  { %3998 = vmatpush3.bf16.xpose.msra.mxu1 %v3498_v42 }
0x10b5   :  { %3999 = vmatprep.subr.bf16.mxu1 %v4625_v34 }
0x10bc   :  { %4000 = vmatpush3.bf16.xpose.msra.mxu1 %v3495_v19 }
0x10bd   :  { %4017 = vmatprep.subr.bf16.mxu1 %v4625_v34 }
0x10e1   :  { %v3479_v50 = vpop.f32.mrf.mxu0 }
0x10e2   :  { %v3480_v53 = vadd.f32 %v3929_v47, %v3479_v50 }
0x10e3   :  { %v3991_v46 = vpop.f32.mrf.mxu0 }
0x10e4   :  { %v3485_v43 = vmax.f32 %v3480_v53, 0.0 }
0x10e5   :  { %v3482_v15 = vpop.f32.mrf.mxu0 }
0x10e6   :  { %v3486_v55 = vpack.c.bf16 %v3485_v43, %v3485_v43 }
0x10e7   :  { %v3992_v2 = vpop.f32.mrf.mxu0 }
0x10e8   :  { %4002 = vmatmul.mubr.msk.bf16.vlgmr.msra.gmra.mxu1 %vm274_vm0, %v3486_v55 }
0x10e9   :  { %4021 = vmatprep.mubr.msk.bf16.mxu1 %vm4626_vm5, %v4625_v34  ;;  %4018 = vmatpush3.bf16.msra.mxu1 %v4210_v62 }
0x10ea   :  { %4019 = vmatprep.subr.bf16.mxu1 %v4625_v34 }
0x10ed   :  { %4020 = vmatpush3.bf16.msra.mxu1 %v4211_v35 }
0x10ee   :  { %4025 = vmatprep.subr.bf16.mxu1 %v4625_v34 }
0x11a8   :  { %v3540_v13 = vpop.f32.mrf.mxu1 }
0x11a9   :  { %v3561_v14 = vsel %vm3560_vm6, %v3540_v13, -1e+30 }
0x11aa   :  { %v4003_v16 = vpop.f32.mrf.mxu1  ;;  %v3563_v18 = vsel %vm3562_vm7, %v3561_v14, -inf }
0x11ab   :  { %3564 = vmax.xlane.f32.xlu0 %v3563_v18 }
0x11ac   :  { %v3543_v29 = vpop.f32.mrf.mxu1 }
0x11ae   :  { %v4004_v37 = vpop.f32.mrf.mxu1 }
0x1234   :  { %v3565_v28 = vpop.xlane.xlu0 %3564 }
0x1235   :  { %v3566_v26 = vsub.f32 %v3561_v14, %v3565_v28 }
0x1237   :  { %v3567_v51 = vmul.f32 1.442695, %v3566_v26 }
0x1239   :  { %4486 = vpow2.f32 %v3567_v51 }
0x1246   :  { %v4487_v61 = vpop.eup %4486 }
0x1247   :  { %v3569_v25 = vsel %vm3560_vm6, %v4487_v61, 0.0 }
0x1248   :  { %v3570_v57 = vsel %vm3562_vm7, %v3569_v25, 0.0 }
0x1249   :  { %3571 = vadd.xlane.f32.xlu1 %v3570_v57 }
0x12d2   :  { %v3572_v56 = vpop.xlane.xlu1 %3571 }
0x12d3   :  { %4488 = vrcp.f32 %v3572_v56 }
0x12e0   :  { %v4489_v17 = vpop.eup %4488 }
0x12e1   :  { %v3574_v38 = vmul.f32 %v4489_v17, %v3569_v25 }
0x12e3   :  { %v3575_v33 = vpack.c.bf16 %v3574_v38, %v3574_v38 }
0x12e5   :  { %4014 = vmatmul.mubr.msk.bf16.vlgmr.msra.gmra.mxu0 %vm3562_vm7, %v3575_v33 }
0x13a5   :  { %v3617_v58 = vpop.f32.mrf.mxu0 }
0x13a6   :  { %v3623_v4 = vpack.c.bf16 %v3617_v58, %v3617_v58 }
0x13a7   :  { %v4015_v3 = vpop.f32.mrf.mxu0 }
0x13a8   :  { %4022 = vmatmul.mubr.msk.bf16.vlgmr.msra.gmra.mxu1 %vm274_vm0, %v3623_v4 }
0x13a9   :  { %v3620_v40 = vpop.f32.mrf.mxu0  ;;  %4029 = vmatprep.mubr.msk.bf16.mxu1 %vm4626_vm5, %v4625_v34  ;;  %4026 = vmatpush3.bf16.msra.mxu1 %v4212_v32 }
0x13aa   :  { %4027 = vmatprep.subr.bf16.mxu1 %v4625_v34  ;;  %v3944_v34 = vld [vmem:[%s6603_s12] ss:$0 sm:$0xff] }
0x13ab   :  { %v4016_v59 = vpop.f32.mrf.mxu0 }
0x13ad   :  { %4028 = vmatpush3.bf16.msra.mxu1 %v4213_v1 }
0x1468   :  { %v3684_v48 = vpop.f32.mrf.mxu1 }
0x1469   :  { %v3685_v22 = vadd.f32 %v3940_v8, %v3684_v48 }
0x146a   :  { %v4023_v39 = vpop.f32.mrf.mxu1 }
0x146b   :  { %v3690_v10 = vmax.f32 %v3685_v22, 0.0 }
0x146c   :  { %v3687_v20 = vpop.f32.mrf.mxu1 }
0x146d   :  { %v3691_v63 = vpack.c.bf16 %v3690_v10, %v3690_v10 }
0x146e   :  { %v4024_v36 = vpop.f32.mrf.mxu1 }
0x146f   :  { %4030 = vmatmul.mubr.msk.bf16.vlgmr.msra.gmra.mxu1 %vm274_vm0, %v3691_v63 }
0x152f   :  { %v3752_v41 = vpop.f32.mrf.mxu1 }
0x1530   :  { %v3753_v23 = vadd.f32 %v3944_v34, %v3752_v41 }
0x1531   :  { %v4031_v49 = vpop.f32.mrf.mxu1 }
0x1532   :  { %3758 = vst [vmem:[%s6604_s13] sm:$0xff] %v3753_v23 }
0x1533   :  { %v3755_v54 = vpop.f32.mrf.mxu1 }
0x1535   :  { %v4032_v7 = vpop.f32.mrf.mxu1 }
0x1536   :  { %3763 = vsyncpa [#allocation5], 1 }
0x1537   :  { %3764 = vsyncpa [#allocation7], 1 }

</bundles_post_ra>
